<compile_context>
chip_gen: v7x
topology: tpu7x:2x2x1
jax: 0.10.0
libtpu: 0.0.40
codegen_flags: <defaults>
</compile_context>

<pallas_src>
import functools

import jax
import jax.numpy as jnp
from jax.experimental import pallas as pl
from jax.experimental.pallas import tpu as pltpu


def gnconv_kernel(x_ref, w_pwa_ref, w_abc_ref, b_pwa_ref, b_abc_ref,
                  w_dw_ref, b_dw_ref, w_out_ref, b_out_ref, y_ref,
                  *, B, H, W, C, mm_dtype):
    """Single grid step over the whole batch, lane-dense (B*H, W*C) layout."""
    WC = W * C
    f32 = jnp.float32

    x = x_ref[...].astype(mm_dtype)                      # (B*H, WC)

    # proj_in: 1x1 conv done as two lane-dense matmuls against block-diagonal
    # weights (block (w, w) holds w_in), so the output keeps the same
    # (B*H, W*C) lane layout — no re-layout, no masked lanes.
    pwa = jnp.dot(x, w_pwa_ref[...].astype(mm_dtype),
                  preferred_element_type=f32) + b_pwa_ref[...].astype(f32)
    abc = jnp.dot(x, w_abc_ref[...].astype(mm_dtype),
                  preferred_element_type=f32) + b_abc_ref[...].astype(f32)

    abc3 = abc.reshape(B, H, WC)                         # leading-dim split only
    wdw = w_dw_ref[...].astype(f32)                      # (7, 7, WC), s folded in

    # Depthwise 7x7, padding=3: build 7 horizontally shifted, zero-filled
    # copies (shift by dx*C lanes), each padded with 3 zero rows top/bottom.
    # Every (ky, kx) tap is then a static slice of a value — no scratch, no
    # scratch zeroing, no misaligned masked loads.
    zrow = jnp.zeros((B, 3, WC), f32)
    shifted = []
    for dx in range(-3, 4):
        if dx > 0:
            hx = jnp.concatenate(
                [abc3[:, :, dx * C:], jnp.zeros((B, H, dx * C), f32)], axis=2)
        elif dx < 0:
            hx = jnp.concatenate(
                [jnp.zeros((B, H, -dx * C), f32), abc3[:, :, :WC + dx * C]],
                axis=2)
        else:
            hx = abc3
        shifted.append(jnp.concatenate([zrow, hx, zrow], axis=1))  # (B, H+6, WC)

    # dw = depthwise_conv(abc) * s + b_dw * s   (s pre-folded on the host)
    dw = jnp.zeros((B, H, WC), f32) + b_dw_ref[...].astype(f32)
    for ky in range(7):
        for kx in range(7):
            dw = dw + shifted[kx][:, ky:ky + H, :] * wdw[ky, kx]

    # Chunked gating in the PyTorch module is an exact channel partition ->
    # plain elementwise product over all channels.
    out = (pwa * dw.reshape(B * H, WC)).astype(mm_dtype)

    # proj_out: 1x1 conv as a lane-dense block-diagonal matmul.
    y = jnp.dot(out, w_out_ref[...].astype(mm_dtype),
                preferred_element_type=f32) + b_out_ref[...].astype(f32)
    y_ref[...] = y.astype(y_ref.dtype)                   # (B*H, 128) unmasked vst


def gnconv_pallas(x_nhwc, params, *, s=1.0, mm_dtype=jnp.float32):
    """x_nhwc: (B, H, W, C). Targets W*C being a multiple of 128 (here 128)."""
    B, H, W, C = x_nhwc.shape
    WC = W * C
    w_in, b_in, w_dw, b_dw, w_out, b_out = params

    # ---- host-side weight prep (constant-folded under jit) ----------------
    eye_w = jnp.eye(W, dtype=w_in.dtype)
    w_pwa_big = jnp.kron(eye_w, w_in[:, :C])             # (WC, WC) block-diag
    w_abc_big = jnp.kron(eye_w, w_in[:, C:])             # (WC, WC)
    w_out_big = jnp.kron(eye_w, w_out)                   # (WC, WC)
    b_pwa_wide = jnp.tile(b_in[:, :C], (1, W))           # (1, WC)
    b_abc_wide = jnp.tile(b_in[:, C:], (1, W))           # (1, WC)
    b_out_wide = jnp.tile(b_out, (1, W))                 # (1, WC)
    w_dw_wide = jnp.tile(w_dw, (1, 1, W)) * s            # (7, 7, WC), fold s
    b_dw_wide = jnp.tile(b_dw, (1, W)) * s               # (1, WC),   fold s

    x_flat = x_nhwc.reshape(B * H, WC)                   # lane-dense layout

    kernel = functools.partial(gnconv_kernel, B=B, H=H, W=W, C=C,
                               mm_dtype=mm_dtype)
    full2d = lambda i: (0, 0)
    y_flat = pl.pallas_call(
        kernel,
        out_shape=jax.ShapeDtypeStruct((B * H, WC), x_nhwc.dtype),
        grid_spec=pltpu.PrefetchScalarGridSpec(
            num_scalar_prefetch=0,
            grid=(1,),                                   # whole batch, one step
            in_specs=[
                pl.BlockSpec((B * H, WC), full2d),       # x
                pl.BlockSpec((WC, WC), full2d),          # w_pwa (block-diag)
                pl.BlockSpec((WC, WC), full2d),          # w_abc (block-diag)
                pl.BlockSpec((1, WC), full2d),           # b_pwa
                pl.BlockSpec((1, WC), full2d),           # b_abc
                pl.BlockSpec((7, 7, WC), lambda i: (0, 0, 0)),  # w_dw (wide)
                pl.BlockSpec((1, WC), full2d),           # b_dw (wide)
                pl.BlockSpec((WC, WC), full2d),          # w_out (block-diag)
                pl.BlockSpec((1, WC), full2d),           # b_out
            ],
            out_specs=pl.BlockSpec((B * H, WC), full2d),
        ),
        compiler_params=pltpu.CompilerParams(
            dimension_semantics=("arbitrary",)),
    )(x_flat, w_pwa_big, w_abc_big, b_pwa_wide, b_abc_wide,
      w_dw_wide, b_dw_wide, w_out_big, b_out_wide)

    return y_flat.reshape(B, H, W, C)


def gnconv_ref(x_nhwc, params, *, s=1.0):
    """Pure-JAX reference (NHWC) for correctness check."""
    w_in, b_in, w_dw, b_dw, w_out, b_out = params
    B, H, W, C = x_nhwc.shape
    hp = jax.lax.Precision.HIGHEST
    fused = jnp.einsum("bhwc,cd->bhwd", x_nhwc, w_in, precision=hp) + b_in[0]
    pwa, abc = fused[..., :C], fused[..., C:]
    pad = jnp.pad(abc, ((0, 0), (3, 3), (3, 3), (0, 0)))
    dw = jnp.zeros_like(abc)
    for ky in range(7):
        for kx in range(7):
            dw = dw + pad[:, ky:ky + H, kx:kx + W, :] * w_dw[ky, kx]
    dw = (dw + b_dw[0]) * s
    out = pwa * dw
    return jnp.einsum("bhwc,cd->bhwd", out, w_out, precision=hp) + b_out[0]


if __name__ == "__main__":
    dim, order, s = 8, 5, 1.0          # gnConv(dim=8, order=5, s=1.0)
    B, H, W = 2, 16, 16                # W * dim = 128 -> lane-dense layout

    key = jax.random.PRNGKey(0)
    ks = jax.random.split(key, 7)
    # PyTorch-style NCHW input, like the module's forward expects.
    x_nchw = jax.random.normal(ks[0], (B, dim, H, W), jnp.float32)

    # Deterministic synthetic parameters (shapes match the PyTorch layers;
    # 1x1 conv weights stored as (in, out) matmul matrices, depthwise weight
    # stored as (7, 7, dim)).
    w_in  = jax.random.normal(ks[1], (dim, 2 * dim), jnp.float32) * 0.1
    b_in  = jax.random.normal(ks[2], (1, 2 * dim), jnp.float32) * 0.1
    w_dw  = jax.random.normal(ks[3], (7, 7, dim), jnp.float32) * 0.1
    b_dw  = jax.random.normal(ks[4], (1, dim), jnp.float32) * 0.1
    w_out = jax.random.normal(ks[5], (dim, dim), jnp.float32) * 0.1
    b_out = jax.random.normal(ks[6], (1, dim), jnp.float32) * 0.1
    params = (w_in, b_in, w_dw, b_dw, w_out, b_out)

    # NCHW -> NHWC for the kernel, NHWC -> NCHW for the result.
    x_nhwc = jnp.transpose(x_nchw, (0, 2, 3, 1))
    y_nhwc = gnconv_pallas(x_nhwc, params, s=s)   # mm_dtype=jnp.bfloat16 on v6e/v7x prod shapes
    y_nchw = jnp.transpose(y_nhwc, (0, 3, 1, 2))
    jax.block_until_ready(y_nchw)

    y_ref = jnp.transpose(gnconv_ref(x_nhwc, params, s=s), (0, 3, 1, 2))
    assert y_nchw.shape == (B, dim, H, W)
    assert jnp.allclose(y_nchw, y_ref, atol=2e-3, rtol=2e-3), "mismatch vs ref"

    print("KERNEL_OK")
</pallas_src>

<mosaic_0001>
module attributes {stable_mosaic.version = 11 : i64} {
  func.func @gnconv_kernel(%arg0: i32, %arg1: memref<32x128xf32, #tpu.memory_space<vmem>>, %arg2: memref<128x128xf32, #tpu.memory_space<vmem>>, %arg3: memref<128x128xf32, #tpu.memory_space<vmem>>, %arg4: memref<1x128xf32, #tpu.memory_space<vmem>>, %arg5: memref<1x128xf32, #tpu.memory_space<vmem>>, %arg6: memref<7x7x128xf32, #tpu.memory_space<vmem>>, %arg7: memref<1x128xf32, #tpu.memory_space<vmem>>, %arg8: memref<128x128xf32, #tpu.memory_space<vmem>>, %arg9: memref<1x128xf32, #tpu.memory_space<vmem>>, %arg10: memref<32x128xf32, #tpu.memory_space<vmem>>) attributes {dimension_semantics = [#tpu.dimension_semantics<arbitrary>], iteration_bounds = array<i64: 1>, scalar_prefetch = 0 : i64, scratch_operands = 0 : i64, tpu.core_type = #tpu.core_type<tc>, window_params = [{pipeline_mode = #tpu.pipeline_mode<synchronous>, transform_indices = @transform_0, window_bounds = array<i64: 32, 128>}, {pipeline_mode = #tpu.pipeline_mode<synchronous>, transform_indices = @transform_1, window_bounds = array<i64: 128, 128>}, {pipeline_mode = #tpu.pipeline_mode<synchronous>, transform_indices = @transform_2, window_bounds = array<i64: 128, 128>}, {pipeline_mode = #tpu.pipeline_mode<synchronous>, transform_indices = @transform_3, window_bounds = array<i64: 1, 128>}, {pipeline_mode = #tpu.pipeline_mode<synchronous>, transform_indices = @transform_4, window_bounds = array<i64: 1, 128>}, {pipeline_mode = #tpu.pipeline_mode<synchronous>, transform_indices = @transform_5, window_bounds = array<i64: 7, 7, 128>}, {pipeline_mode = #tpu.pipeline_mode<synchronous>, transform_indices = @transform_6, window_bounds = array<i64: 1, 128>}, {pipeline_mode = #tpu.pipeline_mode<synchronous>, transform_indices = @transform_7, window_bounds = array<i64: 128, 128>}, {pipeline_mode = #tpu.pipeline_mode<synchronous>, transform_indices = @transform_8, window_bounds = array<i64: 1, 128>}, {pipeline_mode = #tpu.pipeline_mode<synchronous>, transform_indices = @transform_9, window_bounds = array<i64: 32, 128>}]} {
    %c0 = arith.constant 0 : index
    %c0_0 = arith.constant 0 : index
    %0 = vector.load %arg1[%c0, %c0_0] : memref<32x128xf32, #tpu.memory_space<vmem>>, vector<32x128xf32>
    %c0_1 = arith.constant 0 : index
    %c0_2 = arith.constant 0 : index
    %1 = vector.load %arg2[%c0_1, %c0_2] : memref<128x128xf32, #tpu.memory_space<vmem>>, vector<128x128xf32>
    %cst = arith.constant dense<0.000000e+00> : vector<32x128xf32>
    %2 = tpu.matmul %0, %1, %cst {dimension_numbers = #tpu.dot_dimension_numbers<[1], [0], [0], [1], [0, 0, 1, 1], [], []>} : vector<32x128xf32>, vector<128x128xf32>, vector<32x128xf32> -> vector<32x128xf32>
    %c0_3 = arith.constant 0 : index
    %c0_4 = arith.constant 0 : index
    %3 = vector.load %arg4[%c0_3, %c0_4] : memref<1x128xf32, #tpu.memory_space<vmem>>, vector<1x128xf32>
    %4 = vector.broadcast %3 : vector<1x128xf32> to vector<32x128xf32>
    %5 = arith.addf %2, %4 : vector<32x128xf32>
    %c0_5 = arith.constant 0 : index
    %c0_6 = arith.constant 0 : index
    %6 = vector.load %arg3[%c0_5, %c0_6] : memref<128x128xf32, #tpu.memory_space<vmem>>, vector<128x128xf32>
    %cst_7 = arith.constant dense<0.000000e+00> : vector<32x128xf32>
    %7 = tpu.matmul %0, %6, %cst_7 {dimension_numbers = #tpu.dot_dimension_numbers<[1], [0], [0], [1], [0, 0, 1, 1], [], []>} : vector<32x128xf32>, vector<128x128xf32>, vector<32x128xf32> -> vector<32x128xf32>
    %c0_8 = arith.constant 0 : index
    %c0_9 = arith.constant 0 : index
    %8 = vector.load %arg5[%c0_8, %c0_9] : memref<1x128xf32, #tpu.memory_space<vmem>>, vector<1x128xf32>
    %9 = vector.broadcast %8 : vector<1x128xf32> to vector<32x128xf32>
    %10 = arith.addf %7, %9 : vector<32x128xf32>
    %11 = vector.shape_cast %10 : vector<32x128xf32> to vector<2x16x128xf32>
    %c0_10 = arith.constant 0 : index
    %c0_11 = arith.constant 0 : index
    %c0_12 = arith.constant 0 : index
    %12 = vector.load %arg6[%c0_10, %c0_11, %c0_12] : memref<7x7x128xf32, #tpu.memory_space<vmem>>, vector<7x7x128xf32>
    %cst_13 = arith.constant 0.000000e+00 : f32
    %13 = vector.broadcast %cst_13 : f32 to vector<2x3x128xf32>
    %cst_14 = arith.constant 0.000000e+00 : f32
    %14 = vector.broadcast %cst_14 : f32 to vector<2x16x24xf32>
    %15 = vector.extract_strided_slice %11 {offsets = [0, 0, 0], sizes = [2, 16, 104], strides = [1, 1, 1]} : vector<2x16x128xf32> to vector<2x16x104xf32>
    %16 = tpu.concatenate %14, %15 in 2 : vector<2x16x24xf32>, vector<2x16x104xf32> -> vector<2x16x128xf32>
    %17 = tpu.concatenate %13, %16, %13 in 1 : vector<2x3x128xf32>, vector<2x16x128xf32>, vector<2x3x128xf32> -> vector<2x22x128xf32>
    %cst_15 = arith.constant 0.000000e+00 : f32
    %18 = vector.broadcast %cst_15 : f32 to vector<2x16x16xf32>
    %19 = vector.extract_strided_slice %11 {offsets = [0, 0, 0], sizes = [2, 16, 112], strides = [1, 1, 1]} : vector<2x16x128xf32> to vector<2x16x112xf32>
    %20 = tpu.concatenate %18, %19 in 2 : vector<2x16x16xf32>, vector<2x16x112xf32> -> vector<2x16x128xf32>
    %21 = tpu.concatenate %13, %20, %13 in 1 : vector<2x3x128xf32>, vector<2x16x128xf32>, vector<2x3x128xf32> -> vector<2x22x128xf32>
    %cst_16 = arith.constant 0.000000e+00 : f32
    %22 = vector.broadcast %cst_16 : f32 to vector<2x16x8xf32>
    %23 = vector.extract_strided_slice %11 {offsets = [0, 0, 0], sizes = [2, 16, 120], strides = [1, 1, 1]} : vector<2x16x128xf32> to vector<2x16x120xf32>
    %24 = tpu.concatenate %22, %23 in 2 : vector<2x16x8xf32>, vector<2x16x120xf32> -> vector<2x16x128xf32>
    %25 = tpu.concatenate %13, %24, %13 in 1 : vector<2x3x128xf32>, vector<2x16x128xf32>, vector<2x3x128xf32> -> vector<2x22x128xf32>
    %26 = tpu.concatenate %13, %11, %13 in 1 : vector<2x3x128xf32>, vector<2x16x128xf32>, vector<2x3x128xf32> -> vector<2x22x128xf32>
    %27 = vector.extract_strided_slice %11 {offsets = [0, 0, 8], sizes = [2, 16, 120], strides = [1, 1, 1]} : vector<2x16x128xf32> to vector<2x16x120xf32>
    %cst_17 = arith.constant 0.000000e+00 : f32
    %28 = vector.broadcast %cst_17 : f32 to vector<2x16x8xf32>
    %29 = tpu.concatenate %27, %28 in 2 : vector<2x16x120xf32>, vector<2x16x8xf32> -> vector<2x16x128xf32>
    %30 = tpu.concatenate %13, %29, %13 in 1 : vector<2x3x128xf32>, vector<2x16x128xf32>, vector<2x3x128xf32> -> vector<2x22x128xf32>
    %31 = vector.extract_strided_slice %11 {offsets = [0, 0, 16], sizes = [2, 16, 112], strides = [1, 1, 1]} : vector<2x16x128xf32> to vector<2x16x112xf32>
    %cst_18 = arith.constant 0.000000e+00 : f32
    %32 = vector.broadcast %cst_18 : f32 to vector<2x16x16xf32>
    %33 = tpu.concatenate %31, %32 in 2 : vector<2x16x112xf32>, vector<2x16x16xf32> -> vector<2x16x128xf32>
    %34 = tpu.concatenate %13, %33, %13 in 1 : vector<2x3x128xf32>, vector<2x16x128xf32>, vector<2x3x128xf32> -> vector<2x22x128xf32>
    %35 = vector.extract_strided_slice %11 {offsets = [0, 0, 24], sizes = [2, 16, 104], strides = [1, 1, 1]} : vector<2x16x128xf32> to vector<2x16x104xf32>
    %cst_19 = arith.constant 0.000000e+00 : f32
    %36 = vector.broadcast %cst_19 : f32 to vector<2x16x24xf32>
    %37 = tpu.concatenate %35, %36 in 2 : vector<2x16x104xf32>, vector<2x16x24xf32> -> vector<2x16x128xf32>
    %38 = tpu.concatenate %13, %37, %13 in 1 : vector<2x3x128xf32>, vector<2x16x128xf32>, vector<2x3x128xf32> -> vector<2x22x128xf32>
    %cst_20 = arith.constant 0.000000e+00 : f32
    %39 = vector.broadcast %cst_20 : f32 to vector<2x16x128xf32>
    %c0_21 = arith.constant 0 : index
    %c0_22 = arith.constant 0 : index
    %40 = vector.load %arg7[%c0_21, %c0_22] : memref<1x128xf32, #tpu.memory_space<vmem>>, vector<1x128xf32>
    %41 = vector.shape_cast %40 : vector<1x128xf32> to vector<1x1x128xf32>
    %42 = vector.broadcast %41 : vector<1x1x128xf32> to vector<2x16x128xf32>
    %43 = arith.addf %39, %42 : vector<2x16x128xf32>
    %44 = vector.extract_strided_slice %17 {offsets = [0, 0, 0], sizes = [2, 16, 128], strides = [1, 1, 1]} : vector<2x22x128xf32> to vector<2x16x128xf32>
    %45 = vector.extract_strided_slice %12 {offsets = [0, 0, 0], sizes = [1, 1, 128], strides = [1, 1, 1]} : vector<7x7x128xf32> to vector<1x1x128xf32>
    %46 = vector.shape_cast %45 : vector<1x1x128xf32> to vector<128xf32>
    %47 = vector.shape_cast %46 : vector<128xf32> to vector<1x1x128xf32>
    %48 = vector.broadcast %47 : vector<1x1x128xf32> to vector<2x16x128xf32>
    %49 = arith.mulf %44, %48 : vector<2x16x128xf32>
    %50 = arith.addf %43, %49 : vector<2x16x128xf32>
    %51 = vector.extract_strided_slice %21 {offsets = [0, 0, 0], sizes = [2, 16, 128], strides = [1, 1, 1]} : vector<2x22x128xf32> to vector<2x16x128xf32>
    %52 = vector.extract_strided_slice %12 {offsets = [0, 1, 0], sizes = [1, 1, 128], strides = [1, 1, 1]} : vector<7x7x128xf32> to vector<1x1x128xf32>
    %53 = vector.shape_cast %52 : vector<1x1x128xf32> to vector<128xf32>
    %54 = vector.shape_cast %53 : vector<128xf32> to vector<1x1x128xf32>
    %55 = vector.broadcast %54 : vector<1x1x128xf32> to vector<2x16x128xf32>
    %56 = arith.mulf %51, %55 : vector<2x16x128xf32>
    %57 = arith.addf %50, %56 : vector<2x16x128xf32>
    %58 = vector.extract_strided_slice %25 {offsets = [0, 0, 0], sizes = [2, 16, 128], strides = [1, 1, 1]} : vector<2x22x128xf32> to vector<2x16x128xf32>
    %59 = vector.extract_strided_slice %12 {offsets = [0, 2, 0], sizes = [1, 1, 128], strides = [1, 1, 1]} : vector<7x7x128xf32> to vector<1x1x128xf32>
    %60 = vector.shape_cast %59 : vector<1x1x128xf32> to vector<128xf32>
    %61 = vector.shape_cast %60 : vector<128xf32> to vector<1x1x128xf32>
    %62 = vector.broadcast %61 : vector<1x1x128xf32> to vector<2x16x128xf32>
    %63 = arith.mulf %58, %62 : vector<2x16x128xf32>
    %64 = arith.addf %57, %63 : vector<2x16x128xf32>
    %65 = vector.extract_strided_slice %26 {offsets = [0, 0, 0], sizes = [2, 16, 128], strides = [1, 1, 1]} : vector<2x22x128xf32> to vector<2x16x128xf32>
    %66 = vector.extract_strided_slice %12 {offsets = [0, 3, 0], sizes = [1, 1, 128], strides = [1, 1, 1]} : vector<7x7x128xf32> to vector<1x1x128xf32>
    %67 = vector.shape_cast %66 : vector<1x1x128xf32> to vector<128xf32>
    %68 = vector.shape_cast %67 : vector<128xf32> to vector<1x1x128xf32>
    %69 = vector.broadcast %68 : vector<1x1x128xf32> to vector<2x16x128xf32>
    %70 = arith.mulf %65, %69 : vector<2x16x128xf32>
    %71 = arith.addf %64, %70 : vector<2x16x128xf32>
    %72 = vector.extract_strided_slice %30 {offsets = [0, 0, 0], sizes = [2, 16, 128], strides = [1, 1, 1]} : vector<2x22x128xf32> to vector<2x16x128xf32>
    %73 = vector.extract_strided_slice %12 {offsets = [0, 4, 0], sizes = [1, 1, 128], strides = [1, 1, 1]} : vector<7x7x128xf32> to vector<1x1x128xf32>
    %74 = vector.shape_cast %73 : vector<1x1x128xf32> to vector<128xf32>
    %75 = vector.shape_cast %74 : vector<128xf32> to vector<1x1x128xf32>
    %76 = vector.broadcast %75 : vector<1x1x128xf32> to vector<2x16x128xf32>
    %77 = arith.mulf %72, %76 : vector<2x16x128xf32>
    %78 = arith.addf %71, %77 : vector<2x16x128xf32>
    %79 = vector.extract_strided_slice %34 {offsets = [0, 0, 0], sizes = [2, 16, 128], strides = [1, 1, 1]} : vector<2x22x128xf32> to vector<2x16x128xf32>
    %80 = vector.extract_strided_slice %12 {offsets = [0, 5, 0], sizes = [1, 1, 128], strides = [1, 1, 1]} : vector<7x7x128xf32> to vector<1x1x128xf32>
    %81 = vector.shape_cast %80 : vector<1x1x128xf32> to vector<128xf32>
    %82 = vector.shape_cast %81 : vector<128xf32> to vector<1x1x128xf32>
    %83 = vector.broadcast %82 : vector<1x1x128xf32> to vector<2x16x128xf32>
    %84 = arith.mulf %79, %83 : vector<2x16x128xf32>
    %85 = arith.addf %78, %84 : vector<2x16x128xf32>
    %86 = vector.extract_strided_slice %38 {offsets = [0, 0, 0], sizes = [2, 16, 128], strides = [1, 1, 1]} : vector<2x22x128xf32> to vector<2x16x128xf32>
    %87 = vector.extract_strided_slice %12 {offsets = [0, 6, 0], sizes = [1, 1, 128], strides = [1, 1, 1]} : vector<7x7x128xf32> to vector<1x1x128xf32>
    %88 = vector.shape_cast %87 : vector<1x1x128xf32> to vector<128xf32>
    %89 = vector.shape_cast %88 : vector<128xf32> to vector<1x1x128xf32>
    %90 = vector.broadcast %89 : vector<1x1x128xf32> to vector<2x16x128xf32>
    %91 = arith.mulf %86, %90 : vector<2x16x128xf32>
    %92 = arith.addf %85, %91 : vector<2x16x128xf32>
    %93 = vector.extract_strided_slice %17 {offsets = [0, 1, 0], sizes = [2, 16, 128], strides = [1, 1, 1]} : vector<2x22x128xf32> to vector<2x16x128xf32>
    %94 = vector.extract_strided_slice %12 {offsets = [1, 0, 0], sizes = [1, 1, 128], strides = [1, 1, 1]} : vector<7x7x128xf32> to vector<1x1x128xf32>
    %95 = vector.shape_cast %94 : vector<1x1x128xf32> to vector<128xf32>
    %96 = vector.shape_cast %95 : vector<128xf32> to vector<1x1x128xf32>
    %97 = vector.broadcast %96 : vector<1x1x128xf32> to vector<2x16x128xf32>
    %98 = arith.mulf %93, %97 : vector<2x16x128xf32>
    %99 = arith.addf %92, %98 : vector<2x16x128xf32>
    %100 = vector.extract_strided_slice %21 {offsets = [0, 1, 0], sizes = [2, 16, 128], strides = [1, 1, 1]} : vector<2x22x128xf32> to vector<2x16x128xf32>
    %101 = vector.extract_strided_slice %12 {offsets = [1, 1, 0], sizes = [1, 1, 128], strides = [1, 1, 1]} : vector<7x7x128xf32> to vector<1x1x128xf32>
    %102 = vector.shape_cast %101 : vector<1x1x128xf32> to vector<128xf32>
    %103 = vector.shape_cast %102 : vector<128xf32> to vector<1x1x128xf32>
    %104 = vector.broadcast %103 : vector<1x1x128xf32> to vector<2x16x128xf32>
    %105 = arith.mulf %100, %104 : vector<2x16x128xf32>
    %106 = arith.addf %99, %105 : vector<2x16x128xf32>
    %107 = vector.extract_strided_slice %25 {offsets = [0, 1, 0], sizes = [2, 16, 128], strides = [1, 1, 1]} : vector<2x22x128xf32> to vector<2x16x128xf32>
    %108 = vector.extract_strided_slice %12 {offsets = [1, 2, 0], sizes = [1, 1, 128], strides = [1, 1, 1]} : vector<7x7x128xf32> to vector<1x1x128xf32>
    %109 = vector.shape_cast %108 : vector<1x1x128xf32> to vector<128xf32>
    %110 = vector.shape_cast %109 : vector<128xf32> to vector<1x1x128xf32>
    %111 = vector.broadcast %110 : vector<1x1x128xf32> to vector<2x16x128xf32>
    %112 = arith.mulf %107, %111 : vector<2x16x128xf32>
    %113 = arith.addf %106, %112 : vector<2x16x128xf32>
    %114 = vector.extract_strided_slice %26 {offsets = [0, 1, 0], sizes = [2, 16, 128], strides = [1, 1, 1]} : vector<2x22x128xf32> to vector<2x16x128xf32>
    %115 = vector.extract_strided_slice %12 {offsets = [1, 3, 0], sizes = [1, 1, 128], strides = [1, 1, 1]} : vector<7x7x128xf32> to vector<1x1x128xf32>
    %116 = vector.shape_cast %115 : vector<1x1x128xf32> to vector<128xf32>
    %117 = vector.shape_cast %116 : vector<128xf32> to vector<1x1x128xf32>
    %118 = vector.broadcast %117 : vector<1x1x128xf32> to vector<2x16x128xf32>
    %119 = arith.mulf %114, %118 : vector<2x16x128xf32>
    %120 = arith.addf %113, %119 : vector<2x16x128xf32>
    %121 = vector.extract_strided_slice %30 {offsets = [0, 1, 0], sizes = [2, 16, 128], strides = [1, 1, 1]} : vector<2x22x128xf32> to vector<2x16x128xf32>
    %122 = vector.extract_strided_slice %12 {offsets = [1, 4, 0], sizes = [1, 1, 128], strides = [1, 1, 1]} : vector<7x7x128xf32> to vector<1x1x128xf32>
    %123 = vector.shape_cast %122 : vector<1x1x128xf32> to vector<128xf32>
    %124 = vector.shape_cast %123 : vector<128xf32> to vector<1x1x128xf32>
    %125 = vector.broadcast %124 : vector<1x1x128xf32> to vector<2x16x128xf32>
    %126 = arith.mulf %121, %125 : vector<2x16x128xf32>
    %127 = arith.addf %120, %126 : vector<2x16x128xf32>
    %128 = vector.extract_strided_slice %34 {offsets = [0, 1, 0], sizes = [2, 16, 128], strides = [1, 1, 1]} : vector<2x22x128xf32> to vector<2x16x128xf32>
    %129 = vector.extract_strided_slice %12 {offsets = [1, 5, 0], sizes = [1, 1, 128], strides = [1, 1, 1]} : vector<7x7x128xf32> to vector<1x1x128xf32>
    %130 = vector.shape_cast %129 : vector<1x1x128xf32> to vector<128xf32>
    %131 = vector.shape_cast %130 : vector<128xf32> to vector<1x1x128xf32>
    %132 = vector.broadcast %131 : vector<1x1x128xf32> to vector<2x16x128xf32>
    %133 = arith.mulf %128, %132 : vector<2x16x128xf32>
    %134 = arith.addf %127, %133 : vector<2x16x128xf32>
    %135 = vector.extract_strided_slice %38 {offsets = [0, 1, 0], sizes = [2, 16, 128], strides = [1, 1, 1]} : vector<2x22x128xf32> to vector<2x16x128xf32>
    %136 = vector.extract_strided_slice %12 {offsets = [1, 6, 0], sizes = [1, 1, 128], strides = [1, 1, 1]} : vector<7x7x128xf32> to vector<1x1x128xf32>
    %137 = vector.shape_cast %136 : vector<1x1x128xf32> to vector<128xf32>
    %138 = vector.shape_cast %137 : vector<128xf32> to vector<1x1x128xf32>
    %139 = vector.broadcast %138 : vector<1x1x128xf32> to vector<2x16x128xf32>
    %140 = arith.mulf %135, %139 : vector<2x16x128xf32>
    %141 = arith.addf %134, %140 : vector<2x16x128xf32>
    %142 = vector.extract_strided_slice %17 {offsets = [0, 2, 0], sizes = [2, 16, 128], strides = [1, 1, 1]} : vector<2x22x128xf32> to vector<2x16x128xf32>
    %143 = vector.extract_strided_slice %12 {offsets = [2, 0, 0], sizes = [1, 1, 128], strides = [1, 1, 1]} : vector<7x7x128xf32> to vector<1x1x128xf32>
    %144 = vector.shape_cast %143 : vector<1x1x128xf32> to vector<128xf32>
    %145 = vector.shape_cast %144 : vector<128xf32> to vector<1x1x128xf32>
    %146 = vector.broadcast %145 : vector<1x1x128xf32> to vector<2x16x128xf32>
    %147 = arith.mulf %142, %146 : vector<2x16x128xf32>
    %148 = arith.addf %141, %147 : vector<2x16x128xf32>
    %149 = vector.extract_strided_slice %21 {offsets = [0, 2, 0], sizes = [2, 16, 128], strides = [1, 1, 1]} : vector<2x22x128xf32> to vector<2x16x128xf32>
    %150 = vector.extract_strided_slice %12 {offsets = [2, 1, 0], sizes = [1, 1, 128], strides = [1, 1, 1]} : vector<7x7x128xf32> to vector<1x1x128xf32>
    %151 = vector.shape_cast %150 : vector<1x1x128xf32> to vector<128xf32>
    %152 = vector.shape_cast %151 : vector<128xf32> to vector<1x1x128xf32>
    %153 = vector.broadcast %152 : vector<1x1x128xf32> to vector<2x16x128xf32>
    %154 = arith.mulf %149, %153 : vector<2x16x128xf32>
    %155 = arith.addf %148, %154 : vector<2x16x128xf32>
    %156 = vector.extract_strided_slice %25 {offsets = [0, 2, 0], sizes = [2, 16, 128], strides = [1, 1, 1]} : vector<2x22x128xf32> to vector<2x16x128xf32>
    %157 = vector.extract_strided_slice %12 {offsets = [2, 2, 0], sizes = [1, 1, 128], strides = [1, 1, 1]} : vector<7x7x128xf32> to vector<1x1x128xf32>
    %158 = vector.shape_cast %157 : vector<1x1x128xf32> to vector<128xf32>
    %159 = vector.shape_cast %158 : vector<128xf32> to vector<1x1x128xf32>
    %160 = vector.broadcast %159 : vector<1x1x128xf32> to vector<2x16x128xf32>
    %161 = arith.mulf %156, %160 : vector<2x16x128xf32>
    %162 = arith.addf %155, %161 : vector<2x16x128xf32>
    %163 = vector.extract_strided_slice %26 {offsets = [0, 2, 0], sizes = [2, 16, 128], strides = [1, 1, 1]} : vector<2x22x128xf32> to vector<2x16x128xf32>
    %164 = vector.extract_strided_slice %12 {offsets = [2, 3, 0], sizes = [1, 1, 128], strides = [1, 1, 1]} : vector<7x7x128xf32> to vector<1x1x128xf32>
    %165 = vector.shape_cast %164 : vector<1x1x128xf32> to vector<128xf32>
    %166 = vector.shape_cast %165 : vector<128xf32> to vector<1x1x128xf32>
    %167 = vector.broadcast %166 : vector<1x1x128xf32> to vector<2x16x128xf32>
    %168 = arith.mulf %163, %167 : vector<2x16x128xf32>
    %169 = arith.addf %162, %168 : vector<2x16x128xf32>
    %170 = vector.extract_strided_slice %30 {offsets = [0, 2, 0], sizes = [2, 16, 128], strides = [1, 1, 1]} : vector<2x22x128xf32> to vector<2x16x128xf32>
    %171 = vector.extract_strided_slice %12 {offsets = [2, 4, 0], sizes = [1, 1, 128], strides = [1, 1, 1]} : vector<7x7x128xf32> to vector<1x1x128xf32>
    %172 = vector.shape_cast %171 : vector<1x1x128xf32> to vector<128xf32>
    %173 = vector.shape_cast %172 : vector<128xf32> to vector<1x1x128xf32>
    %174 = vector.broadcast %173 : vector<1x1x128xf32> to vector<2x16x128xf32>
    %175 = arith.mulf %170, %174 : vector<2x16x128xf32>
    %176 = arith.addf %169, %175 : vector<2x16x128xf32>
    %177 = vector.extract_strided_slice %34 {offsets = [0, 2, 0], sizes = [2, 16, 128], strides = [1, 1, 1]} : vector<2x22x128xf32> to vector<2x16x128xf32>
    %178 = vector.extract_strided_slice %12 {offsets = [2, 5, 0], sizes = [1, 1, 128], strides = [1, 1, 1]} : vector<7x7x128xf32> to vector<1x1x128xf32>
    %179 = vector.shape_cast %178 : vector<1x1x128xf32> to vector<128xf32>
    %180 = vector.shape_cast %179 : vector<128xf32> to vector<1x1x128xf32>
    %181 = vector.broadcast %180 : vector<1x1x128xf32> to vector<2x16x128xf32>
    %182 = arith.mulf %177, %181 : vector<2x16x128xf32>
    %183 = arith.addf %176, %182 : vector<2x16x128xf32>
    %184 = vector.extract_strided_slice %38 {offsets = [0, 2, 0], sizes = [2, 16, 128], strides = [1, 1, 1]} : vector<2x22x128xf32> to vector<2x16x128xf32>
    %185 = vector.extract_strided_slice %12 {offsets = [2, 6, 0], sizes = [1, 1, 128], strides = [1, 1, 1]} : vector<7x7x128xf32> to vector<1x1x128xf32>
    %186 = vector.shape_cast %185 : vector<1x1x128xf32> to vector<128xf32>
    %187 = vector.shape_cast %186 : vector<128xf32> to vector<1x1x128xf32>
    %188 = vector.broadcast %187 : vector<1x1x128xf32> to vector<2x16x128xf32>
    %189 = arith.mulf %184, %188 : vector<2x16x128xf32>
    %190 = arith.addf %183, %189 : vector<2x16x128xf32>
    %191 = vector.extract_strided_slice %17 {offsets = [0, 3, 0], sizes = [2, 16, 128], strides = [1, 1, 1]} : vector<2x22x128xf32> to vector<2x16x128xf32>
    %192 = vector.extract_strided_slice %12 {offsets = [3, 0, 0], sizes = [1, 1, 128], strides = [1, 1, 1]} : vector<7x7x128xf32> to vector<1x1x128xf32>
    %193 = vector.shape_cast %192 : vector<1x1x128xf32> to vector<128xf32>
    %194 = vector.shape_cast %193 : vector<128xf32> to vector<1x1x128xf32>
    %195 = vector.broadcast %194 : vector<1x1x128xf32> to vector<2x16x128xf32>
    %196 = arith.mulf %191, %195 : vector<2x16x128xf32>
    %197 = arith.addf %190, %196 : vector<2x16x128xf32>
    %198 = vector.extract_strided_slice %21 {offsets = [0, 3, 0], sizes = [2, 16, 128], strides = [1, 1, 1]} : vector<2x22x128xf32> to vector<2x16x128xf32>
    %199 = vector.extract_strided_slice %12 {offsets = [3, 1, 0], sizes = [1, 1, 128], strides = [1, 1, 1]} : vector<7x7x128xf32> to vector<1x1x128xf32>
    %200 = vector.shape_cast %199 : vector<1x1x128xf32> to vector<128xf32>
    %201 = vector.shape_cast %200 : vector<128xf32> to vector<1x1x128xf32>
    %202 = vector.broadcast %201 : vector<1x1x128xf32> to vector<2x16x128xf32>
    %203 = arith.mulf %198, %202 : vector<2x16x128xf32>
    %204 = arith.addf %197, %203 : vector<2x16x128xf32>
    %205 = vector.extract_strided_slice %25 {offsets = [0, 3, 0], sizes = [2, 16, 128], strides = [1, 1, 1]} : vector<2x22x128xf32> to vector<2x16x128xf32>
    %206 = vector.extract_strided_slice %12 {offsets = [3, 2, 0], sizes = [1, 1, 128], strides = [1, 1, 1]} : vector<7x7x128xf32> to vector<1x1x128xf32>
    %207 = vector.shape_cast %206 : vector<1x1x128xf32> to vector<128xf32>
    %208 = vector.shape_cast %207 : vector<128xf32> to vector<1x1x128xf32>
    %209 = vector.broadcast %208 : vector<1x1x128xf32> to vector<2x16x128xf32>
    %210 = arith.mulf %205, %209 : vector<2x16x128xf32>
    %211 = arith.addf %204, %210 : vector<2x16x128xf32>
    %212 = vector.extract_strided_slice %26 {offsets = [0, 3, 0], sizes = [2, 16, 128], strides = [1, 1, 1]} : vector<2x22x128xf32> to vector<2x16x128xf32>
    %213 = vector.extract_strided_slice %12 {offsets = [3, 3, 0], sizes = [1, 1, 128], strides = [1, 1, 1]} : vector<7x7x128xf32> to vector<1x1x128xf32>
    %214 = vector.shape_cast %213 : vector<1x1x128xf32> to vector<128xf32>
    %215 = vector.shape_cast %214 : vector<128xf32> to vector<1x1x128xf32>
    %216 = vector.broadcast %215 : vector<1x1x128xf32> to vector<2x16x128xf32>
    %217 = arith.mulf %212, %216 : vector<2x16x128xf32>
    %218 = arith.addf %211, %217 : vector<2x16x128xf32>
    %219 = vector.extract_strided_slice %30 {offsets = [0, 3, 0], sizes = [2, 16, 128], strides = [1, 1, 1]} : vector<2x22x128xf32> to vector<2x16x128xf32>
    %220 = vector.extract_strided_slice %12 {offsets = [3, 4, 0], sizes = [1, 1, 128], strides = [1, 1, 1]} : vector<7x7x128xf32> to vector<1x1x128xf32>
    %221 = vector.shape_cast %220 : vector<1x1x128xf32> to vector<128xf32>
    %222 = vector.shape_cast %221 : vector<128xf32> to vector<1x1x128xf32>
    %223 = vector.broadcast %222 : vector<1x1x128xf32> to vector<2x16x128xf32>
    %224 = arith.mulf %219, %223 : vector<2x16x128xf32>
    %225 = arith.addf %218, %224 : vector<2x16x128xf32>
    %226 = vector.extract_strided_slice %34 {offsets = [0, 3, 0], sizes = [2, 16, 128], strides = [1, 1, 1]} : vector<2x22x128xf32> to vector<2x16x128xf32>
    %227 = vector.extract_strided_slice %12 {offsets = [3, 5, 0], sizes = [1, 1, 128], strides = [1, 1, 1]} : vector<7x7x128xf32> to vector<1x1x128xf32>
    %228 = vector.shape_cast %227 : vector<1x1x128xf32> to vector<128xf32>
    %229 = vector.shape_cast %228 : vector<128xf32> to vector<1x1x128xf32>
    %230 = vector.broadcast %229 : vector<1x1x128xf32> to vector<2x16x128xf32>
    %231 = arith.mulf %226, %230 : vector<2x16x128xf32>
    %232 = arith.addf %225, %231 : vector<2x16x128xf32>
    %233 = vector.extract_strided_slice %38 {offsets = [0, 3, 0], sizes = [2, 16, 128], strides = [1, 1, 1]} : vector<2x22x128xf32> to vector<2x16x128xf32>
    %234 = vector.extract_strided_slice %12 {offsets = [3, 6, 0], sizes = [1, 1, 128], strides = [1, 1, 1]} : vector<7x7x128xf32> to vector<1x1x128xf32>
    %235 = vector.shape_cast %234 : vector<1x1x128xf32> to vector<128xf32>
    %236 = vector.shape_cast %235 : vector<128xf32> to vector<1x1x128xf32>
    %237 = vector.broadcast %236 : vector<1x1x128xf32> to vector<2x16x128xf32>
    %238 = arith.mulf %233, %237 : vector<2x16x128xf32>
    %239 = arith.addf %232, %238 : vector<2x16x128xf32>
    %240 = vector.extract_strided_slice %17 {offsets = [0, 4, 0], sizes = [2, 16, 128], strides = [1, 1, 1]} : vector<2x22x128xf32> to vector<2x16x128xf32>
    %241 = vector.extract_strided_slice %12 {offsets = [4, 0, 0], sizes = [1, 1, 128], strides = [1, 1, 1]} : vector<7x7x128xf32> to vector<1x1x128xf32>
    %242 = vector.shape_cast %241 : vector<1x1x128xf32> to vector<128xf32>
    %243 = vector.shape_cast %242 : vector<128xf32> to vector<1x1x128xf32>
    %244 = vector.broadcast %243 : vector<1x1x128xf32> to vector<2x16x128xf32>
    %245 = arith.mulf %240, %244 : vector<2x16x128xf32>
    %246 = arith.addf %239, %245 : vector<2x16x128xf32>
    %247 = vector.extract_strided_slice %21 {offsets = [0, 4, 0], sizes = [2, 16, 128], strides = [1, 1, 1]} : vector<2x22x128xf32> to vector<2x16x128xf32>
    %248 = vector.extract_strided_slice %12 {offsets = [4, 1, 0], sizes = [1, 1, 128], strides = [1, 1, 1]} : vector<7x7x128xf32> to vector<1x1x128xf32>
    %249 = vector.shape_cast %248 : vector<1x1x128xf32> to vector<128xf32>
    %250 = vector.shape_cast %249 : vector<128xf32> to vector<1x1x128xf32>
    %251 = vector.broadcast %250 : vector<1x1x128xf32> to vector<2x16x128xf32>
    %252 = arith.mulf %247, %251 : vector<2x16x128xf32>
    %253 = arith.addf %246, %252 : vector<2x16x128xf32>
    %254 = vector.extract_strided_slice %25 {offsets = [0, 4, 0], sizes = [2, 16, 128], strides = [1, 1, 1]} : vector<2x22x128xf32> to vector<2x16x128xf32>
    %255 = vector.extract_strided_slice %12 {offsets = [4, 2, 0], sizes = [1, 1, 128], strides = [1, 1, 1]} : vector<7x7x128xf32> to vector<1x1x128xf32>
    %256 = vector.shape_cast %255 : vector<1x1x128xf32> to vector<128xf32>
    %257 = vector.shape_cast %256 : vector<128xf32> to vector<1x1x128xf32>
    %258 = vector.broadcast %257 : vector<1x1x128xf32> to vector<2x16x128xf32>
    %259 = arith.mulf %254, %258 : vector<2x16x128xf32>
    %260 = arith.addf %253, %259 : vector<2x16x128xf32>
    %261 = vector.extract_strided_slice %26 {offsets = [0, 4, 0], sizes = [2, 16, 128], strides = [1, 1, 1]} : vector<2x22x128xf32> to vector<2x16x128xf32>
    %262 = vector.extract_strided_slice %12 {offsets = [4, 3, 0], sizes = [1, 1, 128], strides = [1, 1, 1]} : vector<7x7x128xf32> to vector<1x1x128xf32>
    %263 = vector.shape_cast %262 : vector<1x1x128xf32> to vector<128xf32>
    %264 = vector.shape_cast %263 : vector<128xf32> to vector<1x1x128xf32>
    %265 = vector.broadcast %264 : vector<1x1x128xf32> to vector<2x16x128xf32>
    %266 = arith.mulf %261, %265 : vector<2x16x128xf32>
    %267 = arith.addf %260, %266 : vector<2x16x128xf32>
    %268 = vector.extract_strided_slice %30 {offsets = [0, 4, 0], sizes = [2, 16, 128], strides = [1, 1, 1]} : vector<2x22x128xf32> to vector<2x16x128xf32>
    %269 = vector.extract_strided_slice %12 {offsets = [4, 4, 0], sizes = [1, 1, 128], strides = [1, 1, 1]} : vector<7x7x128xf32> to vector<1x1x128xf32>
    %270 = vector.shape_cast %269 : vector<1x1x128xf32> to vector<128xf32>
    %271 = vector.shape_cast %270 : vector<128xf32> to vector<1x1x128xf32>
    %272 = vector.broadcast %271 : vector<1x1x128xf32> to vector<2x16x128xf32>
    %273 = arith.mulf %268, %272 : vector<2x16x128xf32>
    %274 = arith.addf %267, %273 : vector<2x16x128xf32>
    %275 = vector.extract_strided_slice %34 {offsets = [0, 4, 0], sizes = [2, 16, 128], strides = [1, 1, 1]} : vector<2x22x128xf32> to vector<2x16x128xf32>
    %276 = vector.extract_strided_slice %12 {offsets = [4, 5, 0], sizes = [1, 1, 128], strides = [1, 1, 1]} : vector<7x7x128xf32> to vector<1x1x128xf32>
    %277 = vector.shape_cast %276 : vector<1x1x128xf32> to vector<128xf32>
    %278 = vector.shape_cast %277 : vector<128xf32> to vector<1x1x128xf32>
    %279 = vector.broadcast %278 : vector<1x1x128xf32> to vector<2x16x128xf32>
    %280 = arith.mulf %275, %279 : vector<2x16x128xf32>
    %281 = arith.addf %274, %280 : vector<2x16x128xf32>
    %282 = vector.extract_strided_slice %38 {offsets = [0, 4, 0], sizes = [2, 16, 128], strides = [1, 1, 1]} : vector<2x22x128xf32> to vector<2x16x128xf32>
    %283 = vector.extract_strided_slice %12 {offsets = [4, 6, 0], sizes = [1, 1, 128], strides = [1, 1, 1]} : vector<7x7x128xf32> to vector<1x1x128xf32>
    %284 = vector.shape_cast %283 : vector<1x1x128xf32> to vector<128xf32>
    %285 = vector.shape_cast %284 : vector<128xf32> to vector<1x1x128xf32>
    %286 = vector.broadcast %285 : vector<1x1x128xf32> to vector<2x16x128xf32>
    %287 = arith.mulf %282, %286 : vector<2x16x128xf32>
    %288 = arith.addf %281, %287 : vector<2x16x128xf32>
    %289 = vector.extract_strided_slice %17 {offsets = [0, 5, 0], sizes = [2, 16, 128], strides = [1, 1, 1]} : vector<2x22x128xf32> to vector<2x16x128xf32>
    %290 = vector.extract_strided_slice %12 {offsets = [5, 0, 0], sizes = [1, 1, 128], strides = [1, 1, 1]} : vector<7x7x128xf32> to vector<1x1x128xf32>
    %291 = vector.shape_cast %290 : vector<1x1x128xf32> to vector<128xf32>
    %292 = vector.shape_cast %291 : vector<128xf32> to vector<1x1x128xf32>
    %293 = vector.broadcast %292 : vector<1x1x128xf32> to vector<2x16x128xf32>
    %294 = arith.mulf %289, %293 : vector<2x16x128xf32>
    %295 = arith.addf %288, %294 : vector<2x16x128xf32>
    %296 = vector.extract_strided_slice %21 {offsets = [0, 5, 0], sizes = [2, 16, 128], strides = [1, 1, 1]} : vector<2x22x128xf32> to vector<2x16x128xf32>
    %297 = vector.extract_strided_slice %12 {offsets = [5, 1, 0], sizes = [1, 1, 128], strides = [1, 1, 1]} : vector<7x7x128xf32> to vector<1x1x128xf32>
    %298 = vector.shape_cast %297 : vector<1x1x128xf32> to vector<128xf32>
    %299 = vector.shape_cast %298 : vector<128xf32> to vector<1x1x128xf32>
    %300 = vector.broadcast %299 : vector<1x1x128xf32> to vector<2x16x128xf32>
    %301 = arith.mulf %296, %300 : vector<2x16x128xf32>
    %302 = arith.addf %295, %301 : vector<2x16x128xf32>
    %303 = vector.extract_strided_slice %25 {offsets = [0, 5, 0], sizes = [2, 16, 128], strides = [1, 1, 1]} : vector<2x22x128xf32> to vector<2x16x128xf32>
    %304 = vector.extract_strided_slice %12 {offsets = [5, 2, 0], sizes = [1, 1, 128], strides = [1, 1, 1]} : vector<7x7x128xf32> to vector<1x1x128xf32>
    %305 = vector.shape_cast %304 : vector<1x1x128xf32> to vector<128xf32>
    %306 = vector.shape_cast %305 : vector<128xf32> to vector<1x1x128xf32>
    %307 = vector.broadcast %306 : vector<1x1x128xf32> to vector<2x16x128xf32>
    %308 = arith.mulf %303, %307 : vector<2x16x128xf32>
    %309 = arith.addf %302, %308 : vector<2x16x128xf32>
    %310 = vector.extract_strided_slice %26 {offsets = [0, 5, 0], sizes = [2, 16, 128], strides = [1, 1, 1]} : vector<2x22x128xf32> to vector<2x16x128xf32>
    %311 = vector.extract_strided_slice %12 {offsets = [5, 3, 0], sizes = [1, 1, 128], strides = [1, 1, 1]} : vector<7x7x128xf32> to vector<1x1x128xf32>
    %312 = vector.shape_cast %311 : vector<1x1x128xf32> to vector<128xf32>
    %313 = vector.shape_cast %312 : vector<128xf32> to vector<1x1x128xf32>
    %314 = vector.broadcast %313 : vector<1x1x128xf32> to vector<2x16x128xf32>
    %315 = arith.mulf %310, %314 : vector<2x16x128xf32>
    %316 = arith.addf %309, %315 : vector<2x16x128xf32>
    %317 = vector.extract_strided_slice %30 {offsets = [0, 5, 0], sizes = [2, 16, 128], strides = [1, 1, 1]} : vector<2x22x128xf32> to vector<2x16x128xf32>
    %318 = vector.extract_strided_slice %12 {offsets = [5, 4, 0], sizes = [1, 1, 128], strides = [1, 1, 1]} : vector<7x7x128xf32> to vector<1x1x128xf32>
    %319 = vector.shape_cast %318 : vector<1x1x128xf32> to vector<128xf32>
    %320 = vector.shape_cast %319 : vector<128xf32> to vector<1x1x128xf32>
    %321 = vector.broadcast %320 : vector<1x1x128xf32> to vector<2x16x128xf32>
    %322 = arith.mulf %317, %321 : vector<2x16x128xf32>
    %323 = arith.addf %316, %322 : vector<2x16x128xf32>
    %324 = vector.extract_strided_slice %34 {offsets = [0, 5, 0], sizes = [2, 16, 128], strides = [1, 1, 1]} : vector<2x22x128xf32> to vector<2x16x128xf32>
    %325 = vector.extract_strided_slice %12 {offsets = [5, 5, 0], sizes = [1, 1, 128], strides = [1, 1, 1]} : vector<7x7x128xf32> to vector<1x1x128xf32>
    %326 = vector.shape_cast %325 : vector<1x1x128xf32> to vector<128xf32>
    %327 = vector.shape_cast %326 : vector<128xf32> to vector<1x1x128xf32>
    %328 = vector.broadcast %327 : vector<1x1x128xf32> to vector<2x16x128xf32>
    %329 = arith.mulf %324, %328 : vector<2x16x128xf32>
    %330 = arith.addf %323, %329 : vector<2x16x128xf32>
    %331 = vector.extract_strided_slice %38 {offsets = [0, 5, 0], sizes = [2, 16, 128], strides = [1, 1, 1]} : vector<2x22x128xf32> to vector<2x16x128xf32>
    %332 = vector.extract_strided_slice %12 {offsets = [5, 6, 0], sizes = [1, 1, 128], strides = [1, 1, 1]} : vector<7x7x128xf32> to vector<1x1x128xf32>
    %333 = vector.shape_cast %332 : vector<1x1x128xf32> to vector<128xf32>
    %334 = vector.shape_cast %333 : vector<128xf32> to vector<1x1x128xf32>
    %335 = vector.broadcast %334 : vector<1x1x128xf32> to vector<2x16x128xf32>
    %336 = arith.mulf %331, %335 : vector<2x16x128xf32>
    %337 = arith.addf %330, %336 : vector<2x16x128xf32>
    %338 = vector.extract_strided_slice %17 {offsets = [0, 6, 0], sizes = [2, 16, 128], strides = [1, 1, 1]} : vector<2x22x128xf32> to vector<2x16x128xf32>
    %339 = vector.extract_strided_slice %12 {offsets = [6, 0, 0], sizes = [1, 1, 128], strides = [1, 1, 1]} : vector<7x7x128xf32> to vector<1x1x128xf32>
    %340 = vector.shape_cast %339 : vector<1x1x128xf32> to vector<128xf32>
    %341 = vector.shape_cast %340 : vector<128xf32> to vector<1x1x128xf32>
    %342 = vector.broadcast %341 : vector<1x1x128xf32> to vector<2x16x128xf32>
    %343 = arith.mulf %338, %342 : vector<2x16x128xf32>
    %344 = arith.addf %337, %343 : vector<2x16x128xf32>
    %345 = vector.extract_strided_slice %21 {offsets = [0, 6, 0], sizes = [2, 16, 128], strides = [1, 1, 1]} : vector<2x22x128xf32> to vector<2x16x128xf32>
    %346 = vector.extract_strided_slice %12 {offsets = [6, 1, 0], sizes = [1, 1, 128], strides = [1, 1, 1]} : vector<7x7x128xf32> to vector<1x1x128xf32>
    %347 = vector.shape_cast %346 : vector<1x1x128xf32> to vector<128xf32>
    %348 = vector.shape_cast %347 : vector<128xf32> to vector<1x1x128xf32>
    %349 = vector.broadcast %348 : vector<1x1x128xf32> to vector<2x16x128xf32>
    %350 = arith.mulf %345, %349 : vector<2x16x128xf32>
    %351 = arith.addf %344, %350 : vector<2x16x128xf32>
    %352 = vector.extract_strided_slice %25 {offsets = [0, 6, 0], sizes = [2, 16, 128], strides = [1, 1, 1]} : vector<2x22x128xf32> to vector<2x16x128xf32>
    %353 = vector.extract_strided_slice %12 {offsets = [6, 2, 0], sizes = [1, 1, 128], strides = [1, 1, 1]} : vector<7x7x128xf32> to vector<1x1x128xf32>
    %354 = vector.shape_cast %353 : vector<1x1x128xf32> to vector<128xf32>
    %355 = vector.shape_cast %354 : vector<128xf32> to vector<1x1x128xf32>
    %356 = vector.broadcast %355 : vector<1x1x128xf32> to vector<2x16x128xf32>
    %357 = arith.mulf %352, %356 : vector<2x16x128xf32>
    %358 = arith.addf %351, %357 : vector<2x16x128xf32>
    %359 = vector.extract_strided_slice %26 {offsets = [0, 6, 0], sizes = [2, 16, 128], strides = [1, 1, 1]} : vector<2x22x128xf32> to vector<2x16x128xf32>
    %360 = vector.extract_strided_slice %12 {offsets = [6, 3, 0], sizes = [1, 1, 128], strides = [1, 1, 1]} : vector<7x7x128xf32> to vector<1x1x128xf32>
    %361 = vector.shape_cast %360 : vector<1x1x128xf32> to vector<128xf32>
    %362 = vector.shape_cast %361 : vector<128xf32> to vector<1x1x128xf32>
    %363 = vector.broadcast %362 : vector<1x1x128xf32> to vector<2x16x128xf32>
    %364 = arith.mulf %359, %363 : vector<2x16x128xf32>
    %365 = arith.addf %358, %364 : vector<2x16x128xf32>
    %366 = vector.extract_strided_slice %30 {offsets = [0, 6, 0], sizes = [2, 16, 128], strides = [1, 1, 1]} : vector<2x22x128xf32> to vector<2x16x128xf32>
    %367 = vector.extract_strided_slice %12 {offsets = [6, 4, 0], sizes = [1, 1, 128], strides = [1, 1, 1]} : vector<7x7x128xf32> to vector<1x1x128xf32>
    %368 = vector.shape_cast %367 : vector<1x1x128xf32> to vector<128xf32>
    %369 = vector.shape_cast %368 : vector<128xf32> to vector<1x1x128xf32>
    %370 = vector.broadcast %369 : vector<1x1x128xf32> to vector<2x16x128xf32>
    %371 = arith.mulf %366, %370 : vector<2x16x128xf32>
    %372 = arith.addf %365, %371 : vector<2x16x128xf32>
    %373 = vector.extract_strided_slice %34 {offsets = [0, 6, 0], sizes = [2, 16, 128], strides = [1, 1, 1]} : vector<2x22x128xf32> to vector<2x16x128xf32>
    %374 = vector.extract_strided_slice %12 {offsets = [6, 5, 0], sizes = [1, 1, 128], strides = [1, 1, 1]} : vector<7x7x128xf32> to vector<1x1x128xf32>
    %375 = vector.shape_cast %374 : vector<1x1x128xf32> to vector<128xf32>
    %376 = vector.shape_cast %375 : vector<128xf32> to vector<1x1x128xf32>
    %377 = vector.broadcast %376 : vector<1x1x128xf32> to vector<2x16x128xf32>
    %378 = arith.mulf %373, %377 : vector<2x16x128xf32>
    %379 = arith.addf %372, %378 : vector<2x16x128xf32>
    %380 = vector.extract_strided_slice %38 {offsets = [0, 6, 0], sizes = [2, 16, 128], strides = [1, 1, 1]} : vector<2x22x128xf32> to vector<2x16x128xf32>
    %381 = vector.extract_strided_slice %12 {offsets = [6, 6, 0], sizes = [1, 1, 128], strides = [1, 1, 1]} : vector<7x7x128xf32> to vector<1x1x128xf32>
    %382 = vector.shape_cast %381 : vector<1x1x128xf32> to vector<128xf32>
    %383 = vector.shape_cast %382 : vector<128xf32> to vector<1x1x128xf32>
    %384 = vector.broadcast %383 : vector<1x1x128xf32> to vector<2x16x128xf32>
    %385 = arith.mulf %380, %384 : vector<2x16x128xf32>
    %386 = arith.addf %379, %385 : vector<2x16x128xf32>
    %387 = vector.shape_cast %386 : vector<2x16x128xf32> to vector<32x128xf32>
    %388 = arith.mulf %5, %387 : vector<32x128xf32>
    %c0_23 = arith.constant 0 : index
    %c0_24 = arith.constant 0 : index
    %389 = vector.load %arg8[%c0_23, %c0_24] : memref<128x128xf32, #tpu.memory_space<vmem>>, vector<128x128xf32>
    %cst_25 = arith.constant dense<0.000000e+00> : vector<32x128xf32>
    %390 = tpu.matmul %388, %389, %cst_25 {dimension_numbers = #tpu.dot_dimension_numbers<[1], [0], [0], [1], [0, 0, 1, 1], [], []>} : vector<32x128xf32>, vector<128x128xf32>, vector<32x128xf32> -> vector<32x128xf32>
    %c0_26 = arith.constant 0 : index
    %c0_27 = arith.constant 0 : index
    %391 = vector.load %arg9[%c0_26, %c0_27] : memref<1x128xf32, #tpu.memory_space<vmem>>, vector<1x128xf32>
    %392 = vector.broadcast %391 : vector<1x128xf32> to vector<32x128xf32>
    %393 = arith.addf %390, %392 : vector<32x128xf32>
    %c0_28 = arith.constant 0 : index
    %c0_29 = arith.constant 0 : index
    %394 = vector.load %arg10[%c0_28, %c0_29] : memref<32x128xf32, #tpu.memory_space<vmem>>, vector<32x128xf32>
    tpu.vector_store %arg10[%c0_28, %c0_29], %393 {strides = array<i32>} : memref<32x128xf32, #tpu.memory_space<vmem>>, vector<32x128xf32>,
    return
  }
  func.func @transform_0(%arg0: i32) -> (i32, i32) {
    %c0_i32 = arith.constant 0 : i32
    %c0_i32_0 = arith.constant 0 : i32
    %c0_i32_1 = arith.constant 0 : i32
    return %c0_i32, %c0_i32_0 : i32, i32
  }
  func.func @transform_1(%arg0: i32) -> (i32, i32) {
    %c0_i32 = arith.constant 0 : i32
    %c0_i32_0 = arith.constant 0 : i32
    %c0_i32_1 = arith.constant 0 : i32
    return %c0_i32, %c0_i32_0 : i32, i32
  }
  func.func @transform_2(%arg0: i32) -> (i32, i32) {
    %c0_i32 = arith.constant 0 : i32
    %c0_i32_0 = arith.constant 0 : i32
    %c0_i32_1 = arith.constant 0 : i32
    return %c0_i32, %c0_i32_0 : i32, i32
  }
  func.func @transform_3(%arg0: i32) -> (i32, i32) {
    %c0_i32 = arith.constant 0 : i32
    %c0_i32_0 = arith.constant 0 : i32
    %c0_i32_1 = arith.constant 0 : i32
    return %c0_i32, %c0_i32_0 : i32, i32
  }
  func.func @transform_4(%arg0: i32) -> (i32, i32) {
    %c0_i32 = arith.constant 0 : i32
    %c0_i32_0 = arith.constant 0 : i32
    %c0_i32_1 = arith.constant 0 : i32
    return %c0_i32, %c0_i32_0 : i32, i32
  }
  func.func @transform_5(%arg0: i32) -> (i32, i32, i32) {
    %c0_i32 = arith.constant 0 : i32
    %c0_i32_0 = arith.constant 0 : i32
    %c0_i32_1 = arith.constant 0 : i32
    %c0_i32_2 = arith.constant 0 : i32
    return %c0_i32, %c0_i32_0, %c0_i32_1 : i32, i32, i32
  }
  func.func @transform_6(%arg0: i32) -> (i32, i32) {
    %c0_i32 = arith.constant 0 : i32
    %c0_i32_0 = arith.constant 0 : i32
    %c0_i32_1 = arith.constant 0 : i32
    return %c0_i32, %c0_i32_0 : i32, i32
  }
  func.func @transform_7(%arg0: i32) -> (i32, i32) {
    %c0_i32 = arith.constant 0 : i32
    %c0_i32_0 = arith.constant 0 : i32
    %c0_i32_1 = arith.constant 0 : i32
    return %c0_i32, %c0_i32_0 : i32, i32
  }
  func.func @transform_8(%arg0: i32) -> (i32, i32) {
    %c0_i32 = arith.constant 0 : i32
    %c0_i32_0 = arith.constant 0 : i32
    %c0_i32_1 = arith.constant 0 : i32
    return %c0_i32, %c0_i32_0 : i32, i32
  }
  func.func @transform_9(%arg0: i32) -> (i32, i32) {
    %c0_i32 = arith.constant 0 : i32
    %c0_i32_0 = arith.constant 0 : i32
    %c0_i32_1 = arith.constant 0 : i32
    return %c0_i32, %c0_i32_0 : i32, i32
  }
}

</mosaic_0001>

<bundles_post_ra>
// kernel: tpu_custom_call.1
= control target key start
LH: loop header
LB: loop body
LE: loop exit
PB: predicated region body
PF: predicated region fallthrough
CT: control target
= control target key end

     0   :  { %14 = vsyncpa [#allocation3], 0  ;;  %s4944_s0 = inlined_call_operand.hbm [shape: f32[32,128], index: 0, kind: input, shape index: {}]   ;;  %s4945_s1 = inlined_call_operand.hbm [shape: f32[128,128], index: 1, kind: input, shape index: {}]   ;;  %s4946_s2 = inlined_call_operand.hbm [shape: f32[128,128], index: 2, kind: input, shape index: {}]   ;;  %s4947_s3 = inlined_call_operand.vmem [shape: f32[1,128], index: 3, kind: input, shape index: {}]   ;;  %s4948_s4 = inlined_call_operand.vmem [shape: f32[1,128], index: 4, kind: input, shape index: {}]   ;;  %s4949_s5 = inlined_call_operand.hbm [shape: f32[7,7,128], index: 5, kind: input, shape index: {}]   ;;  %s4950_s6 = inlined_call_operand.vmem [shape: f32[1,128], index: 6, kind: input, shape index: {}]   ;;  %s4951_s7 = inlined_call_operand.hbm [shape: f32[128,128], index: 7, kind: input, shape index: {}]   ;;  %s4952_s8 = inlined_call_operand.vmem [shape: f32[1,128], index: 8, kind: input, shape index: {}]   ;;  %s4953_s9 = inlined_call_operand.hbm [shape: f32[32,128], index: 9, kind: output, shape index: {}]  }
   0x1   :  { %15 = vsyncpa [#allocation6], 0 }
   0x2   :  { %16 = vsyncpa [#allocation9], 0 }
   0x3   :  { %17 = vsyncpa [#allocation4], 0  ;;  %s2681_s30 = smov [#allocation5]   ;;  %s2682_s11 = smov [#allocation8]  }
   0x4   :  { %s35_s10 = sshll.u32 %s2681_s30, 4  ;;  %s63_s12 = sshll.u32 %s2682_s11, 4  ;;  %s36_s10 = int_to_ptr.vmem [resolvable:$true] %s35_s10  ;;  %s2744_s12 = int_to_ptr.vmem [resolvable:$true] %s63_s12 }
   0x5   :  { %s2541_s15 = scalar_lea.hbm %s4945_s1, 2048 }
   0x6   :  { %p2542_p0 = scmp.ne.s32.totalorder %s4945_s1, %s2541_s15  ;;  %p2545_p1 = scmp.lt.u32.totalorder %s2541_s15, %s4945_s1 }
   0x8   :  { %p2547_p2 = pnand %p2545_p1, %p2542_p0 }
   0xa   :  { %2550 = shalt.err (!%p2547_p2)
}
   0xb   :  { %s2551_s20 = scalar_lea.vmem %s36_s10, 2048  ;;  %p2556_p4 = scmp.lt.s32.totalorder %s36_s10, %s36_s10 }
   0xc   :  { %p2552_p3 = scmp.ne.s32.totalorder %s36_s10, %s2551_s20  ;;  %p2557_p5 = scmp.lt.s32.totalorder %s2551_s20, %s2551_s20 }
   0xe   :  { %p2558_p6 = por %p2557_p5, %p2556_p4 }
  0x10   :  { %p2559_p7 = pnand %p2558_p6, %p2552_p3 }
  0x12   :  { %2562 = shalt.err (!%p2559_p7)
}
  0x13   :  { %s2683_s21 = smov 128   ;;  %s2684_s22 = smov 8  }
  0x14   :  { %41 = dma.hbm_to_vmem [thread:$0]  %s4945_s1, 2048, %s36_s10, [#allocation6], %s2683_s21, %s2683_s21, %s2684_s22  }
  0x15   :  { %s2563_s27 = scalar_lea.hbm %s4949_s5, 896 }
  0x16   :  { %p2564_p8 = scmp.ne.s32.totalorder %s4949_s5, %s2563_s27  ;;  %p2567_p9 = scmp.lt.u32.totalorder %s2563_s27, %s4949_s5 }
  0x18   :  { %p2569_p10 = pnand %p2567_p9, %p2564_p8 }
  0x1a   :  { %2572 = shalt.err (!%p2569_p10)
}
  0x1b   :  { %s2573_s13 = scalar_lea.vmem %s2744_s12, 896  ;;  %p2578_p12 = scmp.lt.s32.totalorder %s2744_s12, %s2744_s12 }
  0x1c   :  { %p2574_p11 = scmp.ne.s32.totalorder %s2744_s12, %s2573_s13  ;;  %p2579_p13 = scmp.lt.s32.totalorder %s2573_s13, %s2573_s13 }
  0x1e   :  { %p2580_p0 = por %p2579_p13, %p2578_p12 }
  0x20   :  { %p2581_p1 = pnand %p2580_p0, %p2574_p11 }
  0x22   :  { %2584 = shalt.err (!%p2581_p1)
}
  0x23   :  { %69 = dma.hbm_to_vmem [thread:$0]  %s4949_s5, 896, %s2744_s12, [#allocation9], %s2683_s21, %s2683_s21, %s2684_s22  }
  0x24   :  { %s2685_s14 = smov [#allocation2]   ;;  %s2686_s16 = smov [#allocation7]  }
  0x25   :  { %s23_s15 = sshll.u32 %s2685_s14, 4  ;;  %s47_s17 = sshll.u32 %s2686_s16, 4  ;;  %s24_s15 = int_to_ptr.vmem [resolvable:$true] %s23_s15  ;;  %s2781_s17 = int_to_ptr.vmem [resolvable:$true] %s47_s17 }
  0x26   :  { %s2585_s20 = scalar_lea.hbm %s4944_s0, 512 }
  0x27   :  { %p2586_p2 = scmp.ne.s32.totalorder %s4944_s0, %s2585_s20  ;;  %p2589_p3 = scmp.lt.u32.totalorder %s2585_s20, %s4944_s0 }
  0x29   :  { %p2591_p4 = pnand %p2589_p3, %p2586_p2 }
  0x2b   :  { %2594 = shalt.err (!%p2591_p4)
}
  0x2c   :  { %s2595_s5 = scalar_lea.vmem %s24_s15, 512  ;;  %p2600_p6 = scmp.lt.s32.totalorder %s24_s15, %s24_s15 }
  0x2d   :  { %p2596_p5 = scmp.ne.s32.totalorder %s24_s15, %s2595_s5  ;;  %p2601_p7 = scmp.lt.s32.totalorder %s2595_s5, %s2595_s5 }
  0x2f   :  { %p2602_p8 = por %p2601_p7, %p2600_p6 }
  0x31   :  { %p2603_p9 = pnand %p2602_p8, %p2596_p5 }
  0x33   :  { %2606 = shalt.err (!%p2603_p9)
}
  0x34   :  { %29 = dma.hbm_to_vmem [thread:$0]  %s4944_s0, 512, %s24_s15, [#allocation3], %s2683_s21, %s2683_s21, %s2684_s22  }
  0x35   :  { %s2607_s30 = scalar_lea.hbm %s4946_s2, 2048 }
  0x36   :  { %p2608_p10 = scmp.ne.s32.totalorder %s4946_s2, %s2607_s30  ;;  %p2611_p11 = scmp.lt.u32.totalorder %s2607_s30, %s4946_s2 }
  0x38   :  { %p2613_p12 = pnand %p2611_p11, %p2608_p10 }
  0x3a   :  { %2616 = shalt.err (!%p2613_p12)
}
  0x3b   :  { %s2617_s14 = scalar_lea.vmem %s2781_s17, 2048  ;;  %p2622_p0 = scmp.lt.s32.totalorder %s2781_s17, %s2781_s17 }
  0x3c   :  { %p2618_p13 = scmp.ne.s32.totalorder %s2781_s17, %s2617_s14  ;;  %p2623_p1 = scmp.lt.s32.totalorder %s2617_s14, %s2617_s14 }
  0x3e   :  { %p2624_p2 = por %p2623_p1, %p2622_p0 }
  0x40   :  { %p2625_p3 = pnand %p2624_p2, %p2618_p13 }
  0x42   :  { %2628 = shalt.err (!%p2625_p3)
}
  0x43   :  { %53 = dma.hbm_to_vmem [thread:$0]  %s4946_s2, 2048, %s2781_s17, [#allocation6], %s2683_s21, %s2683_s21, %s2684_s22  }
  0x44   :  { %s2687_s16 = smov [#allocation10]   ;;  %s2629_s23 = scalar_lea.hbm %s4951_s7, 2048 }
  0x45   :  { %s77_s18 = sshll.u32 %s2687_s16, 4  ;;  %p2630_p4 = scmp.ne.s32.totalorder %s4951_s7, %s2629_s23  ;;  %s78_s18 = int_to_ptr.vmem [resolvable:$true] %s77_s18 }
  0x46   :  { %p2633_p5 = scmp.lt.u32.totalorder %s2629_s23, %s4951_s7 }
  0x48   :  { %p2635_p6 = pnand %p2633_p5, %p2630_p4 }
  0x4a   :  { %2638 = shalt.err (!%p2635_p6)
}
  0x4b   :  { %s2639_s12 = scalar_lea.vmem %s78_s18, 2048  ;;  %p2644_p8 = scmp.lt.s32.totalorder %s78_s18, %s78_s18 }
  0x4c   :  { %p2640_p7 = scmp.ne.s32.totalorder %s78_s18, %s2639_s12  ;;  %p2645_p9 = scmp.lt.s32.totalorder %s2639_s12, %s2639_s12 }
  0x4e   :  { %p2646_p10 = por %p2645_p9, %p2644_p8 }
  0x50   :  { %p2647_p11 = pnand %p2646_p10, %p2640_p7 }
  0x52   :  { %2650 = shalt.err (!%p2647_p11)
}
  0x53   :  { %83 = dma.hbm_to_vmem [thread:$0]  %s4951_s7, 2048, %s78_s18, [#allocation9], %s2683_s21, %s2683_s21, %s2684_s22  }
  0x54   :  { %2673 = dma.done.wait [#allocation3], 512  }
  0x55   :  { %2674 = vsyncadd [#allocation3], 4294966784 }
  0x56   :  { %2675 = dma.done.wait [#allocation6], 4096  }
  0x57   :  { %2676 = vsyncadd [#allocation6], 4294963200 }
  0x58   :  { %2677 = dma.done.wait [#allocation9], 2944  }
  0x59   :  { %2678 = vsyncadd [#allocation9], 4294964352  ;;  %v213_v0 = vld [vmem:[#allocation7] sm:$0xff]  ;;  %v214_v1 = vld [vmem:[#allocation7 + $0x8] sm:$0xff]  ;;  %v579_v52 = vlaneseq  ;;  %vm353_vm0 = vcmask 1042432   ;;  %s2688_s28 = smov 16  }
  0x5a   :  { %v215_v2 = vld [vmem:[#allocation7 + $0x10] sm:$0xff]  ;;  %v2441_v3 = vpack.c.bf16 %v214_v1, %v213_v0  ;;  %v216_v4 = vld [vmem:[#allocation7 + $0x18] sm:$0xff]  ;;  %v217_v6 = vld [vmem:[#allocation7 + $0x20] sm:$0xff]  ;;  %s2689_s29 = smov 24   ;;  %vm679_vm1 = vcmask 1046528   ;;  %vm918_vm2 = vcmask 1045504  }
  0x5b   :  { %v2445_v5 = vpack.c.bf16 %v216_v4, %v215_v2  ;;  %v218_v7 = vld [vmem:[#allocation7 + $0x28] sm:$0xff]  ;;  %v101_v9 = vld [vmem:[#allocation2] sm:$0xff]  ;;  %v219_v10 = vld [vmem:[#allocation7 + $0x30] sm:$0xff]  ;;  %v2833_v53 = vshrl.u32 %v579_v52, 7  ;;  %vm1157_vm3 = vcmask 1044480   ;;  %vm1396_vm4 = vcmask 1043456  }
  0x5c   :  { %2442 = vmatprep.subr.bf16.mxu1 %v2441_v3  ;;  %v2449_v8 = vpack.c.bf16 %v218_v7, %v217_v6  ;;  %v220_v11 = vld [vmem:[#allocation7 + $0x38] sm:$0xff]  ;;  %2365 = vmatprep.mubr.f32.mxu1 %v101_v9  ;;  %v105_v12 = vld [vmem:[#allocation5] sm:$0xff]  ;;  %v106_v13 = vld [vmem:[#allocation5 + $0x8] sm:$0xff]  ;;  %s2691_s30 = smov 112   ;;  %vm1873_vm5 = vcmask 1041408   ;;  %s2692_s11 = smov 104  }
  0x5d   :  { %2444 = vmatpush3.bf16.msra.mxu1 %v2441_v3  ;;  %2327 = vmatprep.mubr.f32.mxu0 %v101_v9  ;;  %v2409_v14 = vpack.c.bf16 %v106_v13, %v105_v12  ;;  %v2453_v15 = vpack.c.bf16 %v220_v11, %v219_v10  ;;  %v221_v16 = vld [vmem:[#allocation7 + $0x40] sm:$0xff]  ;;  %v222_v17 = vld [vmem:[#allocation7 + $0x48] sm:$0xff]  ;;  %v223_v19 = vld [vmem:[#allocation7 + $0x50] sm:$0xff]  ;;  %v2839_v56 = vsub.s32 3, %v2833_v53  ;;  %vm344_vm6 = vcmask 195584   ;;  %s2693_s0 = smov [#allocation11]  }
  0x5e   :  { %2446 = vmatprep.subr.bf16.mxu1 %v2445_v5  ;;  %v2457_v18 = vpack.c.bf16 %v222_v17, %v221_v16  ;;  %v224_v20 = vld [vmem:[#allocation7 + $0x58] sm:$0xff]  ;;  %v225_v22 = vld [vmem:[#allocation7 + $0x60] sm:$0xff]  ;;  %v226_v23 = vld [vmem:[#allocation7 + $0x68] sm:$0xff]  ;;  %vm382_vm7 = vcmask 130048   ;;  %vm419_vm8 = vcmask 64512   ;;  %vm472_vm9 = vcmask 982016  }
  0x5f   :  { %2410 = vmatprep.subr.bf16.mxu0 %v2409_v14  ;;  %v2461_v21 = vpack.c.bf16 %v224_v20, %v223_v19  ;;  %v2465_v24 = vpack.c.bf16 %v226_v23, %v225_v22  ;;  %v227_v25 = vld [vmem:[#allocation7 + $0x70] sm:$0xff]  ;;  %v228_v26 = vld [vmem:[#allocation7 + $0x78] sm:$0xff]  ;;  %v102_v28 = vld [vmem:[#allocation2 + $0x8] sm:$0xff]  ;;  %vm509_vm10 = vcmask 916480   ;;  %vm546_vm11 = vcmask 850944   ;;  %s2217_s15 = sshll.u32 %s2693_s0, 4  ;;  %s2218_s15 = int_to_ptr.vmem [resolvable:$true] %s2217_s15 }
  0x60   :  { %2412 = vmatpush3.bf16.msra.mxu0 %v2409_v14  ;;  %v2469_v27 = vpack.c.bf16 %v228_v26, %v227_v25  ;;  %v103_v29 = vld [vmem:[#allocation2 + $0x10] sm:$0xff]  ;;  %v104_v30 = vld [vmem:[#allocation2 + $0x18] sm:$0xff]  ;;  %v109_v34 = vld [vmem:[#allocation5 + $0x20] sm:$0xff]  ;;  %s2651_s16 = scalar_lea.vmem %s2218_s15, 512  ;;  %p2656_p13 = scmp.lt.s32.totalorder %s2218_s15, %s2218_s15 }
  0x61   :  { %2448 = vmatpush3.bf16.msra.mxu1 %v2445_v5  ;;  %v107_v31 = vld [vmem:[#allocation5 + $0x10] sm:$0xff]  ;;  %v108_v32 = vld [vmem:[#allocation5 + $0x18] sm:$0xff]  ;;  %v110_v35 = vld [vmem:[#allocation5 + $0x28] sm:$0xff]  ;;  %p2652_p12 = scmp.ne.s32.totalorder %s2218_s15, %s2651_s16  ;;  %p2657_p0 = scmp.lt.s32.totalorder %s2651_s16, %s2651_s16 }
  0x62   :  { %2450 = vmatprep.subr.bf16.mxu1 %v2449_v8  ;;  %v2413_v33 = vpack.c.bf16 %v108_v32, %v107_v31  ;;  %v2417_v36 = vpack.c.bf16 %v110_v35, %v109_v34  ;;  %v111_v37 = vld [vmem:[#allocation5 + $0x30] sm:$0xff]  ;;  %v112_v38 = vld [vmem:[#allocation5 + $0x38] sm:$0xff]  ;;  %v113_v40 = vld [vmem:[#allocation5 + $0x40] sm:$0xff] }
  0x63   :  { %v2421_v39 = vpack.c.bf16 %v112_v38, %v111_v37  ;;  %v114_v41 = vld [vmem:[#allocation5 + $0x48] sm:$0xff]  ;;  %v115_v43 = vld [vmem:[#allocation5 + $0x50] sm:$0xff]  ;;  %v116_v44 = vld [vmem:[#allocation5 + $0x58] sm:$0xff]  ;;  %p2658_p1 = por %p2657_p0, %p2656_p13 }
  0x64   :  { %2414 = vmatprep.subr.bf16.mxu0 %v2413_v33  ;;  %v2425_v42 = vpack.c.bf16 %v114_v41, %v113_v40  ;;  %v2429_v45 = vpack.c.bf16 %v116_v44, %v115_v43  ;;  %v117_v46 = vld [vmem:[#allocation5 + $0x60] sm:$0xff]  ;;  %v118_v47 = vld [vmem:[#allocation5 + $0x68] sm:$0xff]  ;;  %v119_v49 = vld [vmem:[#allocation5 + $0x70] sm:$0xff] }
  0x65   :  { %2452 = vmatpush3.bf16.msra.mxu1 %v2449_v8  ;;  %2416 = vmatpush3.bf16.msra.mxu0 %v2413_v33  ;;  %v2433_v48 = vpack.c.bf16 %v118_v47, %v117_v46  ;;  %v120_v50 = vld [vmem:[#allocation5 + $0x78] sm:$0xff]  ;;  %v2232_v54 = vld [vmem:[%s4948_s4] ss:$0 sm:$0xff]  ;;  %v2843_v59 = vld [vmem:[#allocation8 + $0x8] sm:$0x7f]  ;;  %s2690_s4 = smov 120   ;;  %p2659_p2 = pnand %p2658_p1, %p2652_p12 }
  0x66   :  { %2454 = vmatprep.subr.bf16.mxu1 %v2453_v15  ;;  %2418 = vmatprep.subr.bf16.mxu0 %v2417_v36  ;;  %v2437_v51 = vpack.c.bf16 %v120_v50, %v119_v49  ;;  %v2855_v0 = vrot.slane %v2843_v59, %v2839_v56  ;;  %v2873_v8 = vld [vmem:[#allocation8 + $0x10] sm:$0x7f]  ;;  %v2877_v10 = vld [vmem:[#allocation8 + $0x18] sm:$0x7f]  ;;  %v2879_v11 = vld [vmem:[#allocation8 + $0x20] sm:$0x7f] }
  0x67   :  { %v2881_v12 = vld [vmem:[#allocation8 + $0x28] sm:$0x7f]  ;;  %v1247_v20 = vrot.slane %v2877_v10, %v2839_v56 }
  0x68   :  { %v2912_v22 = vrot.slane %v2881_v12, %v2839_v56 }
  0x69   :  { %2456 = vmatpush3.bf16.msra.mxu1 %v2453_v15  ;;  %2420 = vmatpush3.bf16.msra.mxu0 %v2417_v36 }
  0x6a   :  { %2458 = vmatprep.subr.bf16.mxu1 %v2457_v18  ;;  %2422 = vmatprep.subr.bf16.mxu0 %v2421_v39 }
  0x6d   :  { %2460 = vmatpush3.bf16.msra.mxu1 %v2457_v18  ;;  %2424 = vmatpush3.bf16.msra.mxu0 %v2421_v39  ;;  %v1008_v18 = vrot.slane %v2873_v8, %v2839_v56 }
  0x6e   :  { %2462 = vmatprep.subr.bf16.mxu1 %v2461_v21  ;;  %2426 = vmatprep.subr.bf16.mxu0 %v2425_v42 }
  0x71   :  { %2464 = vmatpush3.bf16.msra.mxu1 %v2461_v21  ;;  %2428 = vmatpush3.bf16.msra.mxu0 %v2425_v42  ;;  %v2908_v21 = vrot.slane %v2879_v11, %v2839_v56 }
  0x72   :  { %2466 = vmatprep.subr.bf16.mxu1 %v2465_v24  ;;  %2430 = vmatprep.subr.bf16.mxu0 %v2429_v45 }
  0x75   :  { %2468 = vmatpush3.bf16.msra.mxu1 %v2465_v24  ;;  %2432 = vmatpush3.bf16.msra.mxu0 %v2429_v45 }
  0x76   :  { %2470 = vmatprep.subr.bf16.mxu1 %v2469_v27  ;;  %2434 = vmatprep.subr.bf16.mxu0 %v2433_v48 }
  0x79   :  { %2472 = vmatpush3.bf16.msra.mxu1 %v2469_v27  ;;  %2436 = vmatpush3.bf16.msra.mxu0 %v2433_v48 }
  0x7a   :  { %2438 = vmatprep.subr.bf16.mxu0 %v2437_v51 }
  0x7c   :  { %2366 = vmatmul.mubr.f32.vlgmr.msra.gmra.mrb[0].mxu1 %v102_v28 }
  0x7d   :  { %2368 = vmatprep.mubr.f32.mxu1 %v103_v29  ;;  %2440 = vmatpush3.bf16.msra.mxu0 %v2437_v51 }
  0x80   :  { %2369 = vmatmul.mubr.f32.gmra.mrb[2].mxu1 %v104_v30  ;;  %2328 = vmatmul.mubr.f32.vlgmr.msra.gmra.mrb[0].mxu0 %v102_v28 }
  0x81   :  { %2330 = vmatprep.mubr.f32.mxu0 %v103_v29 }
  0x84   :  { %2331 = vmatmul.mubr.f32.gmra.mrb[2].mxu0 %v104_v30 }
 0x14f   :  { %v2367_v55 = vpop.f32.mrb[0].mxu1 }
 0x150   :  { %v2841_v57 = vadd.f32 %v2367_v55, %v2232_v54  ;;  %v302_v58 = vpop.f32.mrb[1].mxu1 }
 0x151   :  { %v2845_v60 = vadd.f32 %v2232_v54, %v302_v58 }
 0x152   :  { %v445_v61 = vrot.slane %v2841_v57, 5  ;;  %372 = vrot.lane.b32.xlu0 %v2841_v57, %s2688_s28  ;;  %334 = vrot.lane.b32.xlu1 %v2841_v57, %s2689_s29 }
 0x153   :  { %v444_v62 = vrot.slane %v2845_v60, 5  ;;  %v2370_v63 = vpop.f32.mrb[2].mxu1 }
 0x154   :  { %v2857_v1 = vadd.f32 %v2370_v63, %v2232_v54  ;;  %v312_v2 = vpop.f32.mrb[3].mxu1  ;;  %v2926_v31 = vsel %vm353_vm0, %v445_v61, 0.0 }
 0x155   :  { %v2860_v3 = vsel %vm353_vm0, %v444_v62, %v445_v61  ;;  %v2863_v4 = vsel %vm353_vm0, 0.0, %v444_v62  ;;  %v2865_v5 = vadd.f32 %v2232_v54, %v312_v2  ;;  %v772_v54 = vmul.f32 %v2855_v0, %v2926_v31 }
 0x156   :  { %v448_v6 = vrot.slane %v2857_v1, 5  ;;  %409 = vrot.lane.b32.xlu0 %v2841_v57, %s2684_s22  ;;  %338 = vrot.lane.b32.xlu1 %v2857_v1, %s2689_s29  ;;  %v770_v9 = vmul.f32 %v2855_v0, %v2863_v4  ;;  %v2885_v13 = vmul.f32 %v2855_v0, %v2860_v3  ;;  %v1011_v55 = vmul.f32 %v1008_v18, %v2926_v31 }
 0x157   :  { %v447_v7 = vrot.slane %v2865_v5, 5 }
 0x158   :  { %v2888_v14 = vsel %vm353_vm0, %v448_v6, 0.0  ;;  %v782_v17 = vrot.slane %v770_v9, 1  ;;  %v783_v24 = vrot.slane %v2885_v13, 1 }
 0x159   :  { %v2891_v15 = vsel %vm353_vm0, %v447_v7, %v448_v6  ;;  %v2894_v16 = vsel %vm353_vm0, 0.0, %v447_v7  ;;  %v775_v25 = vmul.f32 %v2855_v0, %v2888_v14  ;;  %v1014_v26 = vmul.f32 %v1008_v18, %v2888_v14 }
 0x15a   :  { %462 = vrot.lane.b32.xlu0 %v2841_v57, %s2690_s4  ;;  %376 = vrot.lane.b32.xlu1 %v2857_v1, %s2688_s28  ;;  %v773_v19 = vmul.f32 %v2855_v0, %v2894_v16  ;;  %v774_v23 = vmul.f32 %v2855_v0, %v2891_v15  ;;  %v1253_v28 = vmul.f32 %v1247_v20, %v2888_v14  ;;  %v785_v7 = vrot.slane %v772_v54, 1 }
 0x15b   :  { %v1492_v29 = vmul.f32 %v2908_v21, %v2888_v14  ;;  %v1730_v30 = vmul.f32 %v2912_v22, %v2888_v14  ;;  %v2933_v33 = vsel %vm679_vm1, %v782_v17, %v783_v24  ;;  %v790_v34 = vrot.slane %v775_v25, 1 }
 0x15c   :  { %v787_v27 = vrot.slane %v773_v19, 1  ;;  %v788_v32 = vrot.slane %v774_v23, 1  ;;  %5077 = vst [vmem:[#allocation16_spill] sm:$0xff] %v2933_v33  ;;  %v1029_v35 = vrot.slane %v1014_v26, 2  ;;  %v1268_v36 = vrot.slane %v1253_v28, 3 }
 0x15d   :  { %v1507_v37 = vrot.slane %v1492_v29, 4  ;;  %v1012_v38 = vmul.f32 %v1008_v18, %v2894_v16  ;;  %v1013_v41 = vmul.f32 %v1008_v18, %v2891_v15  ;;  %v1251_v42 = vmul.f32 %v1247_v20, %v2894_v16 }
 0x15e   :  { %413 = vrot.lane.b32.xlu1 %v2857_v1, %s2684_s22  ;;  %332 = vrot.lane.b32.xlu0 %v2845_v60, %s2689_s29  ;;  %v2937_v39 = vsel %vm679_vm1, %v787_v27, %v788_v32  ;;  %v2940_v40 = vsel %vm679_vm1, %v788_v32, %v790_v34  ;;  %v1745_v43 = vrot.slane %v1730_v30, 5  ;;  %v1252_v45 = vmul.f32 %v1247_v20, %v2891_v15 }
 0x15f   :  { %5078 = vst [vmem:[#allocation17_spill] sm:$0xff] %v2937_v39  ;;  %5079 = vst [vmem:[#allocation18_spill] sm:$0xff] %v2940_v40  ;;  %v1026_v44 = vrot.slane %v1012_v38, 2  ;;  %v1490_v46 = vmul.f32 %v2908_v21, %v2894_v16  ;;  %v1027_v47 = vrot.slane %v1013_v41, 2  ;;  %v1265_v48 = vrot.slane %v1251_v42, 3 }
 0x160   :  { %v1491_v49 = vmul.f32 %v2908_v21, %v2891_v15  ;;  %v2955_v50 = vmul.f32 %v2912_v22, %v2891_v15  ;;  %v1266_v51 = vrot.slane %v1252_v45, 3  ;;  %v1024_v17 = vrot.slane %v1011_v55, 2 }
 0x161   :  { %v1504_v52 = vrot.slane %v1490_v46, 4  ;;  %v2961_v58 = vsel %vm918_vm2, %v1026_v44, %v1027_v47  ;;  %v2964_v61 = vsel %vm918_vm2, %v1027_v47, %v1029_v35  ;;  %v1250_v19 = vmul.f32 %v1247_v20, %v2926_v31 }
 0x162   :  { %466 = vrot.lane.b32.xlu1 %v2857_v1, %s2690_s4  ;;  %370 = vrot.lane.b32.xlu0 %v2845_v60, %s2688_s28  ;;  %5080 = vst [vmem:[#allocation19_spill] sm:$0xff] %v2961_v58  ;;  %5081 = vst [vmem:[#allocation20_spill] sm:$0xff] %v2964_v61  ;;  %v1505_v62 = vrot.slane %v1491_v49, 4  ;;  %v1743_v63 = vrot.slane %v2955_v50, 5  ;;  %v2968_v2 = vsel %vm1157_vm3, %v1265_v48, %v1266_v51 }
 0x163   :  { %5082 = vst [vmem:[#allocation21_spill] sm:$0xff] %v2968_v2  ;;  %v2971_v6 = vsel %vm1157_vm3, %v1266_v51, %v1268_v36  ;;  %v1489_v23 = vmul.f32 %v2908_v21, %v2926_v31  ;;  %v1727_v25 = vmul.f32 %v2912_v22, %v2926_v31  ;;  %v1009_v26 = vmul.f32 %v1008_v18, %v2863_v4 }
 0x164   :  { %5083 = vst [vmem:[#allocation22_spill] sm:$0xff] %v2971_v6  ;;  %v2978_v0 = vsel %vm1396_vm4, %v1504_v52, %v1505_v62  ;;  %v2981_v9 = vsel %vm1396_vm4, %v1505_v62, %v1507_v37  ;;  %v2986_v13 = vsel %vm353_vm0, %v1743_v63, %v1745_v43  ;;  %v1010_v27 = vmul.f32 %v1008_v18, %v2860_v3  ;;  %v3035_v52 = vld [vmem:[#allocation8 + $0x30] sm:$0x7f] }
 0x165   :  { %5084 = vst [vmem:[#allocation23_spill] sm:$0xff] %v2978_v0  ;;  %5085 = vst [vmem:[#allocation24_spill] sm:$0xff] %v2981_v9  ;;  %v1248_v28 = vmul.f32 %v1247_v20, %v2863_v4  ;;  %v1249_v29 = vmul.f32 %v1247_v20, %v2860_v3  ;;  %v1487_v30 = vmul.f32 %v2908_v21, %v2863_v4  ;;  %v1263_v32 = vrot.slane %v1250_v19, 3 }
 0x166   :  { %503 = vrot.lane.b32.xlu1 %v2857_v1, %s2691_s30  ;;  %407 = vrot.lane.b32.xlu0 %v2845_v60, %s2684_s22  ;;  %5086 = vst [vmem:[#allocation25_spill] sm:$0xff] %v2986_v13  ;;  %v1502_v34 = vrot.slane %v1489_v23, 4  ;;  %v3000_v35 = vsel %vm679_vm1, %v783_v24, %v785_v7  ;;  %v1021_v36 = vrot.slane %v1009_v26, 2  ;;  %v1022_v18 = vrot.slane %v1010_v27, 2 }
 0x167   :  { %5087 = vst [vmem:[#allocation26_spill] sm:$0xff] %v3000_v35  ;;  %v1260_v37 = vrot.slane %v1248_v28, 3  ;;  %v1261_v38 = vrot.slane %v1249_v29, 3  ;;  %v1740_v41 = vrot.slane %v1727_v25, 5  ;;  %v1488_v20 = vmul.f32 %v2908_v21, %v2860_v3 }
 0x168   :  { %v1499_v42 = vrot.slane %v1487_v30, 4  ;;  %v1726_v43 = vmul.f32 %v2912_v22, %v2860_v3  ;;  %v3011_v24 = vsel %vm918_vm2, %v1021_v36, %v1022_v18  ;;  %v3014_v44 = vsel %vm918_vm2, %v1022_v18, %v1024_v17 }
 0x169   :  { %5088 = vst [vmem:[#allocation27_spill] sm:$0xff] %v3011_v24  ;;  %5089 = vst [vmem:[#allocation28_spill] sm:$0xff] %v3014_v44  ;;  %v3017_v45 = vsel %vm1157_vm3, %v1260_v37, %v1261_v38  ;;  %v3020_v46 = vsel %vm1157_vm3, %v1261_v38, %v1263_v32  ;;  %v1500_v47 = vrot.slane %v1488_v20, 4  ;;  %v1963_v54 = vrot.slane %v3035_v52, %v2839_v56 }
 0x16a   :  { %374 = vrot.lane.b32.xlu1 %v2865_v5, %s2688_s28  ;;  %460 = vrot.lane.b32.xlu0 %v2845_v60, %s2690_s4  ;;  %5090 = vst [vmem:[#allocation29_spill] sm:$0xff] %v3017_v45  ;;  %5091 = vst [vmem:[#allocation30_spill] sm:$0xff] %v3020_v46  ;;  %v1738_v48 = vrot.slane %v1726_v43, 5  ;;  %v1725_v7 = vmul.f32 %v2912_v22, %v2863_v4  ;;  %v593_v37 = vsub.s32 1, %v2833_v53  ;;  %v581_v20 = vsub.s32 0, %v2833_v53 }
 0x16b   :  { %v3027_v21 = vsel %vm1396_vm4, %v1499_v42, %v1500_v47  ;;  %v3030_v49 = vsel %vm1396_vm4, %v1500_v47, %v1502_v34  ;;  %v1966_v55 = vmul.f32 %v1963_v54, %v2926_v31  ;;  %v1965_v62 = vmul.f32 %v1963_v54, %v2860_v3  ;;  %v3087_v43 = vld [vmem:[#allocation8] sm:$0x7f] }
 0x16c   :  { %5092 = vst [vmem:[#allocation31_spill] sm:$0xff] %v3027_v21  ;;  %5093 = vst [vmem:[#allocation32_spill] sm:$0xff] %v3030_v49  ;;  %v3033_v51 = vsel %vm353_vm0, %v1738_v48, %v1740_v41  ;;  %v1737_v23 = vrot.slane %v1725_v7, 5  ;;  %v1964_v31 = vmul.f32 %v1963_v54, %v2863_v4  ;;  %v1969_v28 = vmul.f32 %v1963_v54, %v2888_v14 }
 0x16d   :  { %5094 = vst [vmem:[#allocation33_spill] sm:$0xff] %v3033_v51  ;;  %v1979_v17 = vrot.slane %v1966_v55, 6  ;;  %v1977_v19 = vrot.slane %v1965_v62, 6  ;;  %v3090_v50 = vrot.slane %v2843_v59, %v593_v37  ;;  %v3096_v47 = vrot.slane %v2877_v10, %v593_v37 }
 0x16e   :  { %411 = vrot.lane.b32.xlu1 %v2865_v5, %s2684_s22  ;;  %336 = vrot.lane.b32.xlu0 %v2865_v5, %s2689_s29  ;;  %v3057_v26 = vsel %vm353_vm0, %v1737_v23, %v1738_v48  ;;  %v1976_v27 = vrot.slane %v1964_v31, 6  ;;  %v3099_v48 = vrot.slane %v2879_v11, %v593_v37  ;;  %v3103_v62 = vrot.slane %v2881_v12, %v593_v37 }
 0x16f   :  { %v3054_v25 = vsel %vm1873_vm5, %v1977_v19, %v1979_v17  ;;  %5096 = vst [vmem:[#allocation35_spill] sm:$0xff] %v3057_v26  ;;  %v3106_v7 = vrot.slane %v3035_v52, %v593_v37  ;;  %v3109_v17 = vrot.slane %v3035_v52, %v581_v20  ;;  %v3114_v23 = vrot.slane %v2843_v59, %v581_v20 }
 0x170   :  { %5095 = vst [vmem:[#allocation34_spill] sm:$0xff] %v3054_v25  ;;  %v3064_v29 = vsel %vm1873_vm5, %v1976_v27, %v1977_v19  ;;  %v618_v19 = vrot.slane %v3087_v43, %v2839_v56  ;;  %v3117_v31 = vrot.slane %v2873_v8, %v581_v20  ;;  %v3120_v27 = vrot.slane %v2877_v10, %v581_v20 }
 0x171   :  { %5097 = vst [vmem:[#allocation36_spill] sm:$0xff] %v3064_v29  ;;  %5101 = vst [vmem:[#allocation40_spill] sm:$0xff] %v3109_v17  ;;  %v641_v13 = vsub.s32 5, %v2833_v53  ;;  %v3200_v45 = vrot.slane %v3087_v43, %v581_v20 }
 0x172   :  { %464 = vrot.lane.b32.xlu1 %v2865_v5, %s2690_s4  ;;  %497 = vrot.lane.b32.xlu0 %v2845_v60, %s2691_s30  ;;  %5102 = vst [vmem:[#allocation41_spill] sm:$0xff] %v3117_v31  ;;  %5103 = vst [vmem:[#allocation42_spill] sm:$0xff] %v3120_v27  ;;  %v3203_v0 = vmul.f32 %v618_v19, %v2894_v16  ;;  %v3206_v44 = vmul.f32 %v618_v19, %v2891_v15 }
 0x173   :  { %5112 = vst [vmem:[#allocation51_spill] sm:$0xff] %v3200_v45  ;;  %v3215_v35 = vrot.slane %v2843_v59, %v641_v13 }
 0x174   :  { %5113 = vst [vmem:[#allocation52_spill] sm:$0xff] %v3203_v0  ;;  %5114 = vst [vmem:[#allocation53_spill] sm:$0xff] %v3206_v44 }
 0x176   :  { %501 = vrot.lane.b32.xlu1 %v2865_v5, %s2691_s30  ;;  %499 = vrot.lane.b32.xlu0 %v2841_v57, %s2691_s30 }
 0x17a   :  { %538 = vrot.lane.b32.xlu1 %v2865_v5, %s2692_s11  ;;  %534 = vrot.lane.b32.xlu0 %v2845_v60, %s2692_s11  ;;  %v1968_v60 = vmul.f32 %v1963_v54, %v2891_v15  ;;  %v1984_v5 = vrot.slane %v1969_v28, 6 }
 0x17c   :  { %v1982_v30 = vrot.slane %v1968_v60, 6  ;;  %v3128_v60 = vrot.slane %v2879_v11, %v581_v20 }
 0x17e   :  { %540 = vrot.lane.b32.xlu1 %v2857_v1, %s2692_s11  ;;  %536 = vrot.lane.b32.xlu0 %v2841_v57, %s2692_s11  ;;  %v3068_v32 = vsel %vm1873_vm5, %v1982_v30, %v1984_v5  ;;  %v1728_v1 = vmul.f32 %v2912_v22, %v2894_v16  ;;  %v1967_v57 = vmul.f32 %v1963_v54, %v2894_v16  ;;  %v605_v54 = vsub.s32 2, %v2833_v53 }
 0x17f   :  { %5098 = vst [vmem:[#allocation37_spill] sm:$0xff] %v3068_v32  ;;  %5104 = vst [vmem:[#allocation43_spill] sm:$0xff] %v3128_v60  ;;  %v3131_v5 = vrot.slane %v2881_v12, %v581_v20  ;;  %v3218_v20 = vrot.slane %v2873_v8, %v641_v13 }
 0x180   :  { %v1742_v34 = vrot.slane %v1728_v1, 5  ;;  %v1981_v36 = vrot.slane %v1967_v57, 6  ;;  %v3138_v57 = vrot.slane %v2843_v59, %v605_v54  ;;  %v3154_v25 = vrot.slane %v2881_v12, %v605_v54 }
 0x181   :  { %5105 = vst [vmem:[#allocation44_spill] sm:$0xff] %v3131_v5  ;;  %v3240_v61 = vrot.slane %v3087_v43, %v605_v54 }
 0x182   :  { %v3076_v14 = vsel %vm353_vm0, %v1742_v34, %v1743_v63  ;;  %v3079_v18 = vsel %vm1873_vm5, %v1981_v36, %v1982_v30  ;;  %v3093_v63 = vrot.slane %v2873_v8, %v593_v37  ;;  %v629_v30 = vsub.s32 4, %v2833_v53 }
 0x183   :  { %5099 = vst [vmem:[#allocation38_spill] sm:$0xff] %v3076_v14  ;;  %5100 = vst [vmem:[#allocation39_spill] sm:$0xff] %v3079_v18  ;;  %v3141_v34 = vrot.slane %v2873_v8, %v605_v54  ;;  %v3144_v36 = vrot.slane %v2877_v10, %v605_v54  ;;  %v3166_v18 = vmul.f32 %v618_v19, %v2863_v4 }
 0x184   :  { %v3170_v49 = vrot.slane %v2843_v59, %v629_v30  ;;  %v3174_v14 = vmul.f32 %v618_v19, %v2860_v3  ;;  %v3179_v21 = vrot.slane %v2873_v8, %v629_v30  ;;  %v3182_v4 = vrot.slane %v2877_v10, %v629_v30  ;;  %5120 = vst [vmem:[#allocation57_spill] sm:$0xff] %v3240_v61 }
 0x185   :  { %5108 = vst [vmem:[#allocation47_spill] sm:$0xff] %v3166_v18  ;;  %v3185_v26 = vrot.slane %v2879_v11, %v629_v30  ;;  %v3188_v46 = vrot.slane %v2881_v12, %v629_v30  ;;  %v3191_v9 = vrot.slane %v3035_v52, %v629_v30  ;;  %v3234_v59 = vrot.slane %v2881_v12, %v641_v13 }
 0x186   :  { %5109 = vst [vmem:[#allocation48_spill] sm:$0xff] %v3174_v14  ;;  %v3237_v8 = vrot.slane %v3035_v52, %v641_v13 }
 0x187   :  { %5110 = vst [vmem:[#allocation49_spill] sm:$0xff] %v3191_v9  ;;  %5118 = vst [vmem:[#allocation55_spill] sm:$0xff] %v3234_v59 }
 0x188   :  { %5119 = vst [vmem:[#allocation56_spill] sm:$0xff] %v3237_v8 }
 0x1c4   :  { %v373_v38 = vpop.permute.xlu0 %372  ;;  %v335_v41 = vpop.permute.xlu1 %334 }
 0x1c5   :  { %v3084_v22 = vsel %vm344_vm6, 0.0, %v335_v41  ;;  %v3135_v1 = vsel %vm382_vm7, 0.0, %v373_v38  ;;  %v3157_v38 = vrot.slane %v3035_v52, %v605_v54 }
 0x1c6   :  { %v4954_v42 = vrot.slane %v3084_v22, 5  ;;  %v5115_v6 = vrot.slane %v3135_v1, 5 }
 0x1c8   :  { %v410_v55 = vpop.permute.xlu0 %409  ;;  %v3125_v28 = vsel %vm353_vm0, %v4954_v42, 0.0  ;;  %v339_v56 = vpop.permute.xlu1 %338  ;;  %v3151_v42 = vrot.slane %v2879_v11, %v605_v54  ;;  %v405_v24 = vsel %vm353_vm0, %v5115_v6, 0.0  ;;  %v3228_v6 = vrot.slane %v2877_v10, %v641_v13 }
 0x1c9   :  { %v3148_v41 = vmul.f32 %v3109_v17, %v3125_v28  ;;  %v3160_v29 = vsel %vm419_vm8, 0.0, %v410_v55  ;;  %v3163_v51 = vsel %vm344_vm6, 0.0, %v339_v56  ;;  %v3243_v58 = vmul.f32 %v3090_v50, %v405_v24 }
 0x1ca   :  { %5107 = vst [vmem:[#allocation46_spill] sm:$0xff] %v3163_v51  ;;  %v4955_v55 = vrot.slane %v3160_v29, 5  ;;  %v5117_v15 = vrot.slane %v3163_v51, 5  ;;  %v3249_v10 = vmul.f32 %v3096_v47, %v405_v24  ;;  %v3255_v12 = vmul.f32 %v3103_v62, %v405_v24 }
 0x1cb   :  { %5106 = vst [vmem:[#allocation45_spill] sm:$0xff] %v3148_v41  ;;  %v3258_v52 = vmul.f32 %v3106_v7, %v405_v24  ;;  %v3268_v40 = vmul.f32 %v3114_v23, %v3125_v28  ;;  %v3283_v0 = vmul.f32 %v3117_v31, %v3125_v28  ;;  %v3291_v51 = vmul.f32 %v3128_v60, %v3125_v28 }
 0x1cc   :  { %v463_v32 = vpop.permute.xlu0 %462  ;;  %v442_v56 = vsel %vm353_vm0, %v4955_v55, 0.0  ;;  %v377_v2 = vpop.permute.xlu1 %376  ;;  %v369_v19 = vsel %vm353_vm0, %v5117_v15, 0.0  ;;  %v3246_v15 = vmul.f32 %v3093_v63, %v405_v24  ;;  %5121 = vst [vmem:[#allocation58_spill] sm:$0xff] %v3255_v12  ;;  %v3264_v55 = vrot.slane %v3087_v43, %v629_v30 }
 0x1cd   :  { %v3194_v3 = vsel %vm472_vm9, %v463_v32, 0.0  ;;  %v3212_v32 = vrot.slane %v3087_v43, %v593_v37  ;;  %v3221_v16 = vmul.f32 %v3157_v38, %v442_v56  ;;  %v3231_v37 = vrot.slane %v2879_v11, %v641_v13  ;;  %5122 = vst [vmem:[#allocation59_spill] sm:$0xff] %v3258_v52  ;;  %5125 = vst [vmem:[#allocation62_spill] sm:$0xff] %v3268_v40 }
 0x1ce   :  { %5111 = vst [vmem:[#allocation50_spill] sm:$0xff] %v3194_v3  ;;  %v3252_v11 = vmul.f32 %v3099_v48, %v405_v24  ;;  %v3261_v54 = vmul.f32 %v3109_v17, %v369_v19  ;;  %5124 = vst [vmem:[#allocation61_spill] sm:$0xff] %v3264_v55  ;;  %v5126_v33 = vrot.slane %v3194_v3, 5  ;;  %v3276_v44 = vsel %vm382_vm7, 0.0, %v377_v2 }
 0x1cf   :  { %5116 = vst [vmem:[#allocation54_spill] sm:$0xff] %v3221_v16  ;;  %5127 = vst [vmem:[#allocation63_spill] sm:$0xff] %v3276_v44  ;;  %v3279_v24 = vrot.slane %v3087_v43, %v641_v13  ;;  %v3287_v30 = vmul.f32 %v3120_v27, %v3125_v28  ;;  %v3310_v13 = vmul.f32 %v3138_v57, %v442_v56  ;;  %v5140_v3 = vrot.slane %v3276_v44, 5 }
 0x1d0   :  { %5123 = vst [vmem:[#allocation60_spill] sm:$0xff] %v3261_v54  ;;  %v3273_v39 = vsel %vm353_vm0, %v5126_v33, 0.0  ;;  %5129 = vst [vmem:[#allocation65_spill] sm:$0xff] %v3283_v0  ;;  %v3295_v33 = vmul.f32 %v3131_v5, %v3125_v28  ;;  %v414_v2 = vpop.permute.xlu1 %413  ;;  %v333_v59 = vpop.permute.xlu0 %332  ;;  %v3324_v61 = vmul.f32 %v3144_v36, %v442_v56  ;;  %v3327_v52 = vmul.f32 %v3151_v42, %v442_v56 }
 0x1d1   :  { %5128 = vst [vmem:[#allocation64_spill] sm:$0xff] %v3279_v24  ;;  %5130 = vst [vmem:[#allocation66_spill] sm:$0xff] %v3287_v30  ;;  %v3305_v18 = vmul.f32 %v3191_v9, %v3273_v39  ;;  %v3313_v24 = vmul.f32 %v3141_v34, %v442_v56  ;;  %v3316_v55 = vsel %vm419_vm8, 0.0, %v414_v2  ;;  %v345_v40 = vsel %vm344_vm6, 0.0, %v333_v59 }
 0x1d2   :  { %5131 = vst [vmem:[#allocation67_spill] sm:$0xff] %v3291_v51  ;;  %5132 = vst [vmem:[#allocation68_spill] sm:$0xff] %v3295_v33  ;;  %v3331_v2 = vmul.f32 %v3154_v25, %v442_v56  ;;  %v406_v14 = vsel %vm353_vm0, %v5140_v3, 0.0  ;;  %v3338_v28 = vsub.s32 6, %v2833_v53  ;;  %v3343_v51 = vmul.f32 %v3114_v23, %v369_v19 }
 0x1d3   :  { %5133 = vst [vmem:[#allocation69_spill] sm:$0xff] %v3305_v18  ;;  %5134 = vst [vmem:[#allocation70_spill] sm:$0xff] %v3310_v13  ;;  %v3346_v59 = vmul.f32 %v3117_v31, %v369_v19  ;;  %v3349_v56 = vmul.f32 %v3120_v27, %v369_v19  ;;  %v3352_v3 = vmul.f32 %v3128_v60, %v369_v19  ;;  %v5147_v53 = vrot.slane %v3316_v55, 5 }
 0x1d4   :  { %5135 = vst [vmem:[#allocation71_spill] sm:$0xff] %v3313_v24  ;;  %5136 = vst [vmem:[#allocation72_spill] sm:$0xff] %v3316_v55  ;;  %v3355_v43 = vmul.f32 %v3131_v5, %v369_v19  ;;  %v467_v33 = vpop.permute.xlu1 %466  ;;  %v3366_v0 = vmul.f32 %v3170_v49, %v3273_v39  ;;  %v354_v41 = vrot.slane %v345_v40, 5  ;;  %v371_v30 = vpop.permute.xlu0 %370  ;;  %v3398_v44 = vmul.f32 %v3090_v50, %v406_v14 }
 0x1d5   :  { %5137 = vst [vmem:[#allocation73_spill] sm:$0xff] %v3324_v61  ;;  %5138 = vst [vmem:[#allocation74_spill] sm:$0xff] %v3327_v52  ;;  %v3360_v12 = vsel %vm353_vm0, %v5147_v53, 0.0  ;;  %v3381_v52 = vmul.f32 %v3182_v4, %v3273_v39  ;;  %v3385_v61 = vmul.f32 %v3185_v26, %v3273_v39  ;;  %v3388_v24 = vsel %vm472_vm9, %v467_v33, 0.0 }
 0x1d6   :  { %5139 = vst [vmem:[#allocation75_spill] sm:$0xff] %v3331_v2  ;;  %5141 = vst [vmem:[#allocation76_spill] sm:$0xff] %v3338_v28  ;;  %v3370_v28 = vmul.f32 %v3179_v21, %v3273_v39  ;;  %v3376_v53 = vmul.f32 %v3157_v38, %v3360_v12  ;;  %v3401_v33 = vmul.f32 %v3093_v63, %v406_v14  ;;  %v5156_v19 = vrot.slane %v3084_v22, 5 }
 0x1d7   :  { %5142 = vst [vmem:[#allocation77_spill] sm:$0xff] %v3343_v51  ;;  %5143 = vst [vmem:[#allocation78_spill] sm:$0xff] %v3346_v59  ;;  %v366_v2 = vsel %vm353_vm0, 0.0, %v354_v41  ;;  %v3411_v13 = vmul.f32 %v3096_v47, %v406_v14  ;;  %v3414_v54 = vmul.f32 %v3099_v48, %v406_v14 }
 0x1d8   :  { %5144 = vst [vmem:[#allocation79_spill] sm:$0xff] %v3349_v56  ;;  %5145 = vst [vmem:[#allocation80_spill] sm:$0xff] %v3352_v3  ;;  %v356_v55 = vsel %vm353_vm0, %v354_v41, %v5156_v19  ;;  %v3422_v41 = vmul.f32 %v3103_v62, %v406_v14  ;;  %v3425_v19 = vmul.f32 %v3106_v7, %v406_v14  ;;  %v383_v3 = vsel %vm382_vm7, 0.0, %v371_v30  ;;  %v408_v59 = vpop.permute.xlu0 %407 }
 0x1d9   :  { %5146 = vst [vmem:[#allocation81_spill] sm:$0xff] %v3355_v43  ;;  %5148 = vst [vmem:[#allocation82_spill] sm:$0xff] %v3366_v0  ;;  %v3418_v43 = vmul.f32 %v3188_v46, %v3273_v39  ;;  %v1623_v51 = vmul.f32 %v3131_v5, %v366_v2  ;;  %v3429_v16 = vmul.f32 %v3131_v5, %v356_v55  ;;  %v504_v39 = vpop.permute.xlu1 %503  ;;  %v5165_v14 = vrot.slane %v3388_v24, 5 }
 0x1da   :  { %5149 = vst [vmem:[#allocation83_spill] sm:$0xff] %v3370_v28  ;;  %5150 = vst [vmem:[#allocation84_spill] sm:$0xff] %v3376_v53  ;;  %v3432_v40 = vmul.f32 %v3109_v17, %v366_v2  ;;  %v3438_v18 = vmul.f32 %v3109_v17, %v356_v55  ;;  %v391_v22 = vrot.slane %v383_v3, 5  ;;  %v3449_v17 = vsel %vm509_vm10, %v504_v39, 0.0 }
 0x1db   :  { %5151 = vst [vmem:[#allocation85_spill] sm:$0xff] %v3381_v52  ;;  %5152 = vst [vmem:[#allocation86_spill] sm:$0xff] %v3385_v61  ;;  %v496_v56 = vsel %vm353_vm0, %v5165_v14, 0.0  ;;  %v1635_v52 = vrot.slane %v1623_v51, 5  ;;  %v4994_v30 = vrot.slane %v3429_v16, 5  ;;  %v3464_v28 = vsel %vm419_vm8, 0.0, %v408_v59 }
 0x1dc   :  { %5153 = vst [vmem:[#allocation87_spill] sm:$0xff] %v3388_v24  ;;  %5154 = vst [vmem:[#allocation88_spill] sm:$0xff] %v3398_v44  ;;  %v3453_v24 = vmul.f32 %v3138_v57, %v3360_v12  ;;  %v3461_v51 = vmul.f32 %v3191_v9, %v496_v56  ;;  %v906_v3 = vmul.f32 %v3117_v31, %v366_v2 }
 0x1dd   :  { %5155 = vst [vmem:[#allocation89_spill] sm:$0xff] %v3401_v33  ;;  %5157 = vst [vmem:[#allocation90_spill] sm:$0xff] %v3411_v13  ;;  %v3458_v14 = vsel %vm353_vm0, %v1635_v52, %v4994_v30  ;;  %v3468_v39 = vmul.f32 %v3117_v31, %v356_v55  ;;  %v3472_v61 = vmul.f32 %v3120_v27, %v356_v55  ;;  %v3500_v31 = vld [vmem:[%s4950_s6] ss:$0 sm:$0xff] }
 0x1de   :  { %5158 = vst [vmem:[#allocation91_spill] sm:$0xff] %v3414_v54  ;;  %5159 = vst [vmem:[#allocation92_spill] sm:$0xff] %v3418_v43  ;;  %v1145_v43 = vmul.f32 %v3120_v27, %v366_v2  ;;  %v3476_v52 = vmul.f32 %v3141_v34, %v3360_v12  ;;  %v3480_v30 = vmul.f32 %v3144_v36, %v3360_v12  ;;  %v5179_v27 = vrot.slane %v3135_v1, 5 }
 0x1df   :  { %5160 = vst [vmem:[#allocation93_spill] sm:$0xff] %v3422_v41  ;;  %5161 = vst [vmem:[#allocation94_spill] sm:$0xff] %v3425_v19  ;;  %v1384_v59 = vmul.f32 %v3128_v60, %v366_v2  ;;  %v3484_v5 = vmul.f32 %v3128_v60, %v356_v55  ;;  %v583_v19 = vmul.f32 %v3200_v45, %v366_v2  ;;  %v5014_v9 = vrot.slane %v3472_v61, 3 }
 0x1e0   :  { %5162 = vst [vmem:[#allocation95_spill] sm:$0xff] %v3429_v16  ;;  %5163 = vst [vmem:[#allocation96_spill] sm:$0xff] %v3432_v40  ;;  %v3488_v16 = vmul.f32 %v3151_v42, %v3360_v12  ;;  %v584_v60 = vmul.f32 %v3200_v45, %v356_v55  ;;  %v3504_v0 = vmul.f32 %v3114_v23, %v366_v2  ;;  %v1158_v13 = vrot.slane %v1145_v43, 3 }
 0x1e1   :  { %5164 = vst [vmem:[#allocation97_spill] sm:$0xff] %v3438_v18  ;;  %5166 = vst [vmem:[#allocation98_spill] sm:$0xff] %v3449_v17  ;;  %v3507_v41 = vmul.f32 %v3114_v23, %v356_v55  ;;  %v1397_v33 = vrot.slane %v1384_v59, 4  ;;  %v3520_v43 = vmul.f32 %v3170_v49, %v496_v56  ;;  %v403_v59 = vsel %vm353_vm0, 0.0, %v391_v22 }
 0x1e2   :  { %5167 = vst [vmem:[#allocation99_spill] sm:$0xff] %v3453_v24  ;;  %5168 = vst [vmem:[#allocation100_spill] sm:$0xff] %v3458_v14  ;;  %v3492_v14 = vmul.f32 %v3154_v25, %v3360_v12  ;;  %v919_v12 = vrot.slane %v906_v3, 2  ;;  %v587_v3 = vadd.f32 %v3500_v31, %v583_v19  ;;  %v588_v54 = vadd.f32 %v3500_v31, %v584_v60 }
 0x1e3   :  { %5169 = vst [vmem:[#allocation101_spill] sm:$0xff] %v3461_v51  ;;  %5170 = vst [vmem:[#allocation102_spill] sm:$0xff] %v3468_v39  ;;  %v393_v24 = vsel %vm353_vm0, %v391_v22, %v5179_v27  ;;  %v5180_v2 = vrot.slane %v3468_v39, 2  ;;  %v3536_v60 = vsel %vm1157_vm3, %v1158_v13, %v5014_v9  ;;  %v5183_v1 = vrot.slane %v3484_v5, 4 }
 0x1e4   :  { %5171 = vst [vmem:[#allocation103_spill] sm:$0xff] %v3472_v61  ;;  %5172 = vst [vmem:[#allocation104_spill] sm:$0xff] %v3480_v30  ;;  %v3546_v44 = vmul.f32 %v3179_v21, %v496_v56  ;;  %v703_v13 = vmul.f32 %v3090_v50, %v393_v24  ;;  %v5186_v9 = vrot.slane %v3449_v17, 5  ;;  %v3563_v22 = vmul.f32 %v3188_v46, %v496_v56 }
 0x1e5   :  { %5173 = vst [vmem:[#allocation105_spill] sm:$0xff] %v3484_v5  ;;  %5174 = vst [vmem:[#allocation106_spill] sm:$0xff] %v3488_v16  ;;  %v3531_v55 = vsel %vm918_vm2, %v919_v12, %v5180_v2  ;;  %v3541_v27 = vsel %vm1396_vm4, %v1397_v33, %v5183_v1  ;;  %v3549_v12 = vmul.f32 %v3182_v4, %v496_v56  ;;  %v428_v40 = vrot.slane %v3464_v28, 5 }
 0x1e6   :  { %5175 = vst [vmem:[#allocation107_spill] sm:$0xff] %v3492_v14  ;;  %5176 = vst [vmem:[#allocation108_spill] sm:$0xff] %v3504_v0  ;;  %v702_v2 = vmul.f32 %v3090_v50, %v403_v59  ;;  %v3556_v45 = vsel %vm353_vm0, %v5186_v9, 0.0  ;;  %v3560_v1 = vmul.f32 %v3185_v26, %v496_v56  ;;  %v941_v19 = vmul.f32 %v3093_v63, %v403_v59 }
 0x1e7   :  { %5177 = vst [vmem:[#allocation109_spill] sm:$0xff] %v3507_v41  ;;  %5178 = vst [vmem:[#allocation110_spill] sm:$0xff] %v3520_v43  ;;  %v942_v5 = vmul.f32 %v3093_v63, %v393_v24  ;;  %v1181_v53 = vmul.f32 %v3096_v47, %v393_v24  ;;  %v1419_v33 = vmul.f32 %v3099_v48, %v403_v59  ;;  %v440_v14 = vsel %vm353_vm0, 0.0, %v428_v40 }
 0x1e8   :  { %5181 = vst [vmem:[#allocation111_spill] sm:$0xff] %v3531_v55  ;;  %5182 = vst [vmem:[#allocation112_spill] sm:$0xff] %v3536_v60  ;;  %v1420_v60 = vmul.f32 %v3099_v48, %v393_v24  ;;  %v3575_v56 = vmul.f32 %v3237_v8, %v3556_v45  ;;  %v595_v18 = vmul.f32 %v3212_v32, %v403_v59  ;;  %v714_v39 = vrot.slane %v702_v2, 1 }
 0x1e9   :  { %5184 = vst [vmem:[#allocation113_spill] sm:$0xff] %v3541_v27  ;;  %5185 = vst [vmem:[#allocation114_spill] sm:$0xff] %v3546_v44  ;;  %v1180_v27 = vmul.f32 %v3096_v47, %v403_v59  ;;  %v596_v61 = vmul.f32 %v3212_v32, %v393_v24  ;;  %v715_v55 = vrot.slane %v703_v13, 1  ;;  %v953_v41 = vrot.slane %v941_v19, 2 }
 0x1ea   :  { %5187 = vst [vmem:[#allocation115_spill] sm:$0xff] %v3563_v22  ;;  %5188 = vst [vmem:[#allocation116_spill] sm:$0xff] %v3575_v56  ;;  %v954_v44 = vrot.slane %v942_v5, 2  ;;  %v1193_v17 = vrot.slane %v1181_v53, 3  ;;  %v1431_v8 = vrot.slane %v1419_v33, 4  ;;  %v1432_v56 = vrot.slane %v1420_v60, 4 }
 0x1eb   :  { %v1192_v43 = vrot.slane %v1180_v27, 3  ;;  %v1657_v16 = vmul.f32 %v3103_v62, %v403_v59  ;;  %v3585_v30 = vmul.f32 %v3103_v62, %v393_v24  ;;  %v599_v13 = vadd.f32 %v595_v18, %v587_v3 }
 0x1ec   :  { %v600_v0 = vadd.f32 %v596_v61, %v588_v54  ;;  %v3589_v28 = vsel %vm679_vm1, %v714_v39, %v715_v55  ;;  %v5190_v5 = vrot.slane %v3243_v58, 1  ;;  %v3597_v27 = vmul.f32 %v3106_v7, %v403_v59 }
 0x1ed   :  { %5189 = vst [vmem:[#allocation117_spill] sm:$0xff] %v3585_v30  ;;  %v5193_v60 = vrot.slane %v3160_v29, 5  ;;  %v1691_v33 = vmul.f32 %v3154_v25, %v440_v14  ;;  %v3604_v18 = vsel %vm918_vm2, %v953_v41, %v954_v44  ;;  %v5195_v61 = vrot.slane %v3246_v15, 2 }
 0x1ee   :  { %v3594_v53 = vsel %vm679_vm1, %v715_v55, %v5190_v5  ;;  %5192 = vst [vmem:[#allocation119_spill] sm:$0xff] %v3597_v27  ;;  %5194 = vst [vmem:[#allocation120_spill] sm:$0xff] %v3604_v18  ;;  %v3612_v58 = vsel %vm1157_vm3, %v1192_v43, %v1193_v17  ;;  %v3615_v39 = vmul.f32 %v3106_v7, %v393_v24  ;;  %v375_v55 = vpop.permute.xlu1 %374  ;;  %v5199_v29 = vrot.slane %v3249_v10, 3 }
 0x1ef   :  { %5191 = vst [vmem:[#allocation118_spill] sm:$0xff] %v3594_v53  ;;  %v430_v19 = vsel %vm353_vm0, %v428_v40, %v5193_v60  ;;  %v3609_v54 = vsel %vm918_vm2, %v954_v44, %v5195_v61  ;;  %5197 = vst [vmem:[#allocation122_spill] sm:$0xff] %v3612_v58  ;;  %v3623_v41 = vsel %vm1396_vm4, %v1431_v8, %v1432_v56  ;;  %v1669_v3 = vrot.slane %v1657_v16, 5  ;;  %v5209_v8 = vld [vmem:[#allocation57_spill] sm:$0xff] }
 0x1f0   :  { %5196 = vst [vmem:[#allocation121_spill] sm:$0xff] %v3609_v54  ;;  %5198 = vst [vmem:[#allocation123_spill] sm:$0xff] %v3615_v39  ;;  %v3620_v40 = vsel %vm1157_vm3, %v1193_v17, %v5199_v29  ;;  %v5033_v15 = vrot.slane %v3585_v30, 5  ;;  %v3627_v44 = vmul.f32 %v3154_v25, %v430_v19  ;;  %v1703_v43 = vrot.slane %v1691_v33, 5  ;;  %v5212_v54 = vld [vmem:[#allocation63_spill] sm:$0xff]  ;;  %v5289_v53 = vld [vmem:[#allocation41_spill] sm:$0xff] }
 0x1f1   :  { %5200 = vst [vmem:[#allocation124_spill] sm:$0xff] %v3620_v40  ;;  %5201 = vst [vmem:[#allocation125_spill] sm:$0xff] %v3623_v41  ;;  %v3630_v59 = vmul.f32 %v3157_v38, %v440_v14  ;;  %v3633_v24 = vmul.f32 %v3157_v38, %v430_v19  ;;  %v5205_v10 = vrot.slane %v3252_v11, 4  ;;  %v3643_v16 = vmul.f32 %v3215_v35, %v3556_v45 }
 0x1f2   :  { %5202 = vst [vmem:[#allocation126_spill] sm:$0xff] %v3627_v44  ;;  %v385_v5 = vsel %vm382_vm7, 0.0, %v375_v55  ;;  %v736_v33 = vmul.f32 %v3138_v57, %v440_v14  ;;  %v737_v61 = vmul.f32 %v3138_v57, %v430_v19  ;;  %v5038_v29 = vrot.slane %v3627_v44, 5 }
 0x1f3   :  { %5203 = vst [vmem:[#allocation127_spill] sm:$0xff] %v3630_v59  ;;  %5204 = vst [vmem:[#allocation128_spill] sm:$0xff] %v3633_v24  ;;  %v3638_v17 = vsel %vm1396_vm4, %v1432_v56, %v5205_v10  ;;  %v3653_v11 = vsel %vm353_vm0, %v1669_v3, %v5033_v15  ;;  %v3657_v56 = vmul.f32 %v3218_v20, %v3556_v45  ;;  %v394_v15 = vrot.slane %v385_v5, 5 }
 0x1f4   :  { %5206 = vst [vmem:[#allocation129_spill] sm:$0xff] %v3638_v17  ;;  %5207 = vst [vmem:[#allocation130_spill] sm:$0xff] %v3653_v11  ;;  %v3661_v55 = vmul.f32 %v3228_v6, %v3556_v45  ;;  %v3665_v10 = vmul.f32 %v3231_v37, %v3556_v45  ;;  %v975_v9 = vmul.f32 %v3141_v34, %v440_v14  ;;  %v748_v22 = vrot.slane %v736_v33, 1 }
 0x1f5   :  { %v976_v2 = vmul.f32 %v3141_v34, %v430_v19  ;;  %v3672_v3 = vsel %vm353_vm0, %v1703_v43, %v5038_v29  ;;  %v607_v60 = vmul.f32 %v5209_v8, %v440_v14  ;;  %v608_v30 = vmul.f32 %v5209_v8, %v430_v19  ;;  %v5210_v29 = vld [vmem:[#allocation55_spill] sm:$0xff] }
 0x1f6   :  { %5208 = vst [vmem:[#allocation131_spill] sm:$0xff] %v3672_v3  ;;  %v1214_v11 = vmul.f32 %v3144_v36, %v440_v14  ;;  %v1215_v17 = vmul.f32 %v3144_v36, %v430_v19  ;;  %v749_v51 = vrot.slane %v737_v61, 1  ;;  %v1453_v41 = vmul.f32 %v3151_v42, %v440_v14 }
 0x1f7   :  { %v1454_v40 = vmul.f32 %v3151_v42, %v430_v19  ;;  %v3685_v3 = vmul.f32 %v5210_v29, %v3556_v45  ;;  %v987_v27 = vrot.slane %v975_v9, 2  ;;  %v988_v58 = vrot.slane %v976_v2, 2 }
 0x1f8   :  { %v5213_v24 = vrot.slane %v5212_v54, 5  ;;  %v404_v14 = vsel %vm353_vm0, 0.0, %v394_v15  ;;  %v611_v61 = vadd.f32 %v607_v60, %v599_v13  ;;  %v1226_v44 = vrot.slane %v1214_v11, 3 }
 0x1f9   :  { %5211 = vst [vmem:[#allocation57_spill] sm:$0xff] %v3685_v3  ;;  %v1227_v39 = vrot.slane %v1215_v17, 3  ;;  %v612_v43 = vadd.f32 %v608_v30, %v600_v0  ;;  %v3693_v5 = vsel %vm679_vm1, %v748_v22, %v749_v51  ;;  %v1465_v18 = vrot.slane %v1453_v41, 4  ;;  %v461_v3 = vpop.permute.xlu0 %460 }
 0x1fa   :  { %v396_v33 = vsel %vm353_vm0, %v394_v15, %v5213_v24  ;;  %v1466_v45 = vrot.slane %v1454_v40, 4  ;;  %v705_v9 = vmul.f32 %v3090_v50, %v404_v14  ;;  %v944_v54 = vmul.f32 %v3093_v63, %v404_v14  ;;  %v5214_v24 = vld [vmem:[#allocation70_spill] sm:$0xff]  ;;  %v5218_v40 = vld [vmem:[#allocation71_spill] sm:$0xff] }
 0x1fb   :  { %v706_v2 = vmul.f32 %v3090_v50, %v396_v33  ;;  %v945_v15 = vmul.f32 %v3093_v63, %v396_v33  ;;  %v5215_v19 = vrot.slane %v5214_v24, 1  ;;  %v3705_v0 = vsel %vm918_vm2, %v987_v27, %v988_v58  ;;  %v5222_v63 = vld [vmem:[#allocation73_spill] sm:$0xff] }
 0x1fc   :  { %5217 = vst [vmem:[#allocation70_spill] sm:$0xff] %v3705_v0  ;;  %v1183_v30 = vmul.f32 %v3096_v47, %v404_v14  ;;  %v1184_v22 = vmul.f32 %v3096_v47, %v396_v33  ;;  %v5219_v41 = vrot.slane %v5218_v40, 2  ;;  %v3715_v17 = vsel %vm1157_vm3, %v1226_v44, %v1227_v39  ;;  %v5255_v0 = vld [vmem:[#allocation72_spill] sm:$0xff] }
 0x1fd   :  { %v3702_v13 = vsel %vm679_vm1, %v749_v51, %v5215_v19  ;;  %5221 = vst [vmem:[#allocation132_spill] sm:$0xff] %v3715_v17  ;;  %v5223_v60 = vrot.slane %v5222_v63, 3  ;;  %v473_v27 = vsel %vm472_vm9, %v461_v3, 0.0  ;;  %v3724_v11 = vsel %vm1396_vm4, %v1465_v18, %v1466_v45  ;;  %v5226_v19 = vld [vmem:[#allocation74_spill] sm:$0xff] }
 0x1fe   :  { %5216 = vst [vmem:[#allocation63_spill] sm:$0xff] %v3702_v13  ;;  %v3712_v50 = vsel %vm918_vm2, %v988_v58, %v5219_v41  ;;  %5225 = vst [vmem:[#allocation133_spill] sm:$0xff] %v3724_v11  ;;  %v5227_v47 = vrot.slane %v5226_v19, 4  ;;  %v1422_v58 = vmul.f32 %v3099_v48, %v404_v14  ;;  %v1423_v44 = vmul.f32 %v3099_v48, %v396_v33 }
 0x1ff   :  { %5220 = vst [vmem:[#allocation71_spill] sm:$0xff] %v3712_v50  ;;  %v3720_v51 = vsel %vm1157_vm3, %v1227_v39, %v5223_v60  ;;  %v719_v40 = vrot.slane %v705_v9, 1  ;;  %v720_v41 = vrot.slane %v706_v2, 1  ;;  %v958_v63 = vrot.slane %v944_v54, 2  ;;  %v412_v39 = vpop.permute.xlu1 %411 }
 0x200   :  { %5224 = vst [vmem:[#allocation73_spill] sm:$0xff] %v3720_v51  ;;  %v3729_v24 = vsel %vm1396_vm4, %v1466_v45, %v5227_v47  ;;  %v959_v17 = vrot.slane %v945_v15, 2  ;;  %v1197_v3 = vrot.slane %v1183_v30, 3  ;;  %v1198_v51 = vrot.slane %v1184_v22, 3  ;;  %v5229_v45 = vld [vmem:[#allocation47_spill] sm:$0xff]  ;;  %v5231_v22 = vld [vmem:[#allocation88_spill] sm:$0xff] }
 0x201   :  { %5228 = vst [vmem:[#allocation74_spill] sm:$0xff] %v3729_v24  ;;  %v481_v18 = vrot.slane %v473_v27, 5  ;;  %v1660_v11 = vmul.f32 %v3103_v62, %v404_v14  ;;  %v1661_v19 = vmul.f32 %v3103_v62, %v396_v33  ;;  %v623_v47 = vadd.f32 %v5229_v45, %v611_v61  ;;  %v5230_v24 = vld [vmem:[#allocation48_spill] sm:$0xff]  ;;  %v5233_v61 = vld [vmem:[#allocation89_spill] sm:$0xff] }
 0x202   :  { %v624_v50 = vadd.f32 %v5230_v24, %v612_v43  ;;  %v3739_v48 = vmul.f32 %v3212_v32, %v404_v14  ;;  %v1436_v9 = vrot.slane %v1422_v58, 4  ;;  %v1437_v2 = vrot.slane %v1423_v44, 4 }
 0x203   :  { %v422_v54 = vsel %vm419_vm8, 0.0, %v412_v39  ;;  %v3743_v15 = vmul.f32 %v3212_v32, %v396_v33  ;;  %v3746_v30 = vsel %vm679_vm1, %v719_v40, %v720_v41  ;;  %v5232_v27 = vrot.slane %v5231_v22, 1  ;;  %v5237_v32 = vld [vmem:[#allocation50_spill] sm:$0xff] }
 0x204   :  { %v3754_v43 = vsel %vm918_vm2, %v958_v63, %v959_v17  ;;  %v5234_v24 = vrot.slane %v5233_v61, 2  ;;  %v3762_v44 = vsel %vm1157_vm3, %v1197_v3, %v1198_v51  ;;  %v5238_v39 = vrot.slane %v5237_v32, 5  ;;  %v5243_v61 = vld [vmem:[#allocation90_spill] sm:$0xff] }
 0x205   :  { %v3751_v62 = vsel %vm679_vm1, %v720_v41, %v5232_v27  ;;  %5236 = vst [vmem:[#allocation48_spill] sm:$0xff] %v3762_v44  ;;  %v3770_v45 = vsel %vm353_vm0, 0.0, %v481_v18  ;;  %v337_v41 = vpop.permute.xlu0 %336  ;;  %v1674_v22 = vrot.slane %v1660_v11, 5  ;;  %v1675_v63 = vrot.slane %v1661_v19, 5 }
 0x206   :  { %v3759_v58 = vsel %vm918_vm2, %v959_v17, %v5234_v24  ;;  %v3767_v40 = vsel %vm353_vm0, %v481_v18, %v5238_v39  ;;  %5240 = vst [vmem:[#allocation89_spill] sm:$0xff] %v3770_v45  ;;  %v3773_v27 = vmul.f32 %v3106_v7, %v404_v14  ;;  %v3776_v17 = vmul.f32 %v3106_v7, %v396_v33  ;;  %v5247_v39 = vld [vmem:[#allocation91_spill] sm:$0xff]  ;;  %v5250_v14 = vld [vmem:[#allocation61_spill] sm:$0xff] }
 0x207   :  { %5235 = vst [vmem:[#allocation47_spill] sm:$0xff] %v3759_v58  ;;  %5239 = vst [vmem:[#allocation88_spill] sm:$0xff] %v3767_v40  ;;  %v5244_v3 = vrot.slane %v5243_v61, 3  ;;  %v3784_v32 = vsel %vm1396_vm4, %v1436_v9, %v1437_v2  ;;  %v5248_v18 = vrot.slane %v5247_v39, 4  ;;  %v431_v11 = vrot.slane %v422_v54, 5  ;;  %v5252_v39 = vld [vmem:[#allocation93_spill] sm:$0xff] }
 0x208   :  { %5241 = vst [vmem:[#allocation50_spill] sm:$0xff] %v3773_v27  ;;  %5242 = vst [vmem:[#allocation134_spill] sm:$0xff] %v3776_v17  ;;  %v631_v19 = vmul.f32 %v5250_v14, %v3770_v45  ;;  %v632_v7 = vmul.f32 %v5250_v14, %v3767_v40  ;;  %v804_v33 = vmul.f32 %v3170_v49, %v3770_v45  ;;  %v5256_v44 = vrot.slane %v5255_v0, 5 }
 0x209   :  { %v3781_v24 = vsel %vm1157_vm3, %v1198_v51, %v5244_v3  ;;  %5246 = vst [vmem:[#allocation135_spill] sm:$0xff] %v3784_v32  ;;  %v3789_v60 = vsel %vm1396_vm4, %v1437_v2, %v5248_v18  ;;  %v347_v51 = vsel %vm344_vm6, 0.0, %v337_v41  ;;  %v805_v9 = vmul.f32 %v3170_v49, %v3767_v40 }
 0x20a   :  { %5245 = vst [vmem:[#allocation90_spill] sm:$0xff] %v3781_v24  ;;  %5249 = vst [vmem:[#allocation91_spill] sm:$0xff] %v3789_v60  ;;  %v1043_v61 = vmul.f32 %v3179_v21, %v3770_v45  ;;  %v1044_v2 = vmul.f32 %v3179_v21, %v3767_v40  ;;  %v1282_v54 = vmul.f32 %v3182_v4, %v3770_v45  ;;  %v5253_v18 = vrot.slane %v5252_v39, 5 }
 0x20b   :  { %v3807_v3 = vsel %vm353_vm0, %v1674_v22, %v1675_v63  ;;  %v1283_v32 = vmul.f32 %v3182_v4, %v3767_v40  ;;  %v1521_v24 = vmul.f32 %v3185_v26, %v3770_v45  ;;  %v433_v22 = vsel %vm353_vm0, %v431_v11, %v5256_v44 }
 0x20c   :  { %5251 = vst [vmem:[#allocation61_spill] sm:$0xff] %v3807_v3  ;;  %v3812_v60 = vsel %vm353_vm0, %v1675_v63, %v5253_v18  ;;  %v441_v3 = vsel %vm353_vm0, 0.0, %v431_v11  ;;  %v3824_v39 = vadd.f32 %v631_v19, %v623_v47  ;;  %v3826_v63 = vadd.f32 %v632_v7, %v624_v50 }
 0x20d   :  { %5254 = vst [vmem:[#allocation93_spill] sm:$0xff] %v3812_v60  ;;  %v816_v18 = vrot.slane %v804_v33, 1  ;;  %v1522_v41 = vmul.f32 %v3185_v26, %v3767_v40  ;;  %v817_v59 = vrot.slane %v805_v9, 1  ;;  %v1055_v60 = vrot.slane %v1043_v61, 2 }
 0x20e   :  { %v1056_v27 = vrot.slane %v1044_v2, 2  ;;  %v1294_v17 = vrot.slane %v1282_v54, 3  ;;  %v1759_v13 = vmul.f32 %v3188_v46, %v3770_v45  ;;  %v3834_v0 = vmul.f32 %v3188_v46, %v3767_v40  ;;  %v5261_v45 = vld [vmem:[#allocation82_spill] sm:$0xff] }
 0x20f   :  { %v1694_v47 = vmul.f32 %v3154_v25, %v441_v3  ;;  %v3838_v50 = vmul.f32 %v3154_v25, %v433_v22  ;;  %v1295_v44 = vrot.slane %v1283_v32, 3  ;;  %v1533_v11 = vrot.slane %v1521_v24, 4 }
 0x210   :  { %5257 = vst [vmem:[#allocation72_spill] sm:$0xff] %v3834_v0  ;;  %v3841_v19 = vmul.f32 %v3157_v38, %v441_v3  ;;  %v3844_v7 = vmul.f32 %v3157_v38, %v433_v22  ;;  %v1534_v33 = vrot.slane %v1522_v41, 4  ;;  %v357_v2 = vrot.slane %v347_v51, 5 }
 0x211   :  { %v1708_v9 = vrot.slane %v1694_v47, 5  ;;  %v5048_v61 = vrot.slane %v3838_v50, 5  ;;  %v3848_v54 = vsel %vm679_vm1, %v816_v18, %v817_v59  ;;  %v5262_v40 = vrot.slane %v5261_v45, 1  ;;  %v5266_v18 = vld [vmem:[#allocation83_spill] sm:$0xff]  ;;  %v5270_v47 = vld [vmem:[#allocation85_spill] sm:$0xff] }
 0x212   :  { %5258 = vst [vmem:[#allocation136_spill] sm:$0xff] %v3841_v19  ;;  %5259 = vst [vmem:[#allocation137_spill] sm:$0xff] %v3844_v7  ;;  %v739_v24 = vmul.f32 %v3138_v57, %v441_v3  ;;  %v740_v32 = vmul.f32 %v3138_v57, %v433_v22  ;;  %v3858_v38 = vsel %vm918_vm2, %v1055_v60, %v1056_v27  ;;  %v1771_v41 = vrot.slane %v1759_v13, 5 }
 0x213   :  { %5260 = vst [vmem:[#allocation138_spill] sm:$0xff] %v3848_v54  ;;  %v3853_v25 = vsel %vm679_vm1, %v817_v59, %v5262_v40  ;;  %5264 = vst [vmem:[#allocation139_spill] sm:$0xff] %v3858_v38  ;;  %v3864_v51 = vsel %vm353_vm0, %v1708_v9, %v5048_v61  ;;  %v5267_v45 = vrot.slane %v5266_v18, 2  ;;  %v978_v40 = vmul.f32 %v3141_v34, %v441_v3  ;;  %v5274_v18 = vld [vmem:[#allocation46_spill] sm:$0xff] }
 0x214   :  { %5263 = vst [vmem:[#allocation82_spill] sm:$0xff] %v3853_v25  ;;  %5265 = vst [vmem:[#allocation140_spill] sm:$0xff] %v3864_v51  ;;  %v979_v57 = vmul.f32 %v3141_v34, %v433_v22  ;;  %v367_v60 = vsel %vm353_vm0, 0.0, %v357_v2  ;;  %v3875_v13 = vsel %vm1157_vm3, %v1294_v17, %v1295_v44  ;;  %v5271_v7 = vrot.slane %v5270_v47, 3  ;;  %v5276_v61 = vld [vmem:[#allocation86_spill] sm:$0xff]  ;;  %v465_v47 = vpop.permute.xlu1 %464 }
 0x215   :  { %v3869_v59 = vsel %vm918_vm2, %v1056_v27, %v5267_v45  ;;  %5269 = vst [vmem:[#allocation141_spill] sm:$0xff] %v3875_v13  ;;  %v3883_v9 = vsel %vm1396_vm4, %v1533_v11, %v1534_v33  ;;  %v5275_v27 = vrot.slane %v5274_v18, 5  ;;  %v5277_v51 = vrot.slane %v5276_v61, 4  ;;  %v5290_v54 = vld [vmem:[#allocation42_spill] sm:$0xff] }
 0x216   :  { %5268 = vst [vmem:[#allocation83_spill] sm:$0xff] %v3869_v59  ;;  %v3880_v38 = vsel %vm1157_vm3, %v1295_v44, %v5271_v7  ;;  %5273 = vst [vmem:[#allocation142_spill] sm:$0xff] %v3883_v9  ;;  %v609_v17 = vmul.f32 %v5209_v8, %v441_v3  ;;  %v753_v13 = vrot.slane %v739_v24, 1  ;;  %v754_v59 = vrot.slane %v740_v32, 1  ;;  %v5282_v32 = vld [vmem:[#allocation44_spill] sm:$0xff] }
 0x217   :  { %5272 = vst [vmem:[#allocation85_spill] sm:$0xff] %v3880_v38  ;;  %v359_v45 = vsel %vm353_vm0, %v357_v2, %v5275_v27  ;;  %v3891_v34 = vsel %vm1396_vm4, %v1534_v33, %v5277_v51  ;;  %v5279_v44 = vrot.slane %v3834_v0, 5  ;;  %v610_v11 = vmul.f32 %v5209_v8, %v433_v22  ;;  %v5281_v2 = vld [vmem:[#allocation51_spill] sm:$0xff] }
 0x218   :  { %5278 = vst [vmem:[#allocation46_spill] sm:$0xff] %v3891_v34  ;;  %v1217_v18 = vmul.f32 %v3144_v36, %v441_v3  ;;  %v585_v27 = vmul.f32 %v5281_v2, %v367_v60  ;;  %v992_v61 = vrot.slane %v978_v40, 2  ;;  %v993_v9 = vrot.slane %v979_v57, 2  ;;  %v5284_v40 = vld [vmem:[#allocation40_spill] sm:$0xff] }
 0x219   :  { %v3897_v7 = vsel %vm353_vm0, %v1771_v41, %v5279_v44  ;;  %v1218_v33 = vmul.f32 %v3144_v36, %v433_v22  ;;  %v586_v51 = vmul.f32 %v5281_v2, %v359_v45  ;;  %v1456_v24 = vmul.f32 %v3151_v42, %v441_v3  ;;  %v5287_v2 = vld [vmem:[#allocation99_spill] sm:$0xff] }
 0x21a   :  { %5280 = vst [vmem:[#allocation86_spill] sm:$0xff] %v3897_v7  ;;  %v1626_v34 = vmul.f32 %v5282_v32, %v367_v60  ;;  %v3907_v0 = vmul.f32 %v5282_v32, %v359_v45  ;;  %v475_v41 = vsel %vm472_vm9, %v465_v47, 0.0  ;;  %v3911_v8 = vsel %vm679_vm1, %v753_v13, %v754_v59 }
 0x21b   :  { %v1457_v44 = vmul.f32 %v3151_v42, %v433_v22  ;;  %v3915_v57 = vmul.f32 %v5284_v40, %v367_v60  ;;  %v3918_v36 = vmul.f32 %v5284_v40, %v359_v45  ;;  %v5288_v3 = vrot.slane %v5287_v2, 1 }
 0x21c   :  { %5283 = vst [vmem:[#allocation51_spill] sm:$0xff] %v3907_v0  ;;  %v589_v32 = vadd.f32 %v3500_v31, %v585_v27  ;;  %v1640_v38 = vrot.slane %v1626_v34, 5  ;;  %v5050_v47 = vrot.slane %v3907_v0, 5  ;;  %v1231_v13 = vrot.slane %v1217_v18, 3 }
 0x21d   :  { %5285 = vst [vmem:[#allocation44_spill] sm:$0xff] %v3915_v57  ;;  %5286 = vst [vmem:[#allocation40_spill] sm:$0xff] %v3918_v36  ;;  %v3923_v7 = vsel %vm679_vm1, %v754_v59, %v5288_v3  ;;  %v1232_v25 = vrot.slane %v1218_v33, 3  ;;  %v590_v42 = vadd.f32 %v3500_v31, %v586_v51  ;;  %v484_v22 = vrot.slane %v475_v41, 5  ;;  %v5292_v31 = vld [vmem:[#allocation43_spill] sm:$0xff] }
 0x21e   :  { %v909_v58 = vmul.f32 %v5289_v53, %v367_v60  ;;  %v3930_v40 = vmul.f32 %v5289_v53, %v359_v45  ;;  %v1148_v2 = vmul.f32 %v5290_v54, %v367_v60  ;;  %v3936_v59 = vsel %vm353_vm0, %v1640_v38, %v5050_v47 }
 0x21f   :  { %5291 = vst [vmem:[#allocation99_spill] sm:$0xff] %v3936_v59  ;;  %v3939_v34 = vsel %vm918_vm2, %v992_v61, %v993_v9  ;;  %v3942_v18 = vmul.f32 %v5290_v54, %v359_v45  ;;  %v1387_v27 = vmul.f32 %v5292_v31, %v367_v60  ;;  %v3946_v33 = vmul.f32 %v5292_v31, %v359_v45 }
 0x220   :  { %v5294_v53 = vrot.slane %v3476_v52, 2  ;;  %v1470_v41 = vrot.slane %v1456_v24, 4  ;;  %v1471_v3 = vrot.slane %v1457_v44, 4  ;;  %v601_v38 = vadd.f32 %v3739_v48, %v589_v32  ;;  %v498_v44 = vpop.permute.xlu0 %497  ;;  %v5306_v48 = vld [vmem:[#allocation106_spill] sm:$0xff] }
 0x221   :  { %5293 = vst [vmem:[#allocation41_spill] sm:$0xff] %v3946_v33  ;;  %v3955_v61 = vsel %vm1157_vm3, %v1231_v13, %v1232_v25  ;;  %v602_v54 = vadd.f32 %v3743_v15, %v590_v42  ;;  %v3959_v47 = vmul.f32 %v3114_v23, %v367_v60  ;;  %v3962_v31 = vmul.f32 %v3114_v23, %v359_v45  ;;  %v5298_v15 = vld [vmem:[#allocation87_spill] sm:$0xff]  ;;  %v502_v23 = vpop.permute.xlu1 %501  ;;  %v3975_v45 = vpop.f32.mrb[0].mxu0 }
 0x222   :  { %v3951_v51 = vsel %vm918_vm2, %v993_v9, %v5294_v53  ;;  %5296 = vst [vmem:[#allocation43_spill] sm:$0xff] %v3955_v61  ;;  %v924_v59 = vrot.slane %v909_v58, 2  ;;  %v1163_v9 = vrot.slane %v1148_v2, 3  ;;  %v3966_v24 = vsel %vm353_vm0, 0.0, %v484_v22  ;;  %5301 = vst [vmem:[#allocation144_spill] sm:$0xff] %v3975_v45  ;;  %v5302_v58 = vld [vmem:[#allocation104_spill] sm:$0xff] }
 0x223   :  { %5295 = vst [vmem:[#allocation42_spill] sm:$0xff] %v3951_v51  ;;  %5297 = vst [vmem:[#allocation143_spill] sm:$0xff] %v3966_v24  ;;  %v1402_v32 = vrot.slane %v1387_v27, 4  ;;  %v5299_v42 = vrot.slane %v5298_v15, 5  ;;  %v5303_v53 = vrot.slane %v5302_v58, 3  ;;  %v3983_v52 = vsel %vm1396_vm4, %v1470_v41, %v1471_v3 }
 0x224   :  { %5305 = vst [vmem:[#allocation145_spill] sm:$0xff] %v3983_v52  ;;  %v5307_v27 = vrot.slane %v5306_v48, 4  ;;  %v613_v15 = vadd.f32 %v609_v17, %v601_v38  ;;  %v807_v45 = vmul.f32 %v3170_v49, %v3966_v24  ;;  %v3994_v58 = vsel %vm509_vm10, %v498_v44, 0.0 }
 0x225   :  { %v3973_v60 = vsel %vm353_vm0, %v484_v22, %v5299_v42  ;;  %v3980_v2 = vsel %vm1157_vm3, %v1232_v25, %v5303_v53  ;;  %v614_v42 = vadd.f32 %v610_v11, %v602_v54  ;;  %v5309_v25 = vld [vmem:[#allocation107_spill] sm:$0xff]  ;;  %v5311_v41 = vrot.slane %v3838_v50, 5 }
 0x226   :  { %5300 = vst [vmem:[#allocation87_spill] sm:$0xff] %v3973_v60  ;;  %5304 = vst [vmem:[#allocation104_spill] sm:$0xff] %v3980_v2  ;;  %v3988_v13 = vsel %vm1396_vm4, %v1471_v3, %v5307_v27  ;;  %v5310_v53 = vrot.slane %v5309_v25, 5  ;;  %v808_v17 = vmul.f32 %v3170_v49, %v3973_v60  ;;  %v512_v11 = vsel %vm509_vm10, %v502_v23, 0.0  ;;  %v5318_v49 = vld [vmem:[#allocation52_spill] sm:$0xff] }
 0x227   :  { %5308 = vst [vmem:[#allocation106_spill] sm:$0xff] %v3988_v13  ;;  %v5313_v54 = vrot.slane %v3930_v40, 2  ;;  %v5314_v48 = vrot.slane %v3942_v18, 3  ;;  %v5316_v27 = vrot.slane %v3946_v33, 4  ;;  %v633_v23 = vmul.f32 %v5250_v14, %v3966_v24 }
 0x228   :  { %v4001_v52 = vsel %vm353_vm0, %v5311_v41, %v5310_v53  ;;  %v625_v53 = vadd.f32 %v5318_v49, %v613_v15  ;;  %v1046_v41 = vmul.f32 %v3179_v21, %v3966_v24  ;;  %v1524_v15 = vmul.f32 %v3185_v26, %v3966_v24 }
 0x229   :  { %5312 = vst [vmem:[#allocation107_spill] sm:$0xff] %v4001_v52  ;;  %v4011_v44 = vsel %vm918_vm2, %v924_v59, %v5313_v54  ;;  %v4016_v50 = vsel %vm1157_vm3, %v1163_v9, %v5314_v48  ;;  %v4021_v25 = vsel %vm1396_vm4, %v1402_v32, %v5316_v27  ;;  %v1047_v59 = vmul.f32 %v3179_v21, %v3973_v60  ;;  %v5319_v54 = vld [vmem:[#allocation53_spill] sm:$0xff] }
 0x22a   :  { %5315 = vst [vmem:[#allocation146_spill] sm:$0xff] %v4016_v50  ;;  %5317 = vst [vmem:[#allocation147_spill] sm:$0xff] %v4021_v25  ;;  %v626_v22 = vadd.f32 %v5319_v54, %v614_v42  ;;  %v821_v9 = vrot.slane %v807_v45, 1  ;;  %v1285_v48 = vmul.f32 %v3182_v4, %v3966_v24  ;;  %v1286_v32 = vmul.f32 %v3182_v4, %v3973_v60  ;;  %v500_v25 = vpop.permute.xlu0 %499 }
 0x22b   :  { %v822_v27 = vrot.slane %v808_v17, 1  ;;  %v1525_v49 = vmul.f32 %v3185_v26, %v3973_v60  ;;  %v634_v21 = vmul.f32 %v5250_v14, %v3973_v60  ;;  %v1762_v45 = vmul.f32 %v3188_v46, %v3966_v24 }
 0x22c   :  { %v4046_v42 = vmul.f32 %v3188_v46, %v3973_v60  ;;  %v521_v4 = vrot.slane %v512_v11, 5  ;;  %v1060_v38 = vrot.slane %v1046_v41, 2  ;;  %v1061_v52 = vrot.slane %v1047_v59, 2  ;;  %v5323_v41 = vld [vmem:[#allocation98_spill] sm:$0xff] }
 0x22d   :  { %v637_v26 = vadd.f32 %v633_v23, %v625_v53  ;;  %v638_v19 = vadd.f32 %v634_v21, %v626_v22  ;;  %v1299_v3 = vrot.slane %v1285_v48, 3  ;;  %v1300_v13 = vrot.slane %v1286_v32, 3  ;;  %v5327_v23 = vld [vmem:[#allocation110_spill] sm:$0xff] }
 0x22e   :  { %5320 = vst [vmem:[#allocation52_spill] sm:$0xff] %v4046_v42  ;;  %v4051_v14 = vsel %vm679_vm1, %v821_v9, %v822_v27  ;;  %v1538_v24 = vrot.slane %v1524_v15, 4  ;;  %v1539_v2 = vrot.slane %v1525_v49, 4  ;;  %v5321_v46 = vrot.slane %v3994_v58, 5  ;;  %v5330_v15 = vld [vmem:[#allocation114_spill] sm:$0xff] }
 0x22f   :  { %v1776_v17 = vrot.slane %v1762_v45, 5  ;;  %v5053_v54 = vrot.slane %v4046_v42, 5  ;;  %v5324_v59 = vrot.slane %v5323_v41, 5  ;;  %v4065_v53 = vsel %vm353_vm0, 0.0, %v521_v4 }
 0x230   :  { %v4056_v11 = vsel %vm353_vm0, 0.0, %v5321_v46  ;;  %5326 = vst [vmem:[#allocation148_spill] sm:$0xff] %v4065_v53  ;;  %v5328_v9 = vrot.slane %v5327_v23, 1  ;;  %v4073_v32 = vsel %vm918_vm2, %v1060_v38, %v1061_v52  ;;  %v5331_v49 = vrot.slane %v5330_v15, 2  ;;  %v2534_v38 = vld [vmem:[#allocation8] sm:$0x7f] }
 0x231   :  { %5322 = vst [vmem:[#allocation53_spill] sm:$0xff] %v4056_v11  ;;  %v4062_v22 = vsel %vm353_vm0, %v521_v4, %v5324_v59  ;;  %5329 = vst [vmem:[#allocation110_spill] sm:$0xff] %v4073_v32  ;;  %v511_v45 = vsel %vm509_vm10, %v500_v25, 0.0  ;;  %v4082_v46 = vsel %vm1157_vm3, %v1299_v3, %v1300_v13  ;;  %v5334_v4 = vrot.slane %v3549_v12, 3  ;;  %v5337_v23 = vld [vmem:[#allocation76_spill] sm:$0xff]  ;;  %v4108_v15 = vpop.f32.mrb[1].mxu0 }
 0x232   :  { %5325 = vst [vmem:[#allocation98_spill] sm:$0xff] %v4062_v22  ;;  %v4070_v48 = vsel %vm679_vm1, %v822_v27, %v5328_v9  ;;  %v4078_v21 = vsel %vm918_vm2, %v1061_v52, %v5331_v49  ;;  %5333 = vst [vmem:[#allocation149_spill] sm:$0xff] %v4082_v46  ;;  %v5336_v27 = vld [vmem:[#allocation64_spill] sm:$0xff]  ;;  %v4092_v9 = vrot.slane %v2534_v38, %v5337_v23  ;;  %v5339_v25 = vrot.slane %v3560_v1, 4 }
 0x233   :  { %5332 = vst [vmem:[#allocation114_spill] sm:$0xff] %v4078_v21  ;;  %v4087_v41 = vsel %vm1157_vm3, %v1300_v13, %v5334_v4  ;;  %v643_v59 = vmul.f32 %v5336_v27, %v4056_v11  ;;  %v4095_v52 = vsel %vm1396_vm4, %v1538_v24, %v1539_v2  ;;  %v841_v12 = vmul.f32 %v3215_v35, %v4065_v53  ;;  %v4121_v4 = vpop.f32.mrb[2].mxu0  ;;  %v5348_v46 = vld [vmem:[#allocation56_spill] sm:$0xff] }
 0x234   :  { %5335 = vst [vmem:[#allocation150_spill] sm:$0xff] %v4087_v41  ;;  %5338 = vst [vmem:[#allocation64_spill] sm:$0xff] %v4095_v52  ;;  %v4100_v3 = vsel %vm1396_vm4, %v1539_v2, %v5339_v25  ;;  %v4106_v13 = vmul.f32 %v3215_v35, %v4062_v22  ;;  %v4113_v24 = vsel %vm353_vm0, %v1776_v17, %v5053_v54  ;;  %v519_v49 = vrot.slane %v511_v45, 5 }
 0x235   :  { %5340 = vst [vmem:[#allocation76_spill] sm:$0xff] %v4100_v3  ;;  %5341 = vst [vmem:[#allocation151_spill] sm:$0xff] %v4108_v15  ;;  %v4117_v1 = vmul.f32 %v3215_v35, %v4056_v11  ;;  %v1080_v2 = vmul.f32 %v3218_v20, %v4065_v53  ;;  %v4125_v38 = vmul.f32 %v3218_v20, %v4056_v11  ;;  %v4137_v15 = vpop.f32.mrb[3].mxu0 }
 0x236   :  { %5342 = vst [vmem:[#allocation152_spill] sm:$0xff] %v4113_v24  ;;  %5343 = vst [vmem:[#allocation153_spill] sm:$0xff] %v4121_v4  ;;  %v4129_v25 = vmul.f32 %v3218_v20, %v4062_v22  ;;  %v1319_v17 = vmul.f32 %v3228_v6, %v4065_v53  ;;  %v4135_v54 = vmul.f32 %v3228_v6, %v4062_v22  ;;  %v4166_v52 = vsel %vm353_vm0, %v519_v49, 0.0 }
 0x237   :  { %5344 = vst [vmem:[#allocation154_spill] sm:$0xff] %v4137_v15  ;;  %v4140_v45 = vadd.f32 %v643_v59, %v3824_v39  ;;  %v4144_v4 = vmul.f32 %v3228_v6, %v4056_v11  ;;  %v4148_v42 = vmul.f32 %v3231_v37, %v4056_v11  ;;  %v4152_v24 = vmul.f32 %v5210_v29, %v4056_v11 }
 0x238   :  { %v645_v57 = vmul.f32 %v5336_v27, %v4065_v53  ;;  %v646_v15 = vmul.f32 %v5336_v27, %v4062_v22  ;;  %v855_v39 = vrot.slane %v841_v12, 1  ;;  %v1094_v3 = vrot.slane %v1080_v2, 2  ;;  %5346 = vst [vmem:[#allocation156_spill] sm:$0xff] %v4166_v52 }
 0x239   :  { %5345 = vst [vmem:[#allocation155_spill] sm:$0xff] %v4152_v24  ;;  %v1558_v60 = vmul.f32 %v3231_v37, %v4065_v53  ;;  %v4163_v36 = vmul.f32 %v3231_v37, %v4062_v22  ;;  %v539_v24 = vpop.permute.xlu1 %538  ;;  %v1333_v41 = vrot.slane %v1319_v17, 3  ;;  %v5347_v12 = vrot.slane %v3994_v58, 5 }
 0x23a   :  { %v850_v59 = vrot.slane %v4117_v1, 1  ;;  %v1089_v61 = vrot.slane %v4125_v38, 2  ;;  %v1328_v21 = vrot.slane %v4144_v4, 3  ;;  %v1796_v0 = vmul.f32 %v5210_v29, %v4065_v53 }
 0x23b   :  { %v4173_v2 = vsel %vm353_vm0, %v5347_v12, %v519_v49  ;;  %v1567_v50 = vrot.slane %v4148_v42, 4  ;;  %v649_v11 = vadd.f32 %v645_v57, %v637_v26  ;;  %v4181_v17 = vadd.f32 %v646_v15, %v638_v19  ;;  %v535_v57 = vpop.permute.xlu0 %534 }
 0x23c   :  { %v4185_v58 = vmul.f32 %v5348_v46, %v4166_v52  ;;  %v5350_v49 = vrot.slane %v4106_v13, 1  ;;  %v1572_v38 = vrot.slane %v1558_v60, 4  ;;  %v4194_v4 = vmul.f32 %v5210_v29, %v4062_v22 }
 0x23d   :  { %v839_v42 = vmul.f32 %v3215_v35, %v4173_v2  ;;  %v5352_v19 = vrot.slane %v4129_v25, 2  ;;  %v5354_v15 = vrot.slane %v4135_v54, 3  ;;  %v1078_v53 = vmul.f32 %v3218_v20, %v4173_v2 }
 0x23e   :  { %5349 = vst [vmem:[#allocation157_spill] sm:$0xff] %v4185_v58  ;;  %v4190_v1 = vsel %vm679_vm1, %v855_v39, %v5350_v49  ;;  %5351 = vst [vmem:[#allocation158_spill] sm:$0xff] %v4194_v4  ;;  %v840_v39 = vmul.f32 %v3215_v35, %v4166_v52  ;;  %v1810_v49 = vrot.slane %v1796_v0, 5  ;;  %v1079_v22 = vmul.f32 %v3218_v20, %v4166_v52 }
 0x23f   :  { %v4201_v26 = vsel %vm918_vm2, %v1094_v3, %v5352_v19  ;;  %v4206_v12 = vsel %vm1157_vm3, %v1333_v41, %v5354_v15  ;;  %v549_v3 = vsel %vm546_vm11, %v539_v24, 0.0  ;;  %v541_v19 = vpop.permute.xlu1 %540  ;;  %v644_v58 = vmul.f32 %v5336_v27, %v4173_v2 }
 0x240   :  { %5353 = vst [vmem:[#allocation159_spill] sm:$0xff] %v4201_v26  ;;  %5355 = vst [vmem:[#allocation160_spill] sm:$0xff] %v4206_v12  ;;  %v1317_v41 = vmul.f32 %v3228_v6, %v4173_v2  ;;  %v558_v15 = vrot.slane %v549_v3, 5  ;;  %v4221_v60 = vsel %vm546_vm11, %v535_v57, 0.0  ;;  %v851_v0 = vrot.slane %v839_v42, 1 }
 0x241   :  { %v1318_v12 = vmul.f32 %v3228_v6, %v4166_v52  ;;  %v853_v24 = vrot.slane %v840_v39, 1  ;;  %v4229_v46 = vmul.f32 %v3231_v37, %v4173_v2  ;;  %v550_v3 = vsel %vm546_vm11, %v541_v19, 0.0 }
 0x242   :  { %v4232_v27 = vsel %vm353_vm0, 0.0, %v558_v15  ;;  %v5358_v57 = vrot.slane %v4163_v36, 4  ;;  %v1090_v42 = vrot.slane %v1078_v53, 2  ;;  %v1092_v51 = vrot.slane %v1079_v22, 2 }
 0x243   :  { %5356 = vst [vmem:[#allocation161_spill] sm:$0xff] %v4229_v46  ;;  %5357 = vst [vmem:[#allocation162_spill] sm:$0xff] %v4232_v27  ;;  %v657_v6 = vmul.f32 %v4092_v9, %v4232_v27  ;;  %v4243_v39 = vadd.f32 %v644_v58, %v3826_v63  ;;  %v1329_v20 = vrot.slane %v1317_v41, 3  ;;  %v5359_v26 = vrot.slane %v4221_v60, 5 }
 0x244   :  { %v4238_v35 = vsel %vm1396_vm4, %v1572_v38, %v5358_v57  ;;  %v559_v19 = vrot.slane %v550_v3, 5  ;;  %v5360_v32 = vrot.slane %v4194_v4, 5  ;;  %v4256_v22 = vsel %vm679_vm1, %v850_v59, %v851_v0  ;;  %v5373_v4 = vld [vmem:[#allocation77_spill] sm:$0xff] }
 0x245   :  { %v4248_v33 = vsel %vm353_vm0, 0.0, %v5359_v26  ;;  %v1331_v53 = vrot.slane %v1318_v12, 3  ;;  %v661_v57 = vadd.f32 %v657_v6, %v649_v11  ;;  %v4259_v63 = vsel %vm679_vm1, %v851_v0, %v853_v24 }
 0x246   :  { %v4253_v38 = vsel %vm353_vm0, %v1810_v49, %v5360_v32  ;;  %v5064_v58 = vrot.slane %v4229_v46, 4  ;;  %v5361_v41 = vrot.slane %v3962_v31, 1  ;;  %v5362_v26 = vrot.slane %v3959_v47, 1  ;;  %v2535_v47 = vld [vmem:[#allocation8 + $0x8] sm:$0x7f] }
 0x247   :  { %v655_v32 = vmul.f32 %v4092_v9, %v4248_v33  ;;  %v4270_v49 = vsel %vm918_vm2, %v1089_v61, %v1090_v42  ;;  %v4273_v59 = vsel %vm918_vm2, %v1090_v42, %v1092_v51  ;;  %v4277_v11 = vmul.f32 %v3231_v37, %v4166_v52 }
 0x248   :  { %v687_v3 = vsel %vm679_vm1, %v5362_v26, %v5361_v41  ;;  %v4280_v0 = vsel %vm1157_vm3, %v1328_v21, %v1329_v20  ;;  %v4283_v24 = vrot.slane %v2535_v47, %v5337_v23  ;;  %v4287_v61 = vsel %vm353_vm0, %v558_v15, %v559_v19  ;;  %v5364_v21 = vld [vmem:[#allocation109_spill] sm:$0xff]  ;;  %v5366_v41 = vld [vmem:[#allocation108_spill] sm:$0xff]  ;;  %v2536_v15 = vld [vmem:[#allocation8 + $0x10] sm:$0x7f] }
 0x249   :  { %v696_v12 = vadd.f32 %v687_v3, %v661_v57  ;;  %v659_v6 = vadd.f32 %v655_v32, %v4140_v45  ;;  %v4290_v51 = vsel %vm1157_vm3, %v1329_v20, %v1331_v53  ;;  %v4294_v37 = vmul.f32 %v5210_v29, %v4173_v2  ;;  %v2538_v47 = vld [vmem:[#allocation8 + $0x20] sm:$0x7f] }
 0x24a   :  { %v5365_v57 = vrot.slane %v5364_v21, 1  ;;  %v5367_v26 = vrot.slane %v5366_v41, 1  ;;  %v4305_v45 = vsel %vm1396_vm4, %v1567_v50, %v5064_v58  ;;  %v4308_v20 = vrot.slane %v2536_v15, %v5337_v23  ;;  %v5368_v58 = vld [vmem:[#allocation17_spill] sm:$0xff] }
 0x24b   :  { %5363 = vst [vmem:[#allocation163_spill] sm:$0xff] %v4294_v37  ;;  %v730_v42 = vadd.f32 %v3746_v30, %v696_v12  ;;  %v658_v32 = vmul.f32 %v4092_v9, %v4287_v61  ;;  %v2537_v30 = vld [vmem:[#allocation8 + $0x18] sm:$0x7f]  ;;  %v876_v50 = vmul.f32 %v4283_v24, %v4287_v61  ;;  %v5371_v52 = vrot.slane %v3657_v56, 2 }
 0x24c   :  { %v682_v3 = vsel %vm679_vm1, %v5367_v26, %v5365_v57  ;;  %v4313_v12 = vrot.slane %v2537_v30, %v5337_v23  ;;  %v4316_v57 = vrot.slane %v2538_v47, %v5337_v23  ;;  %v2539_v26 = vld [vmem:[#allocation8 + $0x28] sm:$0x7f]  ;;  %v5369_v47 = vrot.slane %v3643_v16, 1 }
 0x24d   :  { %v694_v53 = vadd.f32 %v682_v3, %v659_v6  ;;  %v764_v41 = vadd.f32 %v3911_v8, %v730_v42  ;;  %v4322_v15 = vrot.slane %v2539_v26, %v5337_v23  ;;  %v875_v6 = vmul.f32 %v4283_v24, %v4232_v27 }
 0x24e   :  { %v662_v30 = vadd.f32 %v658_v32, %v4181_v17  ;;  %v5370_v8 = vrot.slane %v4106_v13, 1  ;;  %v5372_v26 = vrot.slane %v4129_v25, 2  ;;  %v5374_v37 = vrot.slane %v5373_v4, 1 }
 0x24f   :  { %v728_v3 = vadd.f32 %v3589_v28, %v694_v53  ;;  %v798_v29 = vadd.f32 %v5368_v58, %v764_v41  ;;  %v5375_v28 = vrot.slane %v3962_v31, 1  ;;  %v4348_v16 = vsel %vm353_vm0, %v559_v19, 0.0 }
 0x250   :  { %v859_v42 = vsel %vm679_vm1, %v5370_v8, %v5369_v47  ;;  %v4339_v46 = vsel %vm918_vm2, %v5372_v26, %v5371_v52  ;;  %v890_v53 = vrot.slane %v876_v50, 1  ;;  %v1114_v25 = vmul.f32 %v4308_v20, %v4232_v27 }
 0x251   :  { %v689_v17 = vsel %vm679_vm1, %v5375_v28, %v5374_v37  ;;  %v762_v58 = vadd.f32 %v3693_v5, %v728_v3  ;;  %v832_v56 = vadd.f32 %v4051_v14, %v798_v29  ;;  %v4355_v52 = vmul.f32 %v4313_v12, %v4232_v27  ;;  %v5378_v29 = vld [vmem:[#allocation16_spill] sm:$0xff] }
 0x252   :  { %v697_v13 = vadd.f32 %v689_v17, %v662_v30  ;;  %v5376_v31 = vrot.slane %v3661_v55, 3  ;;  %v5377_v4 = vrot.slane %v4135_v54, 3  ;;  %v889_v19 = vrot.slane %v875_v6, 1 }
 0x253   :  { %v4366_v37 = vmul.f32 %v4316_v57, %v4232_v27  ;;  %v796_v14 = vadd.f32 %v5378_v29, %v762_v58  ;;  %v4372_v41 = vmul.f32 %v4322_v15, %v4232_v27  ;;  %v4376_v55 = vmul.f32 %v4283_v24, %v4248_v33 }
 0x254   :  { %v4362_v5 = vsel %vm1157_vm3, %v5377_v4, %v5376_v31  ;;  %v731_v32 = vadd.f32 %v3751_v62, %v697_v13  ;;  %v866_v54 = vadd.f32 %v4190_v1, %v832_v56  ;;  %v877_v50 = vmul.f32 %v4283_v24, %v4348_v16  ;;  %v5381_v56 = vld [vmem:[#allocation18_spill] sm:$0xff]  ;;  %v2100_v4 = vld [vmem:[#allocation10] sm:$0xff] }
 0x255   :  { %v4383_v6 = vmul.f32 %v4308_v20, %v4248_v33  ;;  %v891_v62 = vsel %vm679_vm1, %v889_v19, %v890_v53  ;;  %v1115_v30 = vmul.f32 %v4308_v20, %v4287_v61  ;;  %v4391_v47 = vmul.f32 %v4313_v12, %v4248_v33  ;;  %v2101_v19 = vld [vmem:[#allocation10 + $0x8] sm:$0xff] }
 0x256   :  { %v765_v3 = vadd.f32 %v3923_v7, %v731_v32  ;;  %v4395_v1 = vmul.f32 %v4316_v57, %v4248_v33  ;;  %v900_v8 = vadd.f32 %v891_v62, %v866_v54  ;;  %v1116_v26 = vmul.f32 %v4308_v20, %v4348_v16  ;;  %v537_v54 = vpop.permute.xlu0 %536  ;;  %v5382_v7 = vld [vmem:[#allocation78_spill] sm:$0xff]  ;;  %v5385_v62 = vld [vmem:[#allocation79_spill] sm:$0xff] }
 0x257   :  { %v1128_v28 = vrot.slane %v1114_v25, 2  ;;  %v5379_v17 = vrot.slane %v3665_v10, 4  ;;  %v5380_v58 = vrot.slane %v4163_v36, 4  ;;  %v892_v29 = vrot.slane %v877_v50, 1 }
 0x258   :  { %v799_v31 = vadd.f32 %v5381_v56, %v765_v3  ;;  %v935_v32 = vadd.f32 %v4011_v44, %v900_v8  ;;  %v884_v25 = vrot.slane %v4376_v55, 1  ;;  %v1129_v36 = vrot.slane %v1115_v30, 2 }
 0x259   :  { %v4405_v13 = vsel %vm1396_vm4, %v5380_v58, %v5379_v17  ;;  %v1131_v56 = vrot.slane %v1116_v26, 2  ;;  %v5383_v44 = vrot.slane %v5382_v7, 2  ;;  %v5384_v8 = vrot.slane %v3930_v40, 2  ;;  %v2103_v26 = vld [vmem:[#allocation10 + $0x18] sm:$0xff] }
 0x25a   :  { %v833_v10 = vadd.f32 %v4070_v48, %v799_v31  ;;  %v969_v3 = vadd.f32 %v3754_v43, %v935_v32  ;;  %v5386_v27 = vrot.slane %v5385_v62, 3  ;;  %v5387_v48 = vrot.slane %v3942_v18, 3  ;;  %v2102_v43 = vld [vmem:[#allocation10 + $0x10] sm:$0xff] }
 0x25b   :  { %v928_v55 = vsel %vm918_vm2, %v5384_v8, %v5383_v44  ;;  %v548_v31 = vsel %vm546_vm11, %v537_v54, 0.0  ;;  %v5388_v32 = vld [vmem:[#allocation138_spill] sm:$0xff]  ;;  %v1130_v44 = vsel %vm918_vm2, %v1128_v28, %v1129_v36  ;;  %v1354_v18 = vmul.f32 %v4313_v12, %v4287_v61 }
 0x25c   :  { %v867_v50 = vadd.f32 %v859_v42, %v833_v10  ;;  %v4427_v30 = vsel %vm1157_vm3, %v5387_v48, %v5386_v27  ;;  %v830_v58 = vadd.f32 %v5388_v32, %v796_v14  ;;  %v893_v42 = vsel %vm679_vm1, %v890_v53, %v892_v29  ;;  %v5389_v27 = vld [vmem:[#allocation19_spill] sm:$0xff] }
 0x25d   :  { %v1003_v7 = vadd.f32 %v3939_v34, %v969_v3  ;;  %v556_v40 = vrot.slane %v548_v31, 5  ;;  %v2473_v62 = vpack.c.bf16 %v2101_v19, %v2100_v4  ;;  %v4438_v54 = vsel %vm918_vm2, %v1129_v36, %v1131_v56  ;;  %v2104_v19 = vld [vmem:[#allocation10 + $0x20] sm:$0xff]  ;;  %v2105_v36 = vld [vmem:[#allocation10 + $0x28] sm:$0xff]  ;;  %v5391_v3 = vld [vmem:[#allocation110_spill] sm:$0xff] }
 0x25e   :  { %v901_v10 = vadd.f32 %v893_v42, %v867_v50  ;;  %v5390_v48 = vrot.slane %v4221_v60, 5  ;;  %v2477_v53 = vpack.c.bf16 %v2103_v26, %v2102_v43  ;;  %v1355_v29 = vmul.f32 %v4313_v12, %v4348_v16  ;;  %v5392_v56 = vld [vmem:[#allocation80_spill] sm:$0xff]  ;;  %v5394_v31 = vld [vmem:[#allocation41_spill] sm:$0xff]  ;;  %v5396_v32 = vld [vmem:[#allocation47_spill] sm:$0xff] }
 0x25f   :  { %v1037_v8 = vadd.f32 %v5389_v27, %v1003_v7  ;;  %2474 = vmatprep.subr.bf16.mxu0 %v2473_v62  ;;  %v5393_v50 = vrot.slane %v5392_v56, 4  ;;  %v5395_v43 = vrot.slane %v5394_v31, 4  ;;  %v4463_v26 = vmul.f32 %v4316_v57, %v4287_v61  ;;  %2505 = vmatprep.subr.bf16.mxu1 %v2473_v62  ;;  %v5398_v56 = vld [vmem:[#allocation62_spill] sm:$0xff] }
 0x260   :  { %v4443_v14 = vsel %vm353_vm0, %v5390_v48, %v556_v40  ;;  %v936_v34 = vadd.f32 %v928_v55, %v901_v10  ;;  %v4468_v7 = vsel %vm353_vm0, %v556_v40, 0.0  ;;  %2476 = vmatpush3.bf16.msra.mxu0 %v2473_v62  ;;  %2513 = vmatpush3.bf16.msra.mxu1 %v2473_v62  ;;  %v5400_v31 = vrot.slane %v5364_v21, 1  ;;  %v5401_v40 = vld [vmem:[#allocation42_spill] sm:$0xff] }
 0x261   :  { %v656_v28 = vmul.f32 %v4092_v9, %v4443_v14  ;;  %v4451_v4 = vmul.f32 %v4283_v24, %v4443_v14  ;;  %v1071_v60 = vadd.f32 %v5391_v3, %v1037_v8  ;;  %v4459_v55 = vsel %vm1396_vm4, %v5395_v43, %v5393_v50  ;;  %v5397_v8 = vld [vmem:[#allocation159_spill] sm:$0xff]  ;;  %2478 = vmatprep.subr.bf16.mxu0 %v2477_v53  ;;  %v2106_v43 = vld [vmem:[#allocation10 + $0x30] sm:$0xff] }
 0x262   :  { %v864_v9 = vadd.f32 %v4256_v22, %v830_v58  ;;  %v970_v42 = vadd.f32 %v5396_v32, %v936_v34  ;;  %v1368_v3 = vrot.slane %v1354_v18, 3  ;;  %v5399_v50 = vrot.slane %v5398_v56, 1  ;;  %2506 = vmatprep.subr.bf16.mxu1 %v2477_v53  ;;  %v2107_v32 = vld [vmem:[#allocation10 + $0x38] sm:$0xff] }
 0x263   :  { %v660_v10 = vadd.f32 %v656_v28, %v4243_v39  ;;  %v885_v27 = vrot.slane %v4451_v4, 1  ;;  %v1105_v48 = vadd.f32 %v5397_v8, %v1071_v60  ;;  %v2481_v58 = vpack.c.bf16 %v2105_v36, %v2104_v19  ;;  %v5402_v8 = vld [vmem:[#allocation20_spill] sm:$0xff]  ;;  %v5403_v36 = vld [vmem:[#allocation118_spill] sm:$0xff] }
 0x264   :  { %v684_v22 = vsel %vm679_vm1, %v5400_v31, %v5399_v50  ;;  %v1004_v34 = vadd.f32 %v5401_v40, %v970_v42  ;;  %v4481_v39 = vmul.f32 %v4316_v57, %v4348_v16  ;;  %v1370_v18 = vrot.slane %v1355_v29, 3  ;;  %2480 = vmatpush3.bf16.msra.mxu0 %v2477_v53  ;;  %2514 = vmatpush3.bf16.msra.mxu1 %v2477_v53  ;;  %v5410_v40 = vld [vmem:[#allocation111_spill] sm:$0xff] }
 0x265   :  { %v695_v28 = vadd.f32 %v684_v22, %v660_v10  ;;  %v886_v62 = vsel %vm679_vm1, %v884_v25, %v885_v27  ;;  %v1139_v4 = vadd.f32 %v1130_v44, %v1105_v48  ;;  %v874_v60 = vmul.f32 %v4283_v24, %v4468_v7  ;;  %v5404_v25 = vld [vmem:[#allocation146_spill] sm:$0xff]  ;;  %v5408_v48 = vld [vmem:[#allocation51_spill] sm:$0xff]  ;;  %2482 = vmatprep.subr.bf16.mxu0 %v2481_v58 }
 0x266   :  { %v898_v21 = vadd.f32 %v886_v62, %v864_v9  ;;  %v1038_v56 = vadd.f32 %v5402_v8, %v1004_v34  ;;  %v5071_v19 = vrot.slane %v4463_v26, 4  ;;  %v4491_v50 = vmul.f32 %v4308_v20, %v4443_v14  ;;  %v5406_v9 = vld [vmem:[#allocation81_spill] sm:$0xff]  ;;  %2507 = vmatprep.subr.bf16.mxu1 %v2481_v58 }
 0x267   :  { %v729_v42 = vadd.f32 %v5403_v36, %v695_v28  ;;  %v1174_v44 = vadd.f32 %v5404_v25, %v1139_v4  ;;  %v5405_v29 = vrot.slane %v4355_v52, 3  ;;  %v5407_v10 = vrot.slane %v5406_v9, 5  ;;  %v5411_v28 = vld [vmem:[#allocation114_spill] sm:$0xff]  ;;  %v5412_v4 = vld [vmem:[#allocation63_spill] sm:$0xff]  ;;  %v5413_v36 = vld [vmem:[#allocation48_spill] sm:$0xff] }
 0x268   :  { %v5409_v31 = vrot.slane %v5408_v48, 5  ;;  %v933_v34 = vadd.f32 %v5410_v40, %v898_v21  ;;  %v1072_v62 = vadd.f32 %v5411_v28, %v1038_v56  ;;  %v4508_v53 = vmul.f32 %v4322_v15, %v4287_v61  ;;  %2484 = vmatpush3.bf16.msra.mxu0 %v2481_v58  ;;  %v5420_v28 = vld [vmem:[#allocation102_spill] sm:$0xff]  ;;  %2515 = vmatpush3.bf16.msra.mxu1 %v2481_v58 }
 0x269   :  { %v1369_v24 = vsel %vm1157_vm3, %v5405_v29, %v1368_v3  ;;  %v763_v52 = vadd.f32 %v5412_v4, %v729_v42  ;;  %v2485_v8 = vpack.c.bf16 %v2107_v32, %v2106_v43  ;;  %v1208_v25 = vadd.f32 %v5413_v36, %v1174_v44  ;;  %v5416_v42 = vld [vmem:[#allocation26_spill] sm:$0xff]  ;;  %v2108_v32 = vld [vmem:[#allocation10 + $0x40] sm:$0xff]  ;;  %v5418_v44 = vld [vmem:[#allocation65_spill] sm:$0xff] }
 0x26a   :  { %v4502_v22 = vsel %vm353_vm0, %v5409_v31, %v5407_v10  ;;  %v4513_v29 = vsel %vm1157_vm3, %v1368_v3, %v1370_v18  ;;  %v887_v9 = vrot.slane %v874_v60, 1  ;;  %v5414_v10 = vld [vmem:[#allocation120_spill] sm:$0xff]  ;;  %v1106_v21 = vadd.f32 %v4339_v46, %v1072_v62  ;;  %v2109_v3 = vld [vmem:[#allocation10 + $0x48] sm:$0xff]  ;;  %v5417_v18 = vld [vmem:[#allocation43_spill] sm:$0xff] }
 0x26b   :  { %v967_v48 = vadd.f32 %v5414_v10, %v933_v34  ;;  %v5415_v56 = vrot.slane %v4366_v37, 4  ;;  %v797_v40 = vadd.f32 %v5416_v42, %v763_v52  ;;  %v5072_v43 = vrot.slane %v4491_v50, 2  ;;  %v5422_v4 = vld [vmem:[#allocation66_spill] sm:$0xff]  ;;  %v5424_v36 = vld [vmem:[#allocation103_spill] sm:$0xff]  ;;  %2486 = vmatprep.subr.bf16.mxu0 %v2485_v8  ;;  %2508 = vmatprep.subr.bf16.mxu1 %v2485_v8 }
 0x26c   :  { %v1242_v60 = vadd.f32 %v5417_v18, %v1208_v25  ;;  %v5419_v34 = vrot.slane %v5418_v44, 2  ;;  %v5421_v46 = vrot.slane %v5420_v28, 2  ;;  %v5423_v37 = vrot.slane %v5422_v4, 3  ;;  %v5426_v52 = vld [vmem:[#allocation70_spill] sm:$0xff]  ;;  %2488 = vmatpush3.bf16.msra.mxu0 %v2485_v8  ;;  %2516 = vmatpush3.bf16.msra.mxu1 %v2485_v8  ;;  %v5447_v8 = vld [vmem:[#allocation56_spill] sm:$0xff] }
 0x26d   :  { %v4522_v31 = vsel %vm1396_vm4, %v5415_v56, %v5071_v19  ;;  %v5425_v10 = vrot.slane %v5424_v36, 3  ;;  %v1001_v42 = vadd.f32 %v5426_v52, %v967_v48  ;;  %v1140_v19 = vadd.f32 %v4438_v54, %v1106_v21  ;;  %v5427_v18 = vld [vmem:[#allocation82_spill] sm:$0xff]  ;;  %v5433_v52 = vld [vmem:[#allocation97_spill] sm:$0xff] }
 0x26e   :  { %v923_v62 = vsel %vm918_vm2, %v5421_v46, %v5419_v34  ;;  %v831_v44 = vadd.f32 %v5427_v18, %v797_v40  ;;  %v4545_v28 = vmul.f32 %v4308_v20, %v4468_v7  ;;  %v5428_v34 = vld [vmem:[#allocation21_spill] sm:$0xff]  ;;  %v888_v4 = vsel %vm679_vm1, %v885_v27, %v887_v9 }
 0x26f   :  { %v4537_v56 = vsel %vm1157_vm3, %v5425_v10, %v5423_v37  ;;  %v1276_v46 = vadd.f32 %v5428_v34, %v1242_v60  ;;  %v5429_v37 = vld [vmem:[#allocation27_spill] sm:$0xff]  ;;  %v2489_v48 = vpack.c.bf16 %v2109_v3, %v2108_v32  ;;  %v1175_v58 = vadd.f32 %v4427_v30, %v1140_v19  ;;  %v5431_v40 = vld [vmem:[#allocation45_spill] sm:$0xff] }
 0x270   :  { %v1035_v36 = vadd.f32 %v5429_v37, %v1001_v42  ;;  %v865_v54 = vadd.f32 %v4259_v63, %v831_v44  ;;  %v5430_v21 = vrot.slane %v4383_v6, 2  ;;  %v5432_v10 = vrot.slane %v5431_v40, 6  ;;  %v5436_v9 = vld [vmem:[#allocation149_spill] sm:$0xff]  ;;  %v5437_v3 = vld [vmem:[#allocation139_spill] sm:$0xff]  ;;  %v5443_v44 = vld [vmem:[#allocation128_spill] sm:$0xff] }
 0x271   :  { %v5434_v60 = vrot.slane %v5433_v52, 6  ;;  %v1310_v32 = vadd.f32 %v5436_v9, %v1276_v46  ;;  %2490 = vmatprep.subr.bf16.mxu0 %v2489_v48  ;;  %v5438_v63 = vld [vmem:[#allocation59_spill] sm:$0xff]  ;;  %v1943_v34 = vrot.slane %v5443_v44, 6  ;;  %v5444_v37 = vld [vmem:[#allocation90_spill] sm:$0xff]  ;;  %2509 = vmatprep.subr.bf16.mxu1 %v2489_v48 }
 0x272   :  { %v1125_v20 = vsel %vm918_vm2, %v5430_v21, %v5072_v43  ;;  %v1069_v30 = vadd.f32 %v5437_v3, %v1035_v36  ;;  %v5439_v19 = vrot.slane %v5438_v63, 6  ;;  %v5440_v42 = vld [vmem:[#allocation123_spill] sm:$0xff]  ;;  %v1209_v21 = vadd.f32 %v5444_v37, %v1175_v58  ;;  %v2110_v9 = vld [vmem:[#allocation10 + $0x50] sm:$0xff]  ;;  %v5448_v63 = vld [vmem:[#allocation160_spill] sm:$0xff]  ;;  %2492 = vmatpush3.bf16.msra.mxu0 %v2489_v48  ;;  %2517 = vmatpush3.bf16.msra.mxu1 %v2489_v48 }
 0x273   :  { %v4562_v27 = vsel %vm1873_vm5, %v5434_v60, %v5432_v10  ;;  %v5441_v6 = vrot.slane %v5440_v42, 6  ;;  %v899_v40 = vadd.f32 %v888_v4, %v865_v54  ;;  %v5445_v10 = vld [vmem:[#allocation88_spill] sm:$0xff]  ;;  %v5446_v60 = vld [vmem:[#allocation49_spill] sm:$0xff]  ;;  %v4581_v36 = vmul.f32 %v5447_v8, %v4173_v2  ;;  %v2111_v3 = vld [vmem:[#allocation10 + $0x58] sm:$0xff] }
 0x274   :  { %5435 = vst [vmem:[#allocation109_spill] sm:$0xff] %v4562_v27  ;;  %v4577_v46 = vmul.f32 %v5446_v60, %v5445_v10  ;;  %v1344_v25 = vadd.f32 %v5448_v63, %v1310_v32  ;;  %v5452_v4 = vld [vmem:[#allocation157_spill] sm:$0xff]  ;;  %v5453_v37 = vld [vmem:[#allocation104_spill] sm:$0xff]  ;;  %v2540_v32 = vld [vmem:[#allocation8 + $0x30] sm:$0x7f] }
 0x275   :  { %v4571_v18 = vsel %vm1873_vm5, %v5441_v6, %v5439_v19  ;;  %v1103_v19 = vadd.f32 %v4270_v49, %v1069_v30  ;;  %v5449_v6 = vld [vmem:[#allocation54_spill] sm:$0xff]  ;;  %v2047_v54 = vrot.slane %v5452_v4, 6  ;;  %v1243_v10 = vadd.f32 %v5453_v37, %v1209_v21 }
 0x276   :  { %5442 = vst [vmem:[#allocation108_spill] sm:$0xff] %v4571_v18  ;;  %v5450_v44 = vrot.slane %v5449_v6, 6  ;;  %v934_v17 = vadd.f32 %v923_v62, %v899_v40  ;;  %v5073_v2 = vrot.slane %v4577_v46, 6  ;;  %v2045_v43 = vrot.slane %v4581_v36, 6  ;;  %v5454_v63 = vld [vmem:[#allocation22_spill] sm:$0xff] }
 0x277   :  { %v1378_v18 = vadd.f32 %v1369_v24, %v1344_v25  ;;  %v1137_v27 = vadd.f32 %v1125_v20, %v1103_v19  ;;  %v4595_v49 = vrot.slane %v2540_v32, %v5337_v23  ;;  %v2493_v30 = vpack.c.bf16 %v2111_v3, %v2110_v9  ;;  %v5458_v25 = vld [vmem:[#allocation147_spill] sm:$0xff]  ;;  %v5459_v20 = vld [vmem:[#allocation112_spill] sm:$0xff]  ;;  %v5460_v36 = vld [vmem:[#allocation150_spill] sm:$0xff] }
 0x278   :  { %v4588_v58 = vsel %vm1873_vm5, %v1943_v34, %v5450_v44  ;;  %v1277_v6 = vadd.f32 %v5454_v63, %v1243_v10  ;;  %v5455_v44 = vld [vmem:[#allocation121_spill] sm:$0xff]  ;;  %v4607_v24 = vsel %vm1873_vm5, %v2045_v43, %v2047_v54  ;;  %v5461_v3 = vld [vmem:[#allocation71_spill] sm:$0xff]  ;;  %v4620_v54 = vmul.f32 %v4313_v12, %v4443_v14  ;;  %v5463_v37 = vld [vmem:[#allocation122_spill] sm:$0xff] }
 0x279   :  { %5451 = vst [vmem:[#allocation17_spill] sm:$0xff] %v4588_v58  ;;  %v968_v4 = vadd.f32 %v5455_v44, %v934_v17  ;;  %v5456_v58 = vld [vmem:[#allocation69_spill] sm:$0xff]  ;;  %v1413_v48 = vadd.f32 %v5458_v25, %v1378_v18  ;;  %v1172_v23 = vadd.f32 %v5459_v20, %v1137_v27  ;;  %v2067_v40 = vmul.f32 %v4595_v49, %v4443_v14  ;;  %v5462_v18 = vld [vmem:[#allocation135_spill] sm:$0xff]  ;;  %v5466_v25 = vld [vmem:[#allocation96_spill] sm:$0xff] }
 0x27a   :  { %v5457_v21 = vrot.slane %v5456_v58, 6  ;;  %v2068_v17 = vmul.f32 %v4595_v49, %v4468_v7  ;;  %2494 = vmatprep.subr.bf16.mxu0 %v2493_v30  ;;  %v1311_v9 = vadd.f32 %v5460_v36, %v1277_v6  ;;  %v1126_v58 = vrot.slane %v4545_v28, 2  ;;  %2510 = vmatprep.subr.bf16.mxu1 %v2493_v30  ;;  %v5464_v6 = vld [vmem:[#allocation28_spill] sm:$0xff] }
 0x27b   :  { %v1002_v19 = vadd.f32 %v5461_v3, %v968_v4  ;;  %v1447_v27 = vadd.f32 %v5462_v18, %v1413_v48  ;;  %v1206_v10 = vadd.f32 %v5463_v37, %v1172_v23  ;;  %v2079_v32 = vrot.slane %v2067_v40, 6  ;;  %2496 = vmatpush3.bf16.msra.mxu0 %v2493_v30  ;;  %2518 = vmatpush3.bf16.msra.mxu1 %v2493_v30  ;;  %v5468_v23 = vld [vmem:[#allocation145_spill] sm:$0xff] }
 0x27c   :  { %v4604_v62 = vsel %vm1873_vm5, %v5073_v2, %v5457_v21  ;;  %v2081_v63 = vrot.slane %v2068_v17, 6  ;;  %v1345_v44 = vadd.f32 %v4362_v5, %v1311_v9  ;;  %v4628_v28 = vmul.f32 %v4313_v12, %v4468_v7  ;;  %v5469_v17 = vld [vmem:[#allocation132_spill] sm:$0xff]  ;;  %v5471_v9 = vld [vmem:[#allocation119_spill] sm:$0xff] }
 0x27d   :  { %v1036_v21 = vadd.f32 %v5464_v6, %v1002_v19  ;;  %v5465_v4 = vrot.slane %v5433_v52, 6  ;;  %v5467_v20 = vrot.slane %v5466_v25, 6  ;;  %v1481_v40 = vadd.f32 %v5468_v23, %v1447_v27  ;;  %v5473_v19 = vld [vmem:[#allocation83_spill] sm:$0xff]  ;;  %v5477_v25 = vld [vmem:[#allocation29_spill] sm:$0xff]  ;;  %v5513_v2 = vld [vmem:[#allocation140_spill] sm:$0xff] }
 0x27e   :  { %v1240_v36 = vadd.f32 %v5469_v17, %v1206_v10  ;;  %v4640_v30 = vsel %vm1873_vm5, %v2079_v32, %v2081_v63  ;;  %v5470_v5 = vrot.slane %v5440_v42, 6  ;;  %v5472_v3 = vrot.slane %v5471_v9, 6  ;;  %v5474_v6 = vld [vmem:[#allocation127_spill] sm:$0xff]  ;;  %v5481_v9 = vld [vmem:[#allocation141_spill] sm:$0xff] }
 0x27f   :  { %v4635_v48 = vsel %vm1873_vm5, %v5467_v20, %v5465_v4  ;;  %v1379_v52 = vadd.f32 %v4513_v29, %v1345_v44  ;;  %v1070_v18 = vadd.f32 %v5473_v19, %v1036_v21  ;;  %v1363_v37 = vrot.slane %v4620_v54, 3  ;;  %v5476_v63 = vld [vmem:[#allocation23_spill] sm:$0xff]  ;;  %v5478_v20 = vld [vmem:[#allocation53_spill] sm:$0xff] }
 0x280   :  { %v4647_v12 = vsel %vm1873_vm5, %v5472_v3, %v5470_v5  ;;  %v5475_v27 = vrot.slane %v5474_v6, 6  ;;  %v1515_v4 = vadd.f32 %v5476_v63, %v1481_v40  ;;  %v1274_v42 = vadd.f32 %v5477_v25, %v1240_v36  ;;  %v5480_v40 = vld [vmem:[#allocation64_spill] sm:$0xff]  ;;  %v5532_v54 = vld [vmem:[#allocation57_spill] sm:$0xff] }
 0x281   :  { %v2032_v23 = vmul.f32 %v5447_v8, %v5478_v20  ;;  %v2066_v17 = vmul.f32 %v4595_v49, %v4248_v33  ;;  %v1414_v29 = vadd.f32 %v4459_v55, %v1379_v52  ;;  %v1104_v44 = vadd.f32 %v4273_v59, %v1070_v18  ;;  %v5486_v52 = vld [vmem:[#allocation40_spill] sm:$0xff] }
 0x282   :  { %v4655_v10 = vsel %vm1873_vm5, %v5475_v27, %v1943_v34  ;;  %v5479_v21 = vrot.slane %v4491_v50, 2  ;;  %v4670_v34 = vmul.f32 %v4316_v57, %v4443_v14  ;;  %v1549_v36 = vadd.f32 %v5480_v40, %v1515_v4  ;;  %v5482_v27 = vld [vmem:[#allocation91_spill] sm:$0xff]  ;;  %v5484_v50 = vld [vmem:[#allocation60_spill] sm:$0xff]  ;;  %v5491_v40 = vld [vmem:[#allocation134_spill] sm:$0xff] }
 0x283   :  { %v1308_v3 = vadd.f32 %v5481_v9, %v1274_v42  ;;  %v2044_v19 = vrot.slane %v2032_v23, 6  ;;  %v2078_v6 = vrot.slane %v2066_v17, 6  ;;  %v1448_v63 = vadd.f32 %v5482_v27, %v1414_v29 }
 0x284   :  { %v1127_v5 = vsel %vm918_vm2, %v5479_v21, %v1126_v58  ;;  %v5483_v59 = vrot.slane %v4391_v47, 3  ;;  %v5485_v58 = vrot.slane %v5484_v50, 6  ;;  %v5487_v18 = vrot.slane %v5486_v52, 6  ;;  %v5488_v47 = vld [vmem:[#allocation106_spill] sm:$0xff]  ;;  %v5498_v50 = vld [vmem:[#allocation84_spill] sm:$0xff] }
 0x285   :  { %v1138_v25 = vadd.f32 %v1127_v5, %v1104_v44  ;;  %v1583_v4 = vadd.f32 %v4238_v35, %v1549_v36  ;;  %v1342_v42 = vadd.f32 %v4280_v0, %v1308_v3  ;;  %v4690_v23 = vsel %vm1873_vm5, %v2044_v19, %v2045_v43  ;;  %v5489_v21 = vld [vmem:[#allocation94_spill] sm:$0xff]  ;;  %v5493_v35 = vld [vmem:[#allocation137_spill] sm:$0xff]  ;;  %v5494_v3 = vld [vmem:[#allocation87_spill] sm:$0xff] }
 0x286   :  { %v1364_v55 = vsel %vm1157_vm3, %v5483_v59, %v1363_v37  ;;  %v4685_v20 = vsel %vm1873_vm5, %v5487_v18, %v5485_v58  ;;  %v4693_v17 = vsel %vm1873_vm5, %v2078_v6, %v2079_v32  ;;  %v1482_v29 = vadd.f32 %v5488_v47, %v1448_v63  ;;  %v5495_v19 = vld [vmem:[#allocation98_spill] sm:$0xff]  ;;  %v5500_v47 = vld [vmem:[#allocation116_spill] sm:$0xff] }
 0x287   :  { %v1173_v44 = vadd.f32 %v4537_v56, %v1138_v25  ;;  %v5490_v5 = vrot.slane %v5489_v21, 6  ;;  %v5492_v9 = vrot.slane %v5491_v40, 6  ;;  %v1948_v36 = vrot.slane %v5493_v35, 6  ;;  %v5496_v56 = vld [vmem:[#allocation24_spill] sm:$0xff] }
 0x288   :  { %v1617_v0 = vadd.f32 %v4522_v31, %v1583_v4  ;;  %v1376_v43 = vadd.f32 %v1364_v55, %v1342_v42  ;;  %v4708_v32 = vmul.f32 %v5446_v60, %v5494_v3  ;;  %v4712_v6 = vmul.f32 %v5447_v8, %v5495_v19  ;;  %v5497_v25 = vld [vmem:[#allocation124_spill] sm:$0xff]  ;;  %v5501_v55 = vld [vmem:[#allocation99_spill] sm:$0xff]  ;;  %v5502_v42 = vld [vmem:[#allocation113_spill] sm:$0xff] }
 0x289   :  { %v4702_v27 = vsel %vm1873_vm5, %v5492_v9, %v5490_v5  ;;  %v1516_v63 = vadd.f32 %v5496_v56, %v1482_v29  ;;  %v1207_v59 = vadd.f32 %v5497_v25, %v1173_v44  ;;  %v5499_v58 = vrot.slane %v5498_v50, 6  ;;  %v5503_v35 = vld [vmem:[#allocation76_spill] sm:$0xff]  ;;  %v5504_v29 = vld [vmem:[#allocation73_spill] sm:$0xff] }
 0x28a   :  { %v2052_v31 = vrot.slane %v5500_v47, 6  ;;  %v1651_v4 = vadd.f32 %v5501_v55, %v1617_v0  ;;  %v1411_v21 = vadd.f32 %v5502_v42, %v1376_v43  ;;  %v5075_v5 = vrot.slane %v4708_v32, 6  ;;  %v5505_v25 = vld [vmem:[#allocation61_spill] sm:$0xff] }
 0x28b   :  { %v4719_v18 = vsel %vm1873_vm5, %v1948_v36, %v5499_v58  ;;  %v5074_v9 = vrot.slane %v4712_v6, 6  ;;  %v1550_v3 = vadd.f32 %v5503_v35, %v1516_v63  ;;  %v1241_v19 = vadd.f32 %v5504_v29, %v1207_v59  ;;  %v5506_v0 = vld [vmem:[#allocation125_spill] sm:$0xff]  ;;  %v5509_v59 = vld [vmem:[#allocation30_spill] sm:$0xff] }
 0x28c   :  { %v4730_v44 = vmul.f32 %v4595_v49, %v4287_v61  ;;  %v2071_v56 = vmul.f32 %v4595_v49, %v4348_v16  ;;  %v1685_v50 = vadd.f32 %v5505_v25, %v1651_v4  ;;  %v1445_v58 = vadd.f32 %v5506_v0, %v1411_v21  ;;  %v5507_v43 = vld [vmem:[#allocation101_spill] sm:$0xff] }
 0x28d   :  { %v5508_v47 = vrot.slane %v5507_v43, 6  ;;  %v4746_v63 = vsel %vm1873_vm5, %v5074_v9, %v2052_v31  ;;  %v1584_v61 = vadd.f32 %v4405_v13, %v1550_v3  ;;  %v1275_v42 = vadd.f32 %v5509_v59, %v1241_v19  ;;  %v5512_v43 = vld [vmem:[#allocation133_spill] sm:$0xff]  ;;  %v5516_v19 = vld [vmem:[#allocation44_spill] sm:$0xff] }
 0x28e   :  { %v5076_v4 = vrot.slane %v4730_v44, 6  ;;  %v2086_v35 = vrot.slane %v2071_v56, 6  ;;  %v5510_v21 = vrot.slane %v4481_v39, 4  ;;  %v5511_v29 = vrot.slane %v4463_v26, 4  ;;  %v2112_v59 = vld [vmem:[#allocation10 + $0x60] sm:$0xff] }
 0x28f   :  { %v4741_v55 = vsel %vm1873_vm5, %v5075_v5, %v5508_v47  ;;  %v1365_v0 = vrot.slane %v4628_v28, 3  ;;  %v1479_v47 = vadd.f32 %v5512_v43, %v1445_v58  ;;  %v1719_v31 = vadd.f32 %v5513_v2, %v1685_v50  ;;  %v5514_v5 = vld [vmem:[#allocation85_spill] sm:$0xff] }
 0x290   :  { %v1610_v25 = vsel %vm1396_vm4, %v5511_v29, %v5510_v21  ;;  %v1309_v13 = vadd.f32 %v5514_v5, %v1275_v42  ;;  %v4763_v3 = vsel %vm1873_vm5, %v5076_v4, %v2086_v35  ;;  %v5515_v39 = vrot.slane %v5486_v52, 6  ;;  %v2113_v28 = vld [vmem:[#allocation10 + $0x68] sm:$0xff]  ;;  %v5518_v21 = vld [vmem:[#allocation31_spill] sm:$0xff]  ;;  %v5519_v29 = vld [vmem:[#allocation38_spill] sm:$0xff] }
 0x291   :  { %v1618_v9 = vadd.f32 %v1610_v25, %v1584_v61  ;;  %v5517_v26 = vrot.slane %v5516_v19, 6  ;;  %v1513_v58 = vadd.f32 %v5518_v21, %v1479_v47  ;;  %v1753_v2 = vadd.f32 %v5519_v29, %v1719_v31  ;;  %v5521_v5 = vld [vmem:[#allocation50_spill] sm:$0xff]  ;;  %v5523_v35 = vld [vmem:[#allocation136_spill] sm:$0xff]  ;;  %v2115_v31 = vld [vmem:[#allocation10 + $0x78] sm:$0xff] }
 0x292   :  { %v5520_v50 = vrot.slane %v5491_v40, 6  ;;  %v5522_v61 = vrot.slane %v5521_v5, 6  ;;  %v5524_v25 = vrot.slane %v5523_v35, 6  ;;  %v1343_v19 = vadd.f32 %v4290_v51, %v1309_v13  ;;  %v5525_v21 = vld [vmem:[#allocation142_spill] sm:$0xff] }
 0x293   :  { %v1881_v56 = vsel %vm1873_vm5, %v5517_v26, %v5515_v39  ;;  %v1652_v43 = vadd.f32 %v4502_v22, %v1618_v9  ;;  %v1845_v39 = vrot.slane %v4508_v53, 5  ;;  %v2114_v26 = vld [vmem:[#allocation10 + $0x70] sm:$0xff]  ;;  %v1366_v40 = vsel %vm1157_vm3, %v1363_v37, %v1365_v0  ;;  %v5528_v53 = vld [vmem:[#allocation67_spill] sm:$0xff]  ;;  %v5530_v9 = vld [vmem:[#allocation105_spill] sm:$0xff] }
 0x294   :  { %v1915_v42 = vsel %vm1873_vm5, %v5522_v61, %v5520_v50  ;;  %v1949_v52 = vsel %vm1873_vm5, %v5524_v25, %v1948_v36  ;;  %v1547_v29 = vadd.f32 %v5525_v21, %v1513_v58  ;;  %v5526_v50 = vld [vmem:[#allocation152_spill] sm:$0xff]  ;;  %v2497_v61 = vpack.c.bf16 %v2113_v28, %v2112_v59  ;;  %v5527_v36 = vld [vmem:[#allocation93_spill] sm:$0xff]  ;;  %v5533_v28 = vld [vmem:[#allocation107_spill] sm:$0xff] }
 0x295   :  { %v1787_v5 = vadd.f32 %v5526_v50, %v1753_v2  ;;  %v1686_v35 = vadd.f32 %v5527_v36, %v1652_v43  ;;  %v1832_v22 = vmul.f32 %v4322_v15, %v4348_v16  ;;  %v5529_v51 = vrot.slane %v5528_v53, 4 }
 0x296   :  { %v5531_v13 = vrot.slane %v5530_v9, 4  ;;  %v1377_v4 = vadd.f32 %v1366_v40, %v1343_v19  ;;  %v1813_v47 = vrot.slane %v5532_v54, 5  ;;  %v1581_v37 = vadd.f32 %v4305_v45, %v1547_v29  ;;  %2498 = vmatprep.subr.bf16.mxu0 %v2497_v61  ;;  %2511 = vmatprep.subr.bf16.mxu1 %v2497_v61  ;;  %v5537_v45 = vld [vmem:[#allocation115_spill] sm:$0xff] }
 0x297   :  { %v1821_v0 = vadd.f32 %v4253_v38, %v1787_v5  ;;  %v2501_v59 = vpack.c.bf16 %v2115_v31, %v2114_v26  ;;  %v1720_v58 = vadd.f32 %v5533_v28, %v1686_v35  ;;  %v5534_v16 = vrot.slane %v4670_v34, 4  ;;  %2500 = vmatpush3.bf16.msra.mxu0 %v2497_v61  ;;  %v5539_v38 = vld [vmem:[#allocation52_spill] sm:$0xff]  ;;  %v5541_v31 = vld [vmem:[#allocation155_spill] sm:$0xff]  ;;  %2519 = vmatpush3.bf16.msra.mxu1 %v2497_v61  ;;  %v5542_v35 = vld [vmem:[#allocation25_spill] sm:$0xff] }
 0x298   :  { %v1401_v25 = vsel %vm1396_vm4, %v5531_v13, %v5529_v51  ;;  %v5535_v43 = vrot.slane %v4395_v1, 4  ;;  %v5536_v19 = vrot.slane %v4372_v41, 5  ;;  %v5538_v29 = vrot.slane %v5537_v45, 5  ;;  %v5543_v41 = vld [vmem:[#allocation129_spill] sm:$0xff]  ;;  %v5544_v9 = vld [vmem:[#allocation143_spill] sm:$0xff]  ;;  %v5545_v28 = vld [vmem:[#allocation100_spill] sm:$0xff] }
 0x299   :  { %v1412_v2 = vadd.f32 %v1401_v25, %v1377_v4  ;;  %v5540_v50 = vrot.slane %v5539_v38, 5  ;;  %v1805_v5 = vrot.slane %v5541_v31, 5  ;;  %2502 = vmatprep.subr.bf16.mxu0 %v2501_v59  ;;  %v1570_v1 = vrot.slane %v4277_v11, 4  ;;  %2512 = vmatprep.subr.bf16.mxu1 %v2501_v59 }
 0x29a   :  { %v1603_v21 = vsel %vm1396_vm4, %v5535_v43, %v5534_v16  ;;  %v1846_v40 = vsel %vm353_vm0, %v5536_v19, %v1845_v39  ;;  %v1754_v53 = vadd.f32 %v5542_v35, %v1720_v58  ;;  %v2001_v13 = vmul.f32 %v5446_v60, %v5544_v9  ;;  %v5548_v19 = vld [vmem:[#allocation148_spill] sm:$0xff] }
 0x29b   :  { %v1780_v26 = vsel %vm353_vm0, %v5540_v50, %v5538_v29  ;;  %v1615_v4 = vadd.f32 %v1603_v21, %v1581_v37  ;;  %v1855_v36 = vadd.f32 %v1846_v40, %v1821_v0  ;;  %v1446_v51 = vadd.f32 %v5543_v41, %v1412_v2  ;;  %v5546_v0 = vld [vmem:[#allocation163_spill] sm:$0xff]  ;;  %v5547_v21 = vld [vmem:[#allocation74_spill] sm:$0xff]  ;;  %2504 = vmatpush3.bf16.msra.mxu0 %v2501_v59  ;;  %v5552_v50 = vld [vmem:[#allocation32_spill] sm:$0xff] }
 0x29c   :  { %v1847_v25 = vrot.slane %v1832_v22, 5  ;;  %v1591_v54 = vmul.f32 %v4316_v57, %v4468_v7  ;;  %v1806_v61 = vrot.slane %v5546_v0, 5  ;;  %v1788_v43 = vadd.f32 %v1780_v26, %v1754_v53  ;;  %v5549_v40 = vld [vmem:[#allocation158_spill] sm:$0xff]  ;;  %2520 = vmatpush3.bf16.msra.mxu1 %v2501_v59  ;;  %v5590_v0 = vld [vmem:[#allocation151_spill] sm:$0xff] }
 0x29d   :  { %v1649_v16 = vadd.f32 %v5545_v28, %v1615_v4  ;;  %v1890_v37 = vadd.f32 %v1881_v56, %v1855_v36  ;;  %v1480_v11 = vadd.f32 %v5547_v21, %v1446_v51  ;;  %v2035_v58 = vmul.f32 %v5447_v8, %v5548_v19  ;;  %v5551_v57 = vld [vmem:[#allocation130_spill] sm:$0xff]  ;;  %v5556_v28 = vld [vmem:[#allocation161_spill] sm:$0xff]  ;;  %v5559_v21 = vld [vmem:[#allocation39_spill] sm:$0xff] }
 0x29e   :  { %v1827_v2 = vmul.f32 %v4322_v15, %v4248_v33  ;;  %v5550_v22 = vrot.slane %v5549_v40, 5  ;;  %v4836_v31 = vmul.f32 %v4322_v15, %v4443_v14  ;;  %v2015_v8 = vrot.slane %v2001_v13, 6  ;;  %v5553_v33 = vld [vmem:[#allocation131_spill] sm:$0xff]  ;;  %v5562_v40 = vld [vmem:[#allocation86_spill] sm:$0xff] }
 0x29f   :  { %v1683_v29 = vadd.f32 %v5551_v57, %v1649_v16  ;;  %v1924_v38 = vadd.f32 %v1915_v42, %v1890_v37  ;;  %v1514_v26 = vadd.f32 %v5552_v50, %v1480_v11  ;;  %v1848_v4 = vsel %vm353_vm0, %v1845_v39, %v1847_v25  ;;  %v5555_v42 = vld [vmem:[#allocation162_spill] sm:$0xff]  ;;  %v5566_v50 = vld [vmem:[#allocation95_spill] sm:$0xff] }
 0x2a0   :  { %v1814_v45 = vsel %vm353_vm0, %v5550_v22, %v1813_v47  ;;  %v1604_v36 = vrot.slane %v1591_v54, 4  ;;  %v5554_v47 = vld [vmem:[#allocation46_spill] sm:$0xff]  ;;  %v2049_v9 = vrot.slane %v2035_v58, 6  ;;  %v2069_v59 = vmul.f32 %v4595_v49, %v5555_v42 }
 0x2a1   :  { %v1822_v56 = vadd.f32 %v1814_v45, %v1788_v43  ;;  %v1717_v35 = vadd.f32 %v5553_v33, %v1683_v29  ;;  %v1958_v53 = vadd.f32 %v1949_v52, %v1924_v38  ;;  %v1548_v51 = vadd.f32 %v5554_v47, %v1514_v26  ;;  %v5558_v43 = vld [vmem:[#allocation35_spill] sm:$0xff]  ;;  %v5564_v38 = vld [vmem:[#allocation68_spill] sm:$0xff] }
 0x2a2   :  { %v5557_v16 = vrot.slane %v5556_v28, 4  ;;  %v1839_v14 = vrot.slane %v1827_v2, 5  ;;  %v1840_v54 = vrot.slane %v4836_v31, 5  ;;  %v5560_v11 = vrot.slane %v4708_v32, 6  ;;  %v5575_v28 = vld [vmem:[#allocation55_spill] sm:$0xff] }
 0x2a3   :  { %v1856_v41 = vadd.f32 %v1848_v4, %v1822_v56  ;;  %v1751_v13 = vadd.f32 %v5558_v43, %v1717_v35  ;;  %v1992_v39 = vadd.f32 %v5559_v21, %v1958_v53  ;;  %v5561_v49 = vrot.slane %v4670_v34, 4  ;;  %v5576_v21 = vld [vmem:[#allocation89_spill] sm:$0xff] }
 0x2a4   :  { %v1571_v37 = vsel %vm1396_vm4, %v5557_v16, %v1570_v1  ;;  %v2017_v19 = vsel %vm1873_vm5, %v2015_v8, %v5560_v11  ;;  %v1807_v2 = vsel %vm353_vm0, %v1805_v5, %v1806_v61  ;;  %v5563_v57 = vrot.slane %v4712_v6, 6  ;;  %v5568_v8 = vld [vmem:[#allocation154_spill] sm:$0xff] }
 0x2a5   :  { %v1582_v25 = vadd.f32 %v1571_v37, %v1548_v51  ;;  %v1891_v52 = vadd.f32 %v4685_v20, %v1856_v41  ;;  %v1605_v58 = vsel %vm1396_vm4, %v5561_v49, %v1604_v36  ;;  %v1785_v1 = vadd.f32 %v5562_v40, %v1751_v13  ;;  %v2231_v20 = vld [vmem:[%s4947_s3] ss:$0 sm:$0xff]  ;;  %v5570_v41 = vld [vmem:[#allocation58_spill] sm:$0xff] }
 0x2a6   :  { %v2026_v22 = vadd.f32 %v2017_v19, %v1992_v39  ;;  %v2051_v34 = vsel %vm1873_vm5, %v2049_v9, %v5563_v57  ;;  %v2083_v29 = vrot.slane %v2069_v59, 6  ;;  %v5565_v56 = vrot.slane %v5564_v38, 5  ;;  %v5572_v51 = vld [vmem:[#allocation117_spill] sm:$0xff]  ;;  %v5574_v59 = vld [vmem:[#allocation156_spill] sm:$0xff] }
 0x2a7   :  { %v1616_v45 = vadd.f32 %v1605_v58, %v1582_v25  ;;  %v1925_v32 = vadd.f32 %v4702_v27, %v1891_v52  ;;  %v5567_v26 = vrot.slane %v5566_v50, 5  ;;  %v1819_v5 = vadd.f32 %v1807_v2, %v1785_v1  ;;  %v5580_v52 = vld [vmem:[#allocation126_spill] sm:$0xff]  ;;  %v5583_v57 = vld [vmem:[#allocation33_spill] sm:$0xff] }
 0x2a8   :  { %v205_v4 = vadd.f32 %v2231_v20, %v5568_v8  ;;  %v2060_v36 = vadd.f32 %v2051_v34, %v2026_v22  ;;  %v1841_v35 = vsel %vm353_vm0, %v1839_v14, %v1840_v54  ;;  %v5569_v6 = vrot.slane %v4730_v44, 6  ;;  %v5578_v44 = vld [vmem:[#allocation75_spill] sm:$0xff]  ;;  %v5582_v22 = vld [vmem:[#allocation92_spill] sm:$0xff] }
 0x2a9   :  { %v1639_v31 = vsel %vm353_vm0, %v5567_v26, %v5565_v56  ;;  %v1959_v27 = vadd.f32 %v4719_v18, %v1925_v32  ;;  %v5571_v47 = vrot.slane %v5570_v41, 5  ;;  %v5573_v9 = vrot.slane %v5572_v51, 5  ;;  %v5577_v18 = vld [vmem:[#allocation37_spill] sm:$0xff]  ;;  %v5584_v56 = vld [vmem:[#allocation72_spill] sm:$0xff] }
 0x2aa   :  { %v1650_v33 = vadd.f32 %v1639_v31, %v1616_v45  ;;  %v2085_v53 = vsel %vm1873_vm5, %v2083_v29, %v5569_v6  ;;  %v1795_v16 = vmul.f32 %v5575_v28, %v5574_v59  ;;  %v1853_v37 = vadd.f32 %v1841_v35, %v1819_v5  ;;  %v5587_v8 = vld [vmem:[#allocation36_spill] sm:$0xff]  ;;  %v5593_v28 = vld [vmem:[#allocation34_spill] sm:$0xff] }
 0x2ab   :  { %v1673_v42 = vsel %vm353_vm0, %v5573_v9, %v5571_v47  ;;  %v2094_v43 = vadd.f32 %v2085_v53, %v2060_v36  ;;  %v1998_v14 = vmul.f32 %v5446_v60, %v5576_v21  ;;  %v1993_v39 = vadd.f32 %v5577_v18, %v1959_v27  ;;  %v5591_v51 = vld [vmem:[#allocation108_spill] sm:$0xff] }
 0x2ac   :  { %v1684_v13 = vadd.f32 %v1673_v42, %v1650_v33  ;;  %v5579_v25 = vrot.slane %v5578_v44, 5  ;;  %v5581_v11 = vrot.slane %v5580_v52, 5  ;;  %v1829_v49 = vmul.f32 %v4322_v15, %v4468_v7 }
 0x2ad   :  { %v1888_v58 = vadd.f32 %v4635_v48, %v1853_v37  ;;  %v2098_v40 = vmul.f32 %v2094_v43, %v205_v4  ;;  %v2027_v2 = vadd.f32 %v4741_v55, %v1993_v39  ;;  %v1774_v45 = vrot.slane %v5582_v22, 5  ;;  %v5586_v55 = vld [vmem:[#allocation153_spill] sm:$0xff]  ;;  %v5594_v43 = vld [vmem:[#allocation144_spill] sm:$0xff] }
 0x2ae   :  { %v1707_v19 = vsel %vm353_vm0, %v5581_v11, %v5579_v25  ;;  %v1808_v60 = vrot.slane %v1795_v16, 5  ;;  %v2010_v29 = vrot.slane %v1998_v14, 6  ;;  %v5585_v50 = vrot.slane %v5584_v56, 5 }
 0x2af   :  { %v1718_v1 = vadd.f32 %v1707_v19, %v1684_v13  ;;  %v1922_v32 = vadd.f32 %v4647_v12, %v1888_v58  ;;  %2406 = vmatprep.mubr.f32.mxu1 %v2098_v40  ;;  %v2061_v38 = vadd.f32 %v4746_v63, %v2027_v2  ;;  %v1842_v7 = vrot.slane %v1829_v49, 5 }
 0x2b0   :  { %v1775_v15 = vsel %vm353_vm0, %v5585_v50, %v1774_v45  ;;  %v210_v31 = vadd.f32 %v5586_v55, %v2231_v20  ;;  %v1809_v12 = vsel %vm353_vm0, %v1806_v61, %v1808_v60  ;;  %v5588_v63 = vrot.slane %v4577_v46, 6  ;;  %v5592_v46 = vld [vmem:[#allocation17_spill] sm:$0xff] }
 0x2b1   :  { %v1752_v34 = vadd.f32 %v5583_v57, %v1718_v1  ;;  %v1956_v48 = vadd.f32 %v4655_v10, %v1922_v32  ;;  %v2095_v5 = vadd.f32 %v4763_v3, %v2061_v38  ;;  %v1843_v27 = vsel %vm353_vm0, %v1840_v54, %v1842_v7  ;;  %v5589_v3 = vld [vmem:[#allocation109_spill] sm:$0xff] }
 0x2b2   :  { %v2012_v33 = vsel %vm1873_vm5, %v2010_v29, %v5588_v63  ;;  %v195_v47 = vadd.f32 %v2231_v20, %v5590_v0 }
 0x2b3   :  { %v1786_v26 = vadd.f32 %v1775_v15, %v1752_v34  ;;  %v1990_v4 = vadd.f32 %v5587_v8, %v1956_v48  ;;  %v2099_v35 = vmul.f32 %v2095_v5, %v210_v31 }
 0x2b5   :  { %v1820_v36 = vadd.f32 %v1809_v12, %v1786_v26  ;;  %v2024_v10 = vadd.f32 %v2012_v33, %v1990_v4  ;;  %2407 = vmatmul.mubr.f32.vlgmr.msra.gmra.mrb[4].mxu1 %v2099_v35 }
 0x2b7   :  { %v1854_v6 = vadd.f32 %v1843_v27, %v1820_v36  ;;  %v2058_v53 = vadd.f32 %v4690_v23, %v2024_v10  ;;  %v200_v23 = vadd.f32 %v5594_v43, %v2231_v20 }
 0x2b9   :  { %v1889_v41 = vadd.f32 %v5589_v3, %v1854_v6  ;;  %v2092_v61 = vadd.f32 %v4693_v17, %v2058_v53  ;;  %v2234_v17 = vld [vmem:[%s4952_s8] ss:$0 sm:$0xff] }
 0x2bb   :  { %v1923_v9 = vadd.f32 %v5591_v51, %v1889_v41  ;;  %v2096_v42 = vmul.f32 %v2092_v61, %v195_v47 }
 0x2bd   :  { %v1957_v59 = vadd.f32 %v5592_v46, %v1923_v9  ;;  %2403 = vmatprep.mubr.f32.mxu0 %v2096_v42 }
 0x2bf   :  { %v1991_v16 = vadd.f32 %v5593_v28, %v1957_v59 }
 0x2c1   :  { %v2025_v54 = vadd.f32 %v4604_v62, %v1991_v16 }
 0x2c3   :  { %v2059_v37 = vadd.f32 %v4607_v24, %v2025_v54 }
 0x2c5   :  { %v2093_v13 = vadd.f32 %v4640_v30, %v2059_v37 }
 0x2c7   :  { %v2097_v21 = vmul.f32 %v2093_v13, %v200_v23 }
 0x2c9   :  { %2404 = vmatmul.mubr.f32.vlgmr.msra.gmra.mrb[4].mxu0 %v2097_v21 }
 0x388   :  { %v2408_v14 = vpop.f32.mrb[4].mxu1 }
 0x389   :  { %v2205_v18 = vadd.f32 %v2408_v14, %v2234_v17  ;;  %v2199_v39 = vpop.f32.mrb[5].mxu1 }
 0x38a   :  { %v2200_v44 = vadd.f32 %v2234_v17, %v2199_v39 }
 0x38b   :  { %2211 = vst [vmem:[#allocation11 + $0x18] sm:$0xff] %v2205_v18 }
 0x38c   :  { %2210 = vst [vmem:[#allocation11 + $0x10] sm:$0xff] %v2200_v44 }
 0x39c   :  { %v2405_v62 = vpop.f32.mrb[4].mxu0 }
 0x39d   :  { %v2195_v24 = vadd.f32 %v2405_v62, %v2234_v17  ;;  %v2189_v25 = vpop.f32.mrb[5].mxu0 }
 0x39e   :  { %v2190_v20 = vadd.f32 %v2234_v17, %v2189_v25 }
 0x39f   :  { %2209 = vst [vmem:[#allocation11 + $0x8] sm:$0xff] %v2195_v24 }
 0x3a0   :  { %2208 = vst [vmem:[#allocation11] sm:$0xff] %v2190_v20 }
 0x3a1   :  { %2662 = shalt.err (!%p2659_p2)
}
 0x3a2   :  { %s2663_s19 = scalar_lea.hbm %s4953_s9, 512 }
 0x3a3   :  { %p2664_p3 = scmp.ne.s32.totalorder %s4953_s9, %s2663_s19  ;;  %p2667_p4 = scmp.lt.u32.totalorder %s2663_s19, %s4953_s9 }
 0x3a5   :  { %p2669_p5 = pnand %p2667_p4, %p2664_p3 }
 0x3a7   :  { %2672 = shalt.err (!%p2669_p5)
}
 0x3a8   :  { %2223 = dma.vmem_to_hbm [thread:$0]  %s2218_s15, 512, %s4953_s9, [#allocation4], %s2683_s21, %s2683_s21, %s2684_s22  }
 0x3a9   :  { %2679 = dma.done.wait [#allocation4], 512  }
 0x3aa   :  { %2680 = vsyncadd [#allocation4], 4294966784 }
 0x3ab   :  { %2227 = vsyncpa [#allocation3], 1 }
 0x3ac   :  { %2228 = vsyncpa [#allocation6], 1 }
 0x3ad   :  { %2229 = vsyncpa [#allocation9], 1 }
 0x3ae   :  { %2230 = vsyncpa [#allocation4], 1 }

</bundles_post_ra>
